<compile_context>
chip_gen: v6e
topology: v6e:2x2x1
jax: 0.10.0
libtpu: 0.0.40
codegen_flags: <defaults>
</compile_context>

<pallas_src>
import jax
import jax.numpy as jnp
import numpy as np
from jax.experimental import pallas as pl
from jax.experimental.pallas import tpu as pltpu

EPS = 1e-5  # torch.nn.InstanceNorm2d default eps

# ConvTranspose2d(k=4, s=2, p=1):  out[o] += x[i] * W[k]  with  o = 2*i - 1 + k.
# For output parity p (o = 2*h + p) the contributing (padded-row-offset, k)
# pairs are:  p=0 -> {(1, 1), (0, 3)},   p=1 -> {(2, 0), (1, 2)}
# where padded-row-offset r means input row i = h + r - 1 of the 1-padded input.
_PARITY_TAPS = (((1, 1), (0, 3)), ((2, 0), (1, 2)))


def _phase_taps():
    """For each of the 4 output phases (py, px), the 4 (ry, kh, rx, kw) taps."""
    phases = []
    for py in (0, 1):
        for px in (0, 1):
            taps = []
            for ry, kh in _PARITY_TAPS[py]:
                for rx, kw in _PARITY_TAPS[px]:
                    taps.append((ry, kh, rx, kw))
            phases.append(tuple(taps))
    return tuple(phases)


_PHASES = _phase_taps()  # 4 phases (p = 2*py + px), each 4 taps (ry, kh, rx, kw)


def upsampling_kernel(x_ref, w_ref, gamma_ref, beta_ref, out_ref):
    # x_ref:     (1, H+2, W+2, Cin)  pre-padded channels-last input, bf16
    # w_ref:     (4, 4, Cin, Cout)   per-(phase, tap) weights, bf16, resident
    # gamma_ref: (1, Cout)           f32 InstanceNorm scale
    # beta_ref:  (1, Cout)           f32 InstanceNorm shift
    # out_ref:   (1, 4, Pp, Cout)    output (Pp = H*W positions per phase)
    _, hp2, wp2, cin = x_ref.shape
    H, W = hp2 - 2, wp2 - 2
    Pp = H * W
    Cout = out_ref.shape[-1]

    xv = x_ref[0]                                        # (H+2, W+2, Cin)

    ch_sum = jnp.zeros((1, Cout), jnp.float32)
    ch_ssq = jnp.zeros((1, Cout), jnp.float32)

    # ConvTranspose2d hot path: phases unrolled, 4 accumulating MXU matmuls
    # (K = Cin each) per phase; in-kernel im2col = static shifted-window views.
    for p, taps in enumerate(_PHASES):
        y = jnp.zeros((Pp, Cout), jnp.float32)
        for t, (ry, _kh, rx, _kw) in enumerate(taps):
            xt = xv[ry:ry + H, rx:rx + W, :].reshape(Pp, cin)   # (Pp, Cin) bf16
            y = y + jnp.dot(xt, w_ref[p, t],
                            preferred_element_type=jnp.float32)  # (Pp, Cout) f32

        # Stream per-channel statistics (InstanceNorm spans all 4 phases).
        ch_sum = ch_sum + jnp.sum(y, axis=0, keepdims=True)
        ch_ssq = ch_ssq + jnp.sum(y * y, axis=0, keepdims=True)

        # Stash the un-normalized phase result in the output block.
        # (If out dtype is narrower than f32 the stash is rounded while the
        #  statistics are not -- documented, acceptable inconsistency.)
        out_ref[0, p] = y.astype(out_ref.dtype)

    # InstanceNorm over all 2H x 2W positions (biased variance, one-pass
    # E[y^2]-mean^2 with a >=0 clamp), fused with affine + ReLU.
    inv = 1.0 / float(4 * Pp)
    mean = ch_sum * inv
    var = jnp.maximum(ch_ssq * inv - mean * mean, 0.0)
    scale = gamma_ref[...] * jax.lax.rsqrt(var + EPS)    # (1, Cout)
    shift = beta_ref[...] - mean * scale

    # Finalize per phase to bound temporary live ranges (stores can stream).
    for p in range(4):
        yp = out_ref[0, p].astype(jnp.float32)           # (Pp, Cout)
        out_ref[0, p] = jnp.maximum(yp * scale + shift, 0.0).astype(out_ref.dtype)


def _pick_vmem_limit(estimate_bytes):
    """Generation-aware VMEM ceiling (128 MiB on v5e/v6e, 64 MiB on v7x)."""
    try:
        cap = int(pltpu.get_tpu_info().vmem_capacity_bytes)
    except Exception:
        cap = 64 * 1024 * 1024            # conservative fallback (v7x physical)
    ceiling = max(32 * 1024 * 1024, cap - 16 * 1024 * 1024)   # leave headroom
    want = int(estimate_bytes * 1.5)
    return max(32 * 1024 * 1024, min(want, ceiling))


def upsampling_forward(x, weight, gamma, beta, *, kernel_size=4, stride=2,
                       padding=1, output_padding=0,
                       compute_dtype=jnp.bfloat16):
    """x: (N, Cin, H, W); weight: (Cin, Cout, k, k) (PyTorch ConvTranspose2d)."""
    assert (kernel_size, stride, padding, output_padding) == (4, 2, 1, 0), (
        "phase decomposition implemented for k=4, s=2, p=1, output_padding=0")
    N, Cin, H, W = x.shape
    Cout = weight.shape[1]
    Hout, Wout = 2 * H, 2 * W
    Pp = H * W

    # --- glue (plain JAX, single small pass over the raw input) -------------
    # Channels-last, spatially 1-padded input: 1/16th of the HBM bytes the old
    # pre-materialized patch tensor needed, and no XLA im2col pre-pass.
    xp = jnp.pad(x, ((0, 0), (0, 0), (1, 1), (1, 1)))
    xp = jnp.transpose(xp, (0, 2, 3, 1)).astype(compute_dtype)  # (N,H+2,W+2,Cin)

    # Per-(phase, tap) weight matrices; fetched into VMEM once (constant map).
    w_mat = jnp.stack(
        [jnp.stack([weight[:, :, kh, kw] for (_ry, kh, _rx, kw) in taps], axis=0)
         for taps in _PHASES], axis=0).astype(compute_dtype)    # (4,4,Cin,Cout)

    gamma_p = gamma.astype(jnp.float32).reshape(1, Cout)
    beta_p = beta.astype(jnp.float32).reshape(1, Cout)

    # --- VMEM budget (double-buffered blocks + in-kernel temporaries) -------
    in_isz = jnp.dtype(compute_dtype).itemsize
    out_isz = jnp.dtype(x.dtype).itemsize
    x_blk = (H + 2) * (W + 2) * Cin * in_isz
    w_blk = 16 * Cin * Cout * in_isz
    out_blk = 4 * Pp * Cout * out_isz
    param_blk = 4 * 8 * max(128, ((Cout + 127) // 128) * 128) * 4  # padded (8,128)
    temporaries = x_blk + 2 * Pp * Cin * in_isz + 3 * Pp * Cout * 4
    vmem_bytes = 2 * (x_blk + w_blk + out_blk) + param_blk + temporaries
    vmem_limit = _pick_vmem_limit(vmem_bytes)

    out = pl.pallas_call(
        upsampling_kernel,
        out_shape=jax.ShapeDtypeStruct((N, 4, Pp, Cout), x.dtype),
        grid_spec=pltpu.PrefetchScalarGridSpec(
            num_scalar_prefetch=0,
            grid=(N,),
            in_specs=[
                pl.BlockSpec((1, H + 2, W + 2, Cin), lambda n: (n, 0, 0, 0)),
                pl.BlockSpec((4, 4, Cin, Cout), lambda n: (0, 0, 0, 0)),
                pl.BlockSpec((1, Cout), lambda n: (0, 0)),
                pl.BlockSpec((1, Cout), lambda n: (0, 0)),
            ],
            out_specs=pl.BlockSpec((1, 4, Pp, Cout), lambda n: (n, 0, 0, 0)),
        ),
        compiler_params=pltpu.CompilerParams(
            dimension_semantics=("parallel",),
            vmem_limit_bytes=vmem_limit),
    )(xp, w_mat, gamma_p, beta_p)

    # (N, 4, Pp, Cout) -> NCHW: interleave the 4 phases (single transpose pass;
    # NCHW is what the PyTorch module returns).
    out = out.reshape(N, 2, 2, H, W, Cout)               # (n, py, px, h, w, c)
    out = out.transpose(0, 5, 3, 1, 4, 2).reshape(N, Cout, Hout, Wout)
    return out


def reference_forward(x, weight, gamma, beta, *, kernel_size=4, stride=2,
                      padding=1, compute_dtype=jnp.float32):
    """Pure-JAX reference (correctness check only)."""
    K = kernel_size
    pad = K - 1 - padding
    rhs = jnp.transpose(weight[:, :, ::-1, ::-1], (1, 0, 2, 3))  # (Cout,Cin,K,K)
    y = jax.lax.conv_general_dilated(
        x.astype(compute_dtype), rhs.astype(compute_dtype),
        window_strides=(1, 1), padding=[(pad, pad), (pad, pad)],
        lhs_dilation=(stride, stride),
        dimension_numbers=("NCHW", "OIHW", "NCHW"),
        preferred_element_type=jnp.float32)
    mean = y.mean(axis=(2, 3), keepdims=True)
    var = jnp.square(y - mean).mean(axis=(2, 3), keepdims=True)
    yn = (y - mean) / jnp.sqrt(var + EPS)
    yn = yn * gamma.reshape(1, -1, 1, 1) + beta.reshape(1, -1, 1, 1)
    return jnp.maximum(yn, 0.0)


if __name__ == "__main__":
    N, Cin, Cout, H, W = 2, 4, 8, 16, 16
    key = jax.random.PRNGKey(0)
    kx, kw, kg, kb = jax.random.split(key, 4)

    x = jax.random.normal(kx, (N, Cin, H, W), dtype=jnp.float32)
    # ConvTranspose2d weight: (in_channels, out_channels, kH, kW), bias=False
    weight = 0.1 * jax.random.normal(kw, (Cin, Cout, 4, 4), dtype=jnp.float32)
    # InstanceNorm2d affine params (perturbed around defaults 1 / 0)
    gamma = 1.0 + 0.1 * jax.random.normal(kg, (Cout,), dtype=jnp.float32)
    beta = 0.1 * jax.random.normal(kb, (Cout,), dtype=jnp.float32)

    out = jax.block_until_ready(upsampling_forward(x, weight, gamma, beta))
    assert out.shape == (N, Cout, 2 * H, 2 * W), out.shape

    # Tight check vs a reference using the same bf16 matmul operands / f32 acc.
    ref_bf16 = jax.block_until_ready(
        reference_forward(x, weight, gamma, beta, compute_dtype=jnp.bfloat16))
    np.testing.assert_allclose(np.asarray(out), np.asarray(ref_bf16),
                               rtol=2e-3, atol=2e-3)

    # Loose check vs the pure-f32 reference (only bf16 operand rounding differs).
    ref_f32 = jax.block_until_ready(reference_forward(x, weight, gamma, beta))
    np.testing.assert_allclose(np.asarray(out), np.asarray(ref_f32),
                               rtol=5e-2, atol=5e-2)

    print("KERNEL_OK")
</pallas_src>

<mosaic_0001>
module attributes {stable_mosaic.version = 11 : i64} {
  func.func @upsampling_kernel(%arg0: i32, %arg1: memref<1x18x18x4xbf16, #tpu.memory_space<vmem>>, %arg2: memref<4x4x4x8xbf16, #tpu.memory_space<vmem>>, %arg3: memref<1x8xf32, #tpu.memory_space<vmem>>, %arg4: memref<1x8xf32, #tpu.memory_space<vmem>>, %arg5: memref<1x4x256x8xf32, #tpu.memory_space<vmem>>) attributes {dimension_semantics = [#tpu.dimension_semantics<parallel>], iteration_bounds = array<i64: 2>, scalar_prefetch = 0 : i64, scratch_operands = 0 : i64, tpu.core_type = #tpu.core_type<tc>, window_params = [{transform_indices = @transform_0, window_bounds = array<i64: 1, 18, 18, 4>}, {pipeline_mode = #tpu.pipeline_mode<synchronous>, transform_indices = @transform_1, window_bounds = array<i64: 4, 4, 4, 8>}, {pipeline_mode = #tpu.pipeline_mode<synchronous>, transform_indices = @transform_2, window_bounds = array<i64: 1, 8>}, {pipeline_mode = #tpu.pipeline_mode<synchronous>, transform_indices = @transform_3, window_bounds = array<i64: 1, 8>}, {transform_indices = @transform_4, window_bounds = array<i64: 1, 4, 256, 8>}]} {
    %c0 = arith.constant 0 : index
    %c0_0 = arith.constant 0 : index
    %c0_1 = arith.constant 0 : index
    %c0_2 = arith.constant 0 : index
    %0 = vector.load %arg1[%c0, %c0_0, %c0_1, %c0_2] : memref<1x18x18x4xbf16, #tpu.memory_space<vmem>>, vector<1x18x18x4xbf16>
    %1 = vector.shape_cast %0 : vector<1x18x18x4xbf16> to vector<18x18x4xbf16>
    %cst = arith.constant 0.000000e+00 : f32
    %2 = vector.broadcast %cst : f32 to vector<1x8xf32>
    %cst_3 = arith.constant 0.000000e+00 : f32
    %3 = vector.broadcast %cst_3 : f32 to vector<1x8xf32>
    %cst_4 = arith.constant 0.000000e+00 : f32
    %4 = vector.broadcast %cst_4 : f32 to vector<256x8xf32>
    %5 = vector.extract_strided_slice %1 {offsets = [1, 1, 0], sizes = [16, 16, 4], strides = [1, 1, 1]} : vector<18x18x4xbf16> to vector<16x16x4xbf16>
    %6 = vector.shape_cast %5 : vector<16x16x4xbf16> to vector<256x4xbf16>
    %c0_5 = arith.constant 0 : index
    %c0_6 = arith.constant 0 : index
    %c0_7 = arith.constant 0 : index
    %c0_8 = arith.constant 0 : index
    %7 = vector.load %arg2[%c0_5, %c0_6, %c0_7, %c0_8] : memref<4x4x4x8xbf16, #tpu.memory_space<vmem>>, vector<1x1x4x8xbf16>
    %8 = vector.shape_cast %7 : vector<1x1x4x8xbf16> to vector<4x8xbf16>
    %cst_9 = arith.constant dense<0.000000e+00> : vector<256x8xf32>
    %9 = tpu.matmul %6, %8, %cst_9 {dimension_numbers = #tpu.dot_dimension_numbers<[1], [0], [0], [1], [0, 0, 1, 1], [], []>} : vector<256x4xbf16>, vector<4x8xbf16>, vector<256x8xf32> -> vector<256x8xf32>
    %10 = arith.addf %4, %9 : vector<256x8xf32>
    %11 = vector.extract_strided_slice %1 {offsets = [1, 0, 0], sizes = [16, 16, 4], strides = [1, 1, 1]} : vector<18x18x4xbf16> to vector<16x16x4xbf16>
    %12 = vector.shape_cast %11 : vector<16x16x4xbf16> to vector<256x4xbf16>
    %c0_10 = arith.constant 0 : index
    %c1 = arith.constant 1 : index
    %c0_11 = arith.constant 0 : index
    %c0_12 = arith.constant 0 : index
    %13 = vector.load %arg2[%c0_10, %c1, %c0_11, %c0_12] : memref<4x4x4x8xbf16, #tpu.memory_space<vmem>>, vector<1x1x4x8xbf16>
    %14 = vector.shape_cast %13 : vector<1x1x4x8xbf16> to vector<4x8xbf16>
    %cst_13 = arith.constant dense<0.000000e+00> : vector<256x8xf32>
    %15 = tpu.matmul %12, %14, %cst_13 {dimension_numbers = #tpu.dot_dimension_numbers<[1], [0], [0], [1], [0, 0, 1, 1], [], []>} : vector<256x4xbf16>, vector<4x8xbf16>, vector<256x8xf32> -> vector<256x8xf32>
    %16 = arith.addf %10, %15 : vector<256x8xf32>
    %17 = vector.extract_strided_slice %1 {offsets = [0, 1, 0], sizes = [16, 16, 4], strides = [1, 1, 1]} : vector<18x18x4xbf16> to vector<16x16x4xbf16>
    %18 = vector.shape_cast %17 : vector<16x16x4xbf16> to vector<256x4xbf16>
    %c0_14 = arith.constant 0 : index
    %c2 = arith.constant 2 : index
    %c0_15 = arith.constant 0 : index
    %c0_16 = arith.constant 0 : index
    %19 = vector.load %arg2[%c0_14, %c2, %c0_15, %c0_16] : memref<4x4x4x8xbf16, #tpu.memory_space<vmem>>, vector<1x1x4x8xbf16>
    %20 = vector.shape_cast %19 : vector<1x1x4x8xbf16> to vector<4x8xbf16>
    %cst_17 = arith.constant dense<0.000000e+00> : vector<256x8xf32>
    %21 = tpu.matmul %18, %20, %cst_17 {dimension_numbers = #tpu.dot_dimension_numbers<[1], [0], [0], [1], [0, 0, 1, 1], [], []>} : vector<256x4xbf16>, vector<4x8xbf16>, vector<256x8xf32> -> vector<256x8xf32>
    %22 = arith.addf %16, %21 : vector<256x8xf32>
    %23 = vector.extract_strided_slice %1 {offsets = [0, 0, 0], sizes = [16, 16, 4], strides = [1, 1, 1]} : vector<18x18x4xbf16> to vector<16x16x4xbf16>
    %24 = vector.shape_cast %23 : vector<16x16x4xbf16> to vector<256x4xbf16>
    %c0_18 = arith.constant 0 : index
    %c3 = arith.constant 3 : index
    %c0_19 = arith.constant 0 : index
    %c0_20 = arith.constant 0 : index
    %25 = vector.load %arg2[%c0_18, %c3, %c0_19, %c0_20] : memref<4x4x4x8xbf16, #tpu.memory_space<vmem>>, vector<1x1x4x8xbf16>
    %26 = vector.shape_cast %25 : vector<1x1x4x8xbf16> to vector<4x8xbf16>
    %cst_21 = arith.constant dense<0.000000e+00> : vector<256x8xf32>
    %27 = tpu.matmul %24, %26, %cst_21 {dimension_numbers = #tpu.dot_dimension_numbers<[1], [0], [0], [1], [0, 0, 1, 1], [], []>} : vector<256x4xbf16>, vector<4x8xbf16>, vector<256x8xf32> -> vector<256x8xf32>
    %28 = arith.addf %22, %27 : vector<256x8xf32>
    %cst_22 = arith.constant dense<0.000000e+00> : vector<8xf32>
    %29 = vector.multi_reduction <add>, %28, %cst_22 [0] : vector<256x8xf32> to vector<8xf32>
    %30 = vector.shape_cast %29 : vector<8xf32> to vector<1x8xf32>
    %31 = arith.addf %2, %30 : vector<1x8xf32>
    %32 = arith.mulf %28, %28 : vector<256x8xf32>
    %cst_23 = arith.constant dense<0.000000e+00> : vector<8xf32>
    %33 = vector.multi_reduction <add>, %32, %cst_23 [0] : vector<256x8xf32> to vector<8xf32>
    %34 = vector.shape_cast %33 : vector<8xf32> to vector<1x8xf32>
    %35 = arith.addf %3, %34 : vector<1x8xf32>
    %c0_24 = arith.constant 0 : index
    %c0_25 = arith.constant 0 : index
    %c0_26 = arith.constant 0 : index
    %c0_27 = arith.constant 0 : index
    %36 = vector.load %arg5[%c0_24, %c0_25, %c0_26, %c0_27] : memref<1x4x256x8xf32, #tpu.memory_space<vmem>>, vector<1x1x256x8xf32>
    %37 = vector.shape_cast %36 : vector<1x1x256x8xf32> to vector<256x8xf32>
    %38 = vector.shape_cast %28 : vector<256x8xf32> to vector<1x1x256x8xf32>
    tpu.vector_store %arg5[%c0_24, %c0_25, %c0_26, %c0_27], %38 {strides = array<i32>} : memref<1x4x256x8xf32, #tpu.memory_space<vmem>>, vector<1x1x256x8xf32>,
    %cst_28 = arith.constant 0.000000e+00 : f32
    %39 = vector.broadcast %cst_28 : f32 to vector<256x8xf32>
    %40 = vector.extract_strided_slice %1 {offsets = [1, 2, 0], sizes = [16, 16, 4], strides = [1, 1, 1]} : vector<18x18x4xbf16> to vector<16x16x4xbf16>
    %41 = vector.shape_cast %40 : vector<16x16x4xbf16> to vector<256x4xbf16>
    %c1_29 = arith.constant 1 : index
    %c0_30 = arith.constant 0 : index
    %c0_31 = arith.constant 0 : index
    %c0_32 = arith.constant 0 : index
    %42 = vector.load %arg2[%c1_29, %c0_30, %c0_31, %c0_32] : memref<4x4x4x8xbf16, #tpu.memory_space<vmem>>, vector<1x1x4x8xbf16>
    %43 = vector.shape_cast %42 : vector<1x1x4x8xbf16> to vector<4x8xbf16>
    %cst_33 = arith.constant dense<0.000000e+00> : vector<256x8xf32>
    %44 = tpu.matmul %41, %43, %cst_33 {dimension_numbers = #tpu.dot_dimension_numbers<[1], [0], [0], [1], [0, 0, 1, 1], [], []>} : vector<256x4xbf16>, vector<4x8xbf16>, vector<256x8xf32> -> vector<256x8xf32>
    %45 = arith.addf %39, %44 : vector<256x8xf32>
    %46 = vector.extract_strided_slice %1 {offsets = [1, 1, 0], sizes = [16, 16, 4], strides = [1, 1, 1]} : vector<18x18x4xbf16> to vector<16x16x4xbf16>
    %47 = vector.shape_cast %46 : vector<16x16x4xbf16> to vector<256x4xbf16>
    %c1_34 = arith.constant 1 : index
    %c1_35 = arith.constant 1 : index
    %c0_36 = arith.constant 0 : index
    %c0_37 = arith.constant 0 : index
    %48 = vector.load %arg2[%c1_34, %c1_35, %c0_36, %c0_37] : memref<4x4x4x8xbf16, #tpu.memory_space<vmem>>, vector<1x1x4x8xbf16>
    %49 = vector.shape_cast %48 : vector<1x1x4x8xbf16> to vector<4x8xbf16>
    %cst_38 = arith.constant dense<0.000000e+00> : vector<256x8xf32>
    %50 = tpu.matmul %47, %49, %cst_38 {dimension_numbers = #tpu.dot_dimension_numbers<[1], [0], [0], [1], [0, 0, 1, 1], [], []>} : vector<256x4xbf16>, vector<4x8xbf16>, vector<256x8xf32> -> vector<256x8xf32>
    %51 = arith.addf %45, %50 : vector<256x8xf32>
    %52 = vector.extract_strided_slice %1 {offsets = [0, 2, 0], sizes = [16, 16, 4], strides = [1, 1, 1]} : vector<18x18x4xbf16> to vector<16x16x4xbf16>
    %53 = vector.shape_cast %52 : vector<16x16x4xbf16> to vector<256x4xbf16>
    %c1_39 = arith.constant 1 : index
    %c2_40 = arith.constant 2 : index
    %c0_41 = arith.constant 0 : index
    %c0_42 = arith.constant 0 : index
    %54 = vector.load %arg2[%c1_39, %c2_40, %c0_41, %c0_42] : memref<4x4x4x8xbf16, #tpu.memory_space<vmem>>, vector<1x1x4x8xbf16>
    %55 = vector.shape_cast %54 : vector<1x1x4x8xbf16> to vector<4x8xbf16>
    %cst_43 = arith.constant dense<0.000000e+00> : vector<256x8xf32>
    %56 = tpu.matmul %53, %55, %cst_43 {dimension_numbers = #tpu.dot_dimension_numbers<[1], [0], [0], [1], [0, 0, 1, 1], [], []>} : vector<256x4xbf16>, vector<4x8xbf16>, vector<256x8xf32> -> vector<256x8xf32>
    %57 = arith.addf %51, %56 : vector<256x8xf32>
    %58 = vector.extract_strided_slice %1 {offsets = [0, 1, 0], sizes = [16, 16, 4], strides = [1, 1, 1]} : vector<18x18x4xbf16> to vector<16x16x4xbf16>
    %59 = vector.shape_cast %58 : vector<16x16x4xbf16> to vector<256x4xbf16>
    %c1_44 = arith.constant 1 : index
    %c3_45 = arith.constant 3 : index
    %c0_46 = arith.constant 0 : index
    %c0_47 = arith.constant 0 : index
    %60 = vector.load %arg2[%c1_44, %c3_45, %c0_46, %c0_47] : memref<4x4x4x8xbf16, #tpu.memory_space<vmem>>, vector<1x1x4x8xbf16>
    %61 = vector.shape_cast %60 : vector<1x1x4x8xbf16> to vector<4x8xbf16>
    %cst_48 = arith.constant dense<0.000000e+00> : vector<256x8xf32>
    %62 = tpu.matmul %59, %61, %cst_48 {dimension_numbers = #tpu.dot_dimension_numbers<[1], [0], [0], [1], [0, 0, 1, 1], [], []>} : vector<256x4xbf16>, vector<4x8xbf16>, vector<256x8xf32> -> vector<256x8xf32>
    %63 = arith.addf %57, %62 : vector<256x8xf32>
    %cst_49 = arith.constant dense<0.000000e+00> : vector<8xf32>
    %64 = vector.multi_reduction <add>, %63, %cst_49 [0] : vector<256x8xf32> to vector<8xf32>
    %65 = vector.shape_cast %64 : vector<8xf32> to vector<1x8xf32>
    %66 = arith.addf %31, %65 : vector<1x8xf32>
    %67 = arith.mulf %63, %63 : vector<256x8xf32>
    %cst_50 = arith.constant dense<0.000000e+00> : vector<8xf32>
    %68 = vector.multi_reduction <add>, %67, %cst_50 [0] : vector<256x8xf32> to vector<8xf32>
    %69 = vector.shape_cast %68 : vector<8xf32> to vector<1x8xf32>
    %70 = arith.addf %35, %69 : vector<1x8xf32>
    %c0_51 = arith.constant 0 : index
    %c1_52 = arith.constant 1 : index
    %c0_53 = arith.constant 0 : index
    %c0_54 = arith.constant 0 : index
    %71 = vector.load %arg5[%c0_51, %c1_52, %c0_53, %c0_54] : memref<1x4x256x8xf32, #tpu.memory_space<vmem>>, vector<1x1x256x8xf32>
    %72 = vector.shape_cast %71 : vector<1x1x256x8xf32> to vector<256x8xf32>
    %73 = vector.shape_cast %63 : vector<256x8xf32> to vector<1x1x256x8xf32>
    tpu.vector_store %arg5[%c0_51, %c1_52, %c0_53, %c0_54], %73 {strides = array<i32>} : memref<1x4x256x8xf32, #tpu.memory_space<vmem>>, vector<1x1x256x8xf32>,
    %cst_55 = arith.constant 0.000000e+00 : f32
    %74 = vector.broadcast %cst_55 : f32 to vector<256x8xf32>
    %75 = vector.extract_strided_slice %1 {offsets = [2, 1, 0], sizes = [16, 16, 4], strides = [1, 1, 1]} : vector<18x18x4xbf16> to vector<16x16x4xbf16>
    %76 = vector.shape_cast %75 : vector<16x16x4xbf16> to vector<256x4xbf16>
    %c2_56 = arith.constant 2 : index
    %c0_57 = arith.constant 0 : index
    %c0_58 = arith.constant 0 : index
    %c0_59 = arith.constant 0 : index
    %77 = vector.load %arg2[%c2_56, %c0_57, %c0_58, %c0_59] : memref<4x4x4x8xbf16, #tpu.memory_space<vmem>>, vector<1x1x4x8xbf16>
    %78 = vector.shape_cast %77 : vector<1x1x4x8xbf16> to vector<4x8xbf16>
    %cst_60 = arith.constant dense<0.000000e+00> : vector<256x8xf32>
    %79 = tpu.matmul %76, %78, %cst_60 {dimension_numbers = #tpu.dot_dimension_numbers<[1], [0], [0], [1], [0, 0, 1, 1], [], []>} : vector<256x4xbf16>, vector<4x8xbf16>, vector<256x8xf32> -> vector<256x8xf32>
    %80 = arith.addf %74, %79 : vector<256x8xf32>
    %81 = vector.extract_strided_slice %1 {offsets = [2, 0, 0], sizes = [16, 16, 4], strides = [1, 1, 1]} : vector<18x18x4xbf16> to vector<16x16x4xbf16>
    %82 = vector.shape_cast %81 : vector<16x16x4xbf16> to vector<256x4xbf16>
    %c2_61 = arith.constant 2 : index
    %c1_62 = arith.constant 1 : index
    %c0_63 = arith.constant 0 : index
    %c0_64 = arith.constant 0 : index
    %83 = vector.load %arg2[%c2_61, %c1_62, %c0_63, %c0_64] : memref<4x4x4x8xbf16, #tpu.memory_space<vmem>>, vector<1x1x4x8xbf16>
    %84 = vector.shape_cast %83 : vector<1x1x4x8xbf16> to vector<4x8xbf16>
    %cst_65 = arith.constant dense<0.000000e+00> : vector<256x8xf32>
    %85 = tpu.matmul %82, %84, %cst_65 {dimension_numbers = #tpu.dot_dimension_numbers<[1], [0], [0], [1], [0, 0, 1, 1], [], []>} : vector<256x4xbf16>, vector<4x8xbf16>, vector<256x8xf32> -> vector<256x8xf32>
    %86 = arith.addf %80, %85 : vector<256x8xf32>
    %87 = vector.extract_strided_slice %1 {offsets = [1, 1, 0], sizes = [16, 16, 4], strides = [1, 1, 1]} : vector<18x18x4xbf16> to vector<16x16x4xbf16>
    %88 = vector.shape_cast %87 : vector<16x16x4xbf16> to vector<256x4xbf16>
    %c2_66 = arith.constant 2 : index
    %c2_67 = arith.constant 2 : index
    %c0_68 = arith.constant 0 : index
    %c0_69 = arith.constant 0 : index
    %89 = vector.load %arg2[%c2_66, %c2_67, %c0_68, %c0_69] : memref<4x4x4x8xbf16, #tpu.memory_space<vmem>>, vector<1x1x4x8xbf16>
    %90 = vector.shape_cast %89 : vector<1x1x4x8xbf16> to vector<4x8xbf16>
    %cst_70 = arith.constant dense<0.000000e+00> : vector<256x8xf32>
    %91 = tpu.matmul %88, %90, %cst_70 {dimension_numbers = #tpu.dot_dimension_numbers<[1], [0], [0], [1], [0, 0, 1, 1], [], []>} : vector<256x4xbf16>, vector<4x8xbf16>, vector<256x8xf32> -> vector<256x8xf32>
    %92 = arith.addf %86, %91 : vector<256x8xf32>
    %93 = vector.extract_strided_slice %1 {offsets = [1, 0, 0], sizes = [16, 16, 4], strides = [1, 1, 1]} : vector<18x18x4xbf16> to vector<16x16x4xbf16>
    %94 = vector.shape_cast %93 : vector<16x16x4xbf16> to vector<256x4xbf16>
    %c2_71 = arith.constant 2 : index
    %c3_72 = arith.constant 3 : index
    %c0_73 = arith.constant 0 : index
    %c0_74 = arith.constant 0 : index
    %95 = vector.load %arg2[%c2_71, %c3_72, %c0_73, %c0_74] : memref<4x4x4x8xbf16, #tpu.memory_space<vmem>>, vector<1x1x4x8xbf16>
    %96 = vector.shape_cast %95 : vector<1x1x4x8xbf16> to vector<4x8xbf16>
    %cst_75 = arith.constant dense<0.000000e+00> : vector<256x8xf32>
    %97 = tpu.matmul %94, %96, %cst_75 {dimension_numbers = #tpu.dot_dimension_numbers<[1], [0], [0], [1], [0, 0, 1, 1], [], []>} : vector<256x4xbf16>, vector<4x8xbf16>, vector<256x8xf32> -> vector<256x8xf32>
    %98 = arith.addf %92, %97 : vector<256x8xf32>
    %cst_76 = arith.constant dense<0.000000e+00> : vector<8xf32>
    %99 = vector.multi_reduction <add>, %98, %cst_76 [0] : vector<256x8xf32> to vector<8xf32>
    %100 = vector.shape_cast %99 : vector<8xf32> to vector<1x8xf32>
    %101 = arith.addf %66, %100 : vector<1x8xf32>
    %102 = arith.mulf %98, %98 : vector<256x8xf32>
    %cst_77 = arith.constant dense<0.000000e+00> : vector<8xf32>
    %103 = vector.multi_reduction <add>, %102, %cst_77 [0] : vector<256x8xf32> to vector<8xf32>
    %104 = vector.shape_cast %103 : vector<8xf32> to vector<1x8xf32>
    %105 = arith.addf %70, %104 : vector<1x8xf32>
    %c0_78 = arith.constant 0 : index
    %c2_79 = arith.constant 2 : index
    %c0_80 = arith.constant 0 : index
    %c0_81 = arith.constant 0 : index
    %106 = vector.load %arg5[%c0_78, %c2_79, %c0_80, %c0_81] : memref<1x4x256x8xf32, #tpu.memory_space<vmem>>, vector<1x1x256x8xf32>
    %107 = vector.shape_cast %106 : vector<1x1x256x8xf32> to vector<256x8xf32>
    %108 = vector.shape_cast %98 : vector<256x8xf32> to vector<1x1x256x8xf32>
    tpu.vector_store %arg5[%c0_78, %c2_79, %c0_80, %c0_81], %108 {strides = array<i32>} : memref<1x4x256x8xf32, #tpu.memory_space<vmem>>, vector<1x1x256x8xf32>,
    %cst_82 = arith.constant 0.000000e+00 : f32
    %109 = vector.broadcast %cst_82 : f32 to vector<256x8xf32>
    %110 = vector.extract_strided_slice %1 {offsets = [2, 2, 0], sizes = [16, 16, 4], strides = [1, 1, 1]} : vector<18x18x4xbf16> to vector<16x16x4xbf16>
    %111 = vector.shape_cast %110 : vector<16x16x4xbf16> to vector<256x4xbf16>
    %c3_83 = arith.constant 3 : index
    %c0_84 = arith.constant 0 : index
    %c0_85 = arith.constant 0 : index
    %c0_86 = arith.constant 0 : index
    %112 = vector.load %arg2[%c3_83, %c0_84, %c0_85, %c0_86] : memref<4x4x4x8xbf16, #tpu.memory_space<vmem>>, vector<1x1x4x8xbf16>
    %113 = vector.shape_cast %112 : vector<1x1x4x8xbf16> to vector<4x8xbf16>
    %cst_87 = arith.constant dense<0.000000e+00> : vector<256x8xf32>
    %114 = tpu.matmul %111, %113, %cst_87 {dimension_numbers = #tpu.dot_dimension_numbers<[1], [0], [0], [1], [0, 0, 1, 1], [], []>} : vector<256x4xbf16>, vector<4x8xbf16>, vector<256x8xf32> -> vector<256x8xf32>
    %115 = arith.addf %109, %114 : vector<256x8xf32>
    %116 = vector.extract_strided_slice %1 {offsets = [2, 1, 0], sizes = [16, 16, 4], strides = [1, 1, 1]} : vector<18x18x4xbf16> to vector<16x16x4xbf16>
    %117 = vector.shape_cast %116 : vector<16x16x4xbf16> to vector<256x4xbf16>
    %c3_88 = arith.constant 3 : index
    %c1_89 = arith.constant 1 : index
    %c0_90 = arith.constant 0 : index
    %c0_91 = arith.constant 0 : index
    %118 = vector.load %arg2[%c3_88, %c1_89, %c0_90, %c0_91] : memref<4x4x4x8xbf16, #tpu.memory_space<vmem>>, vector<1x1x4x8xbf16>
    %119 = vector.shape_cast %118 : vector<1x1x4x8xbf16> to vector<4x8xbf16>
    %cst_92 = arith.constant dense<0.000000e+00> : vector<256x8xf32>
    %120 = tpu.matmul %117, %119, %cst_92 {dimension_numbers = #tpu.dot_dimension_numbers<[1], [0], [0], [1], [0, 0, 1, 1], [], []>} : vector<256x4xbf16>, vector<4x8xbf16>, vector<256x8xf32> -> vector<256x8xf32>
    %121 = arith.addf %115, %120 : vector<256x8xf32>
    %122 = vector.extract_strided_slice %1 {offsets = [1, 2, 0], sizes = [16, 16, 4], strides = [1, 1, 1]} : vector<18x18x4xbf16> to vector<16x16x4xbf16>
    %123 = vector.shape_cast %122 : vector<16x16x4xbf16> to vector<256x4xbf16>
    %c3_93 = arith.constant 3 : index
    %c2_94 = arith.constant 2 : index
    %c0_95 = arith.constant 0 : index
    %c0_96 = arith.constant 0 : index
    %124 = vector.load %arg2[%c3_93, %c2_94, %c0_95, %c0_96] : memref<4x4x4x8xbf16, #tpu.memory_space<vmem>>, vector<1x1x4x8xbf16>
    %125 = vector.shape_cast %124 : vector<1x1x4x8xbf16> to vector<4x8xbf16>
    %cst_97 = arith.constant dense<0.000000e+00> : vector<256x8xf32>
    %126 = tpu.matmul %123, %125, %cst_97 {dimension_numbers = #tpu.dot_dimension_numbers<[1], [0], [0], [1], [0, 0, 1, 1], [], []>} : vector<256x4xbf16>, vector<4x8xbf16>, vector<256x8xf32> -> vector<256x8xf32>
    %127 = arith.addf %121, %126 : vector<256x8xf32>
    %128 = vector.extract_strided_slice %1 {offsets = [1, 1, 0], sizes = [16, 16, 4], strides = [1, 1, 1]} : vector<18x18x4xbf16> to vector<16x16x4xbf16>
    %129 = vector.shape_cast %128 : vector<16x16x4xbf16> to vector<256x4xbf16>
    %c3_98 = arith.constant 3 : index
    %c3_99 = arith.constant 3 : index
    %c0_100 = arith.constant 0 : index
    %c0_101 = arith.constant 0 : index
    %130 = vector.load %arg2[%c3_98, %c3_99, %c0_100, %c0_101] : memref<4x4x4x8xbf16, #tpu.memory_space<vmem>>, vector<1x1x4x8xbf16>
    %131 = vector.shape_cast %130 : vector<1x1x4x8xbf16> to vector<4x8xbf16>
    %cst_102 = arith.constant dense<0.000000e+00> : vector<256x8xf32>
    %132 = tpu.matmul %129, %131, %cst_102 {dimension_numbers = #tpu.dot_dimension_numbers<[1], [0], [0], [1], [0, 0, 1, 1], [], []>} : vector<256x4xbf16>, vector<4x8xbf16>, vector<256x8xf32> -> vector<256x8xf32>
    %133 = arith.addf %127, %132 : vector<256x8xf32>
    %cst_103 = arith.constant dense<0.000000e+00> : vector<8xf32>
    %134 = vector.multi_reduction <add>, %133, %cst_103 [0] : vector<256x8xf32> to vector<8xf32>
    %135 = vector.shape_cast %134 : vector<8xf32> to vector<1x8xf32>
    %136 = arith.addf %101, %135 : vector<1x8xf32>
    %137 = arith.mulf %133, %133 : vector<256x8xf32>
    %cst_104 = arith.constant dense<0.000000e+00> : vector<8xf32>
    %138 = vector.multi_reduction <add>, %137, %cst_104 [0] : vector<256x8xf32> to vector<8xf32>
    %139 = vector.shape_cast %138 : vector<8xf32> to vector<1x8xf32>
    %140 = arith.addf %105, %139 : vector<1x8xf32>
    %c0_105 = arith.constant 0 : index
    %c3_106 = arith.constant 3 : index
    %c0_107 = arith.constant 0 : index
    %c0_108 = arith.constant 0 : index
    %141 = vector.load %arg5[%c0_105, %c3_106, %c0_107, %c0_108] : memref<1x4x256x8xf32, #tpu.memory_space<vmem>>, vector<1x1x256x8xf32>
    %142 = vector.shape_cast %141 : vector<1x1x256x8xf32> to vector<256x8xf32>
    %143 = vector.shape_cast %133 : vector<256x8xf32> to vector<1x1x256x8xf32>
    tpu.vector_store %arg5[%c0_105, %c3_106, %c0_107, %c0_108], %143 {strides = array<i32>} : memref<1x4x256x8xf32, #tpu.memory_space<vmem>>, vector<1x1x256x8xf32>,
    %cst_109 = arith.constant 9.765625E-4 : f32
    %144 = vector.broadcast %cst_109 : f32 to vector<1x8xf32>
    %145 = arith.mulf %136, %144 : vector<1x8xf32>
    %cst_110 = arith.constant 9.765625E-4 : f32
    %146 = vector.broadcast %cst_110 : f32 to vector<1x8xf32>
    %147 = arith.mulf %140, %146 : vector<1x8xf32>
    %148 = arith.mulf %145, %145 : vector<1x8xf32>
    %149 = arith.subf %147, %148 : vector<1x8xf32>
    %cst_111 = arith.constant 0.000000e+00 : f32
    %150 = vector.broadcast %cst_111 : f32 to vector<1x8xf32>
    %151 = arith.maximumf %149, %150 : vector<1x8xf32>
    %c0_112 = arith.constant 0 : index
    %c0_113 = arith.constant 0 : index
    %152 = vector.load %arg3[%c0_112, %c0_113] : memref<1x8xf32, #tpu.memory_space<vmem>>, vector<1x8xf32>
    %cst_114 = arith.constant 9.99999974E-6 : f32
    %153 = vector.broadcast %cst_114 : f32 to vector<1x8xf32>
    %154 = arith.addf %151, %153 : vector<1x8xf32>
    %155 = math.rsqrt %154 : vector<1x8xf32>
    %156 = arith.mulf %152, %155 : vector<1x8xf32>
    %c0_115 = arith.constant 0 : index
    %c0_116 = arith.constant 0 : index
    %157 = vector.load %arg4[%c0_115, %c0_116] : memref<1x8xf32, #tpu.memory_space<vmem>>, vector<1x8xf32>
    %158 = arith.mulf %145, %156 : vector<1x8xf32>
    %159 = arith.subf %157, %158 : vector<1x8xf32>
    %c0_117 = arith.constant 0 : index
    %c0_118 = arith.constant 0 : index
    %c0_119 = arith.constant 0 : index
    %c0_120 = arith.constant 0 : index
    %160 = vector.load %arg5[%c0_117, %c0_118, %c0_119, %c0_120] : memref<1x4x256x8xf32, #tpu.memory_space<vmem>>, vector<1x1x256x8xf32>
    %161 = vector.shape_cast %160 : vector<1x1x256x8xf32> to vector<256x8xf32>
    %162 = vector.broadcast %156 : vector<1x8xf32> to vector<256x8xf32>
    %163 = arith.mulf %161, %162 : vector<256x8xf32>
    %164 = vector.broadcast %159 : vector<1x8xf32> to vector<256x8xf32>
    %165 = arith.addf %163, %164 : vector<256x8xf32>
    %cst_121 = arith.constant 0.000000e+00 : f32
    %166 = vector.broadcast %cst_121 : f32 to vector<256x8xf32>
    %167 = arith.maximumf %165, %166 : vector<256x8xf32>
    %c0_122 = arith.constant 0 : index
    %c0_123 = arith.constant 0 : index
    %c0_124 = arith.constant 0 : index
    %c0_125 = arith.constant 0 : index
    %168 = vector.load %arg5[%c0_122, %c0_123, %c0_124, %c0_125] : memref<1x4x256x8xf32, #tpu.memory_space<vmem>>, vector<1x1x256x8xf32>
    %169 = vector.shape_cast %168 : vector<1x1x256x8xf32> to vector<256x8xf32>
    %170 = vector.shape_cast %167 : vector<256x8xf32> to vector<1x1x256x8xf32>
    tpu.vector_store %arg5[%c0_122, %c0_123, %c0_124, %c0_125], %170 {strides = array<i32>} : memref<1x4x256x8xf32, #tpu.memory_space<vmem>>, vector<1x1x256x8xf32>,
    %c0_126 = arith.constant 0 : index
    %c1_127 = arith.constant 1 : index
    %c0_128 = arith.constant 0 : index
    %c0_129 = arith.constant 0 : index
    %171 = vector.load %arg5[%c0_126, %c1_127, %c0_128, %c0_129] : memref<1x4x256x8xf32, #tpu.memory_space<vmem>>, vector<1x1x256x8xf32>
    %172 = vector.shape_cast %171 : vector<1x1x256x8xf32> to vector<256x8xf32>
    %173 = vector.broadcast %156 : vector<1x8xf32> to vector<256x8xf32>
    %174 = arith.mulf %172, %173 : vector<256x8xf32>
    %175 = vector.broadcast %159 : vector<1x8xf32> to vector<256x8xf32>
    %176 = arith.addf %174, %175 : vector<256x8xf32>
    %cst_130 = arith.constant 0.000000e+00 : f32
    %177 = vector.broadcast %cst_130 : f32 to vector<256x8xf32>
    %178 = arith.maximumf %176, %177 : vector<256x8xf32>
    %c0_131 = arith.constant 0 : index
    %c1_132 = arith.constant 1 : index
    %c0_133 = arith.constant 0 : index
    %c0_134 = arith.constant 0 : index
    %179 = vector.load %arg5[%c0_131, %c1_132, %c0_133, %c0_134] : memref<1x4x256x8xf32, #tpu.memory_space<vmem>>, vector<1x1x256x8xf32>
    %180 = vector.shape_cast %179 : vector<1x1x256x8xf32> to vector<256x8xf32>
    %181 = vector.shape_cast %178 : vector<256x8xf32> to vector<1x1x256x8xf32>
    tpu.vector_store %arg5[%c0_131, %c1_132, %c0_133, %c0_134], %181 {strides = array<i32>} : memref<1x4x256x8xf32, #tpu.memory_space<vmem>>, vector<1x1x256x8xf32>,
    %c0_135 = arith.constant 0 : index
    %c2_136 = arith.constant 2 : index
    %c0_137 = arith.constant 0 : index
    %c0_138 = arith.constant 0 : index
    %182 = vector.load %arg5[%c0_135, %c2_136, %c0_137, %c0_138] : memref<1x4x256x8xf32, #tpu.memory_space<vmem>>, vector<1x1x256x8xf32>
    %183 = vector.shape_cast %182 : vector<1x1x256x8xf32> to vector<256x8xf32>
    %184 = vector.broadcast %156 : vector<1x8xf32> to vector<256x8xf32>
    %185 = arith.mulf %183, %184 : vector<256x8xf32>
    %186 = vector.broadcast %159 : vector<1x8xf32> to vector<256x8xf32>
    %187 = arith.addf %185, %186 : vector<256x8xf32>
    %cst_139 = arith.constant 0.000000e+00 : f32
    %188 = vector.broadcast %cst_139 : f32 to vector<256x8xf32>
    %189 = arith.maximumf %187, %188 : vector<256x8xf32>
    %c0_140 = arith.constant 0 : index
    %c2_141 = arith.constant 2 : index
    %c0_142 = arith.constant 0 : index
    %c0_143 = arith.constant 0 : index
    %190 = vector.load %arg5[%c0_140, %c2_141, %c0_142, %c0_143] : memref<1x4x256x8xf32, #tpu.memory_space<vmem>>, vector<1x1x256x8xf32>
    %191 = vector.shape_cast %190 : vector<1x1x256x8xf32> to vector<256x8xf32>
    %192 = vector.shape_cast %189 : vector<256x8xf32> to vector<1x1x256x8xf32>
    tpu.vector_store %arg5[%c0_140, %c2_141, %c0_142, %c0_143], %192 {strides = array<i32>} : memref<1x4x256x8xf32, #tpu.memory_space<vmem>>, vector<1x1x256x8xf32>,
    %c0_144 = arith.constant 0 : index
    %c3_145 = arith.constant 3 : index
    %c0_146 = arith.constant 0 : index
    %c0_147 = arith.constant 0 : index
    %193 = vector.load %arg5[%c0_144, %c3_145, %c0_146, %c0_147] : memref<1x4x256x8xf32, #tpu.memory_space<vmem>>, vector<1x1x256x8xf32>
    %194 = vector.shape_cast %193 : vector<1x1x256x8xf32> to vector<256x8xf32>
    %195 = vector.broadcast %156 : vector<1x8xf32> to vector<256x8xf32>
    %196 = arith.mulf %194, %195 : vector<256x8xf32>
    %197 = vector.broadcast %159 : vector<1x8xf32> to vector<256x8xf32>
    %198 = arith.addf %196, %197 : vector<256x8xf32>
    %cst_148 = arith.constant 0.000000e+00 : f32
    %199 = vector.broadcast %cst_148 : f32 to vector<256x8xf32>
    %200 = arith.maximumf %198, %199 : vector<256x8xf32>
    %c0_149 = arith.constant 0 : index
    %c3_150 = arith.constant 3 : index
    %c0_151 = arith.constant 0 : index
    %c0_152 = arith.constant 0 : index
    %201 = vector.load %arg5[%c0_149, %c3_150, %c0_151, %c0_152] : memref<1x4x256x8xf32, #tpu.memory_space<vmem>>, vector<1x1x256x8xf32>
    %202 = vector.shape_cast %201 : vector<1x1x256x8xf32> to vector<256x8xf32>
    %203 = vector.shape_cast %200 : vector<256x8xf32> to vector<1x1x256x8xf32>
    tpu.vector_store %arg5[%c0_149, %c3_150, %c0_151, %c0_152], %203 {strides = array<i32>} : memref<1x4x256x8xf32, #tpu.memory_space<vmem>>, vector<1x1x256x8xf32>,
    return
  }
  func.func @transform_0(%arg0: i32) -> (i32, i32, i32, i32) {
    %c0_i32 = arith.constant 0 : i32
    %c0_i32_0 = arith.constant 0 : i32
    %c0_i32_1 = arith.constant 0 : i32
    %c0_i32_2 = arith.constant 0 : i32
    return %arg0, %c0_i32, %c0_i32_0, %c0_i32_1 : i32, i32, i32, i32
  }
  func.func @transform_1(%arg0: i32) -> (i32, i32, i32, i32) {
    %c0_i32 = arith.constant 0 : i32
    %c0_i32_0 = arith.constant 0 : i32
    %c0_i32_1 = arith.constant 0 : i32
    %c0_i32_2 = arith.constant 0 : i32
    %c0_i32_3 = arith.constant 0 : i32
    return %c0_i32, %c0_i32_0, %c0_i32_1, %c0_i32_2 : i32, i32, i32, i32
  }
  func.func @transform_2(%arg0: i32) -> (i32, i32) {
    %c0_i32 = arith.constant 0 : i32
    %c0_i32_0 = arith.constant 0 : i32
    %c0_i32_1 = arith.constant 0 : i32
    return %c0_i32, %c0_i32_0 : i32, i32
  }
  func.func @transform_3(%arg0: i32) -> (i32, i32) {
    %c0_i32 = arith.constant 0 : i32
    %c0_i32_0 = arith.constant 0 : i32
    %c0_i32_1 = arith.constant 0 : i32
    return %c0_i32, %c0_i32_0 : i32, i32
  }
  func.func @transform_4(%arg0: i32) -> (i32, i32, i32, i32) {
    %c0_i32 = arith.constant 0 : i32
    %c0_i32_0 = arith.constant 0 : i32
    %c0_i32_1 = arith.constant 0 : i32
    %c0_i32_2 = arith.constant 0 : i32
    return %arg0, %c0_i32, %c0_i32_0, %c0_i32_1 : i32, i32, i32, i32
  }
}

</mosaic_0001>

<bundles_post_ra>
// kernel: tpu_custom_call.1
= control target key start
LH: loop header
LB: loop body
LE: loop exit
PB: predicated region body
PF: predicated region fallthrough
CT: control target
= control target key end

     0   :  { %s7187_s15 = smov 0   ;;  %s10669_s0 = inlined_call_operand.vmem [shape: bf16[2,18,18,4], index: 0, kind: input, shape index: {}]   ;;  %s10670_s1 = inlined_call_operand.vmem [shape: bf16[4,4,4,8], index: 1, kind: input, shape index: {}]   ;;  %s10671_s2 = inlined_call_operand.vmem [shape: f32[1,8], index: 2, kind: input, shape index: {}]   ;;  %s10672_s3 = inlined_call_operand.vmem [shape: f32[1,8], index: 3, kind: input, shape index: {}]   ;;  %s10673_s4 = inlined_call_operand.vmem [shape: f32[2,4,256,8], index: 4, kind: output, shape index: {}]  }
   0x1 LB: > { %s5647_s16 = sadd.s32 4294967295, %s7160_s15   ;;  %p5651_p0 = scmp.ge.s32.totalorder %s7160_s15, 1  ;;  %s7160_s15 = sphi %s7187_s15, %s14_s15  }
   0x2   : > { %p162_p1 = scmp.lt.s32.totalorder %s7160_s15, 3 }
   0x4   : > { %p163_p2 = pnand %p5651_p0, %p162_p1 }
   0x6   : > { %166 = sbr.rel (%p163_p2) target bundleno = 907 (0x38b), region = 36 }
   0xb   : > { %v5655_v0 = vld [vmem:[%s10670_s1 + $0x2] sm:$0x3]  ;;  %vm772_vm0 = vcmask 1041408   ;;  %p188_p3 = scmp.lt.s32.totalorder %s5647_s16, 1  ;;  %v640_v2 = vld [vmem:[%s10670_s1] sm:$0x3] }
   0xc   : > { %7105 = vmatprep.subr.msk.bf16.mxu0 %vm772_vm0, %v5655_v0  ;;  %v774_v1 = vsel %vm772_vm0, %v5655_v0, 0  ;;  %7106 = vmatprep.subr.msk.bf16.mxu1 %vm772_vm0, %v640_v2  ;;  %v1034_v3 = vsel %vm772_vm0, %v640_v2, 0  ;;  %v5720_v4 = vld [vmem:[%s10670_s1 + $0x4] sm:$0x3]  ;;  %v5738_v5 = vld [vmem:[%s10670_s1 + $0x6] sm:$0x3] }
   0xd   : > { %6562 = vmatpush3.bf16.msra.mxu0 %v774_v1  ;;  %s11139_s16 = smov (!%p188_p3, %s5647_s16), 1  ;;  %6596 = vmatpush3.bf16.msra.mxu1 %v1034_v3  ;;  %vm253_vm1 = vsmask.f32 3328  ;;  %vm254_vm2 = vsmask.f32 7440  ;;  %vm723_vm3 = vcmask 31744  }
   0xe   : > { %7107 = vmatprep.subr.msk.bf16.mxu0 %vm772_vm0, %v5720_v4  ;;  %s7121_s25 = smul.u32 216, %s11139_s16  ;;  %7108 = vmatprep.subr.msk.bf16.mxu1 %vm772_vm0, %v5738_v5  ;;  %v1230_v6 = vsel %vm772_vm0, %v5720_v4, 0  ;;  %v7248_v19 = vsel %vm772_vm0, %v5738_v5, 0  ;;  %v7267_v33 = vld [vmem:[%s10670_s1 + $0xa] sm:$0x3]  ;;  %vm7271_vm4 = vmor %vm253_vm1, %vm254_vm2  ;;  %vm1852_vm5 = vcmask 1042432  }
   0xf   : > { %vm1853_vm6 = vcmask 1046532   ;;  %s6288_s23 = sshll.u32 %s11139_s16, 10  ;;  %vm1631_vm8 = vcmask 64512  }
  0x10   : > { %s7219_s28 = scalar_lea.vmem %s10669_s0, %s7121_s25  ;;  %vm7719_vm7 = vmor %vm1852_vm5, %vm1853_vm6  ;;  %s8307_s27 = scalar_lea.vmem %s10673_s4, %s6288_s23 }
  0x11   : > { %v7223_v7 = vld [vmem:[%s7219_s28 + $0xc] sm:$0xf]  ;;  %v7226_v8 = vld [vmem:[%s7219_s28 + $0x10] sm:$0xf]  ;;  %v7229_v9 = vld [vmem:[%s7219_s28 + $0x18] sm:$0xf] }
  0x12   : > { %v257_v10 = vshrl.u32 %v7223_v7, 16  ;;  %v260_v11 = vshll.u32 %v7223_v7, 16  ;;  %v266_v12 = vshll.u32 %v7226_v8, 16  ;;  %v270_v13 = vshrl.u32 %v7226_v8, 16  ;;  %v7236_v14 = vld [vmem:[%s7219_s28 + $0x1c] sm:$0xf] }
  0x13   : > { %v7240_v15 = vcombine.low %v7223_v7, %v7226_v8  ;;  %v7244_v17 = vld [vmem:[%s7219_s28 + $0x20] sm:$0x1]  ;;  %v281_v18 = vshrl.u32 %v7229_v9, 16  ;;  %v284_v25 = vshll.u32 %v7229_v9, 16  ;;  %v290_v26 = vshll.u32 %v7236_v14, 16 }
  0x14   : > { %v259_v20 = vrot.slane %v257_v10, 4  ;;  %v262_v21 = vrot.slane %v260_v11, 5  ;;  %v7250_v22 = vrot.slane %v266_v12, 5  ;;  %v272_v23 = vrot.slane %v270_v13, 4  ;;  %v208_v32 = vld [vmem:[%s7219_s28 + $0x24] sm:$0xf] }
  0x15   : > { %10795 = vst [vmem:[#allocation2_spill] sm:$0xff] %v7240_v15  ;;  %6563 = vmatprep.mubr.msk.bf16.mxu0 %vm723_vm3, %v7240_v15  ;;  %v283_v24 = vrot.slane %v281_v18, 4  ;;  %v294_v27 = vshrl.u32 %v7236_v14, 16  ;;  %v300_v30 = vshll.u32 %v7244_v17, 16  ;;  %v7261_v31 = vcombine.low %v7229_v9, %v7236_v14  ;;  %v7277_v39 = vld [vmem:[%s7219_s28 + $0x28] sm:$0xf] }
  0x16   : > { %v263_v28 = vor.u32 %v262_v21, %v259_v20  ;;  %v273_v29 = vor.u32 %v272_v23, %v7250_v22  ;;  %v286_v36 = vrot.slane %v284_v25, 5  ;;  %v292_v37 = vrot.slane %v290_v26, 5  ;;  %10799 = vst [vmem:[#allocation4_spill] sm:$0xff] %v7277_v39  ;;  %v7287_v46 = vld [vmem:[%s7219_s28 + $0x2c] sm:$0x1] }
  0x17   : > { %10796 = vst [vmem:[#allocation3_spill] sm:$0xff] %v7261_v31  ;;  %v296_v38 = vrot.slane %v294_v27, 4  ;;  %v302_v42 = vrot.slane %v300_v30, 5  ;;  %6564 = vmatmul.mubr.msk.bf16.vlgmr.msra.gmra.mxu0 %vm723_vm3, %v7261_v31  ;;  %10800 = vst [vmem:[#allocation5_spill] sm:$0xff] %v7287_v46  ;;  %v305_v47 = vshrl.u32 %v208_v32, 16  ;;  %v308_v48 = vshll.u32 %v208_v32, 16 }
  0x18   : > { %v7279_v40 = vrot.slane %v263_v28, 4  ;;  %v7281_v41 = vrot.slane %v273_v29, 4  ;;  %v287_v44 = vor.u32 %v286_v36, %v283_v24  ;;  %6630 = vmatpush3.bf16.msra.mxu0 %v1230_v6  ;;  %v314_v51 = vshll.u32 %v7277_v39, 16  ;;  %v7297_v53 = vld [vmem:[%s7219_s28 + $0x30] sm:$0xf] }
  0x19   : > { %v297_v45 = vor.u32 %v296_v38, %v292_v37  ;;  %v318_v52 = vshrl.u32 %v7277_v39, 16  ;;  %10801 = vst [vmem:[#allocation6_spill] sm:$0xff] %v7297_v53  ;;  %7109 = vmatprep.subr.msk.bf16.mxu0 %vm772_vm0, %v7267_v33  ;;  %v307_v56 = vrot.slane %v305_v47, 4  ;;  %v310_v57 = vrot.slane %v308_v48, 5  ;;  %v7306_v62 = vld [vmem:[%s7219_s28 + $0x34] sm:$0xf] }
  0x1a   : > { %v269_v49 = vsel %vm7271_vm4, %v7279_v40, %v7250_v22  ;;  %v288_v54 = vrot.slane %v287_v44, 4  ;;  %v316_v58 = vrot.slane %v314_v51, 5  ;;  %v324_v60 = vshll.u32 %v7287_v46, 16  ;;  %10803 = vst [vmem:[#allocation8_spill] sm:$0xff] %v7306_v62  ;;  %v7313_v2 = vld [vmem:[%s7219_s28 + $0x38] sm:$0x1] }
  0x1b   : > { %v298_v55 = vrot.slane %v297_v45, 4  ;;  %v320_v59 = vrot.slane %v318_v52, 4  ;;  %v7303_v61 = vcombine.low %v208_v32, %v7277_v39  ;;  %v311_v1 = vor.u32 %v310_v57, %v307_v56  ;;  %10804 = vst [vmem:[#allocation9_spill] sm:$0xff] %v7313_v2  ;;  %v7322_v11 = vld [vmem:[%s7219_s28 + $0x14] sm:$0x1] }
  0x1c   : > { %v293_v63 = vsel %vm7271_vm4, %v288_v54, %v292_v37  ;;  %v329_v3 = vshrl.u32 %v7297_v53, 16  ;;  %v326_v6 = vrot.slane %v324_v60, 5  ;;  %v332_v10 = vshll.u32 %v7297_v53, 16  ;;  %v7327_v21 = vld [vmem:[%s7219_s28 + $0x3c] sm:$0xf] }
  0x1d   : > { %10802 = vst [vmem:[#allocation7_spill] sm:$0xff] %v7303_v61  ;;  %v303_v0 = vsel %vm7271_vm4, %v298_v55, %v302_v42  ;;  %v321_v5 = vor.u32 %v320_v59, %v316_v58  ;;  %6567 = vmatprep.mubr.msk.bf16.mxu0 %vm723_vm3, %v7303_v61  ;;  %v312_v12 = vrot.slane %v311_v1, 4  ;;  %v338_v18 = vshll.u32 %v7306_v62, 16  ;;  %10806 = vst [vmem:[#allocation11_spill] sm:$0xff] %v7327_v21  ;;  %v7338_v30 = vld [vmem:[%s7219_s28 + $0x40] sm:$0xf] }
  0x1e   : > { %v7316_v4 = vcombine.low %v293_v63, %v303_v0  ;;  %v331_v13 = vrot.slane %v329_v3, 4  ;;  %v342_v20 = vshrl.u32 %v7306_v62, 16  ;;  %v334_v23 = vrot.slane %v332_v10, 5  ;;  %10808 = vst [vmem:[#allocation13_spill] sm:$0xff] %v7338_v30  ;;  %v7345_v38 = vld [vmem:[%s7219_s28 + $0x44] sm:$0x1] }
  0x1f   : > { %v322_v22 = vrot.slane %v321_v5, 4  ;;  %v348_v24 = vshll.u32 %v7313_v2, 16  ;;  %v7332_v25 = vcombine.low %v7297_v53, %v7306_v62  ;;  %v317_v26 = vsel %vm7271_vm4, %v312_v12, %v316_v58  ;;  %10809 = vst [vmem:[#allocation14_spill] sm:$0xff] %v7345_v38  ;;  %v7358_v59 = vld [vmem:[%s7219_s28 + $0x48] sm:$0xf] }
  0x20   : > { %10805 = vst [vmem:[#allocation10_spill] sm:$0xff] %v7316_v4  ;;  %v340_v27 = vrot.slane %v338_v18, 5  ;;  %v344_v28 = vrot.slane %v342_v20, 4  ;;  %v276_v29 = vshll.u32 %v7322_v11, 16  ;;  %v335_v36 = vor.u32 %v334_v23, %v331_v13  ;;  %v7365_v3 = vld [vmem:[%s7219_s28 + $0x4c] sm:$0xf] }
  0x21   : > { %10807 = vst [vmem:[#allocation12_spill] sm:$0xff] %v7332_v25  ;;  %v327_v32 = vsel %vm7271_vm4, %v322_v22, %v326_v6  ;;  %v350_v37 = vrot.slane %v348_v24, 5  ;;  %6568 = vmatmul.mubr.msk.bf16.gmra.mxu0 %vm723_vm3, %v7332_v25  ;;  %v353_v40 = vshrl.u32 %v7327_v21, 16  ;;  %v356_v47 = vshll.u32 %v7327_v21, 16  ;;  %v7368_v5 = vld [vmem:[%s7219_s28 + $0x50] sm:$0x1] }
  0x22   : > { %v7348_v42 = vcombine.low %v317_v26, %v327_v32  ;;  %v345_v44 = vor.u32 %v344_v28, %v340_v27  ;;  %v278_v45 = vrot.slane %v276_v29, 5  ;;  %v336_v48 = vrot.slane %v335_v36, 4  ;;  %v7385_v22 = vld [vmem:[%s10670_s1 + $0x8] sm:$0x3]  ;;  %v7395_v28 = vld [vmem:[%s7219_s28 + $0x54] sm:$0xf] }
  0x23   : > { %v355_v51 = vrot.slane %v353_v40, 4  ;;  %v362_v52 = vshll.u32 %v7338_v30, 16  ;;  %v366_v54 = vshrl.u32 %v7338_v30, 16  ;;  %v358_v57 = vrot.slane %v356_v47, 5  ;;  %v7405_v40 = vld [vmem:[%s7219_s28 + $0x58] sm:$0xf] }
  0x24   : > { %10810 = vst [vmem:[#allocation15_spill] sm:$0xff] %v7348_v42  ;;  %v346_v55 = vrot.slane %v345_v44, 4  ;;  %v279_v56 = vsel %vm7271_vm4, %v7281_v41, %v278_v45  ;;  %v372_v58 = vshll.u32 %v7345_v38, 16  ;;  %v341_v60 = vsel %vm7271_vm4, %v336_v48, %v340_v27  ;;  %v7497_v50 = vld [vmem:[%s7219_s28 + $0x80] sm:$0x1] }
  0x25   : > { %v7362_v63 = vcombine.low %v269_v49, %v279_v56  ;;  %v364_v0 = vrot.slane %v362_v52, 5  ;;  %v368_v1 = vrot.slane %v366_v54, 4  ;;  %v359_v41 = vor.u32 %v358_v57, %v355_v51 }
  0x26   : > { %v351_v6 = vsel %vm7271_vm4, %v346_v55, %v350_v37  ;;  %v374_v10 = vrot.slane %v372_v58, 5  ;;  %v7374_v12 = vcombine.low %v7327_v21, %v7338_v30  ;;  %v377_v18 = vshrl.u32 %v7358_v59, 16 }
  0x27   : > { %10811 = vst [vmem:[#allocation16_spill] sm:$0xff] %v7362_v63  ;;  %v7376_v13 = vcombine.low %v341_v60, %v351_v6  ;;  %6597 = vmatprep.mubr.msk.bf16.mxu1 %vm723_vm3, %v7362_v63  ;;  %v369_v49 = vor.u32 %v368_v1, %v364_v0  ;;  %v380_v20 = vshll.u32 %v7358_v59, 16  ;;  %v360_v23 = vrot.slane %v359_v41, 4 }
  0x28   : > { %10812 = vst [vmem:[#allocation17_spill] sm:$0xff] %v7374_v12  ;;  %6598 = vmatmul.mubr.msk.bf16.vlgmr.msra.gmra.mxu1 %vm723_vm3, %v7316_v4  ;;  %6571 = vmatprep.mubr.msk.bf16.mxu0 %vm723_vm3, %v7374_v12  ;;  %v386_v24 = vshll.u32 %v7365_v3, 16  ;;  %v390_v26 = vshrl.u32 %v7365_v3, 16  ;;  %v396_v27 = vshll.u32 %v7368_v5, 16  ;;  %v379_v32 = vrot.slane %v377_v18, 4 }
  0x29   : > { %10813 = vst [vmem:[#allocation18_spill] sm:$0xff] %v7376_v13  ;;  %6664 = vmatpush3.bf16.msra.mxu1 %v7248_v19  ;;  %v370_v29 = vrot.slane %v369_v49, 4  ;;  %v382_v36 = vrot.slane %v380_v20, 5  ;;  %v7400_v37 = vcombine.low %v7358_v59, %v7365_v3  ;;  %6601 = vmatprep.mubr.msk.bf16.mxu1 %vm723_vm3, %v7348_v42  ;;  %v365_v44 = vsel %vm7271_vm4, %v360_v23, %v364_v0  ;;  %v7410_v19 = vld [vmem:[%s7219_s28 + $0x5c] sm:$0x1] }
  0x2a   : > { %v388_v45 = vrot.slane %v386_v24, 5  ;;  %v392_v47 = vrot.slane %v390_v26, 4  ;;  %v398_v48 = vrot.slane %v396_v27, 5  ;;  %7110 = vmatprep.subr.msk.bf16.mxu1 %vm772_vm0, %v7385_v22  ;;  %v401_v54 = vshrl.u32 %v7395_v28, 16  ;;  %v7425_v0 = vld [vmem:[%s7219_s28 + $0x60] sm:$0xf] }
  0x2b   : > { %10814 = vst [vmem:[#allocation19_spill] sm:$0xff] %v7400_v37  ;;  %v375_v51 = vsel %vm7271_vm4, %v370_v29, %v374_v10  ;;  %v383_v52 = vor.u32 %v382_v36, %v379_v32  ;;  %6572 = vmatmul.mubr.msk.bf16.gmra.mxu0 %vm723_vm3, %v7400_v37  ;;  %v404_v55 = vshll.u32 %v7395_v28, 16  ;;  %v410_v58 = vshll.u32 %v7405_v40, 16  ;;  %v7429_v49 = vld [vmem:[%s7219_s28 + $0x64] sm:$0xf] }
  0x2c   : > { %v7420_v56 = vcombine.low %v365_v44, %v375_v51  ;;  %v393_v57 = vor.u32 %v392_v47, %v388_v45  ;;  %v414_v60 = vshrl.u32 %v7405_v40, 16  ;;  %v403_v6 = vrot.slane %v401_v54, 4  ;;  %v7438_v32 = vld [vmem:[%s7219_s28 + $0x68] sm:$0x1] }
  0x2d   : > { %v384_v1 = vrot.slane %v383_v52, 4  ;;  %v406_v41 = vrot.slane %v404_v55, 5  ;;  %v420_v10 = vshll.u32 %v7410_v19, 16  ;;  %v412_v20 = vrot.slane %v410_v58, 5  ;;  %v7450_v52 = vld [vmem:[%s7219_s28 + $0x6c] sm:$0xf] }
  0x2e   : > { %10815 = vst [vmem:[#allocation20_spill] sm:$0xff] %v7420_v56  ;;  %v394_v18 = vrot.slane %v393_v57, 4  ;;  %v416_v23 = vrot.slane %v414_v60, 4  ;;  %v7433_v24 = vcombine.low %v7395_v28, %v7405_v40  ;;  %v425_v36 = vshrl.u32 %v7425_v0, 16 }
  0x2f   : > { %v389_v26 = vsel %vm7271_vm4, %v384_v1, %v388_v45  ;;  %v407_v27 = vor.u32 %v406_v41, %v403_v6  ;;  %v422_v29 = vrot.slane %v420_v10, 5  ;;  %v428_v51 = vshll.u32 %v7425_v0, 16  ;;  %v7459_v41 = vld [vmem:[%s7219_s28 + $0x70] sm:$0xf] }
  0x30   : > { %10816 = vst [vmem:[#allocation21_spill] sm:$0xff] %v7433_v24  ;;  %v399_v44 = vsel %vm7271_vm4, %v394_v18, %v398_v48  ;;  %6602 = vmatmul.mubr.msk.bf16.gmra.mxu1 %vm723_vm3, %v7376_v13  ;;  %v417_v47 = vor.u32 %v416_v23, %v412_v20  ;;  %6575 = vmatprep.mubr.msk.bf16.mxu0 %vm723_vm3, %v7433_v24  ;;  %v434_v45 = vshll.u32 %v7429_v49, 16  ;;  %v427_v57 = vrot.slane %v425_v36, 4 }
  0x31   : > { %v7452_v54 = vcombine.low %v389_v26, %v399_v44  ;;  %v408_v55 = vrot.slane %v407_v27, 4  ;;  %v438_v48 = vshrl.u32 %v7429_v49, 16  ;;  %6605 = vmatprep.mubr.msk.bf16.mxu1 %vm723_vm3, %v7420_v56  ;;  %v430_v60 = vrot.slane %v428_v51, 5  ;;  %v7468_v26 = vld [vmem:[%s7219_s28 + $0x74] sm:$0x1] }
  0x32   : > { %v418_v58 = vrot.slane %v417_v47, 4  ;;  %v436_v1 = vrot.slane %v434_v45, 5  ;;  %v444_v6 = vshll.u32 %v7438_v32, 16  ;;  %v7465_v23 = vcombine.low %v7425_v0, %v7429_v49  ;;  %v7475_v45 = vld [vmem:[%s7219_s28 + $0x78] sm:$0xf] }
  0x33   : > { %10817 = vst [vmem:[#allocation22_spill] sm:$0xff] %v7452_v54  ;;  %v413_v10 = vsel %vm7271_vm4, %v408_v55, %v412_v20  ;;  %v440_v18 = vrot.slane %v438_v48, 4  ;;  %v449_v27 = vshrl.u32 %v7450_v52, 16  ;;  %v431_v44 = vor.u32 %v430_v60, %v427_v57 }
  0x34   : > { %10818 = vst [vmem:[#allocation23_spill] sm:$0xff] %v7465_v23  ;;  %v423_v36 = vsel %vm7271_vm4, %v418_v58, %v422_v29  ;;  %v446_v47 = vrot.slane %v444_v6, 5  ;;  %v452_v51 = vshll.u32 %v7450_v52, 16  ;;  %6576 = vmatmul.mubr.msk.bf16.gmra.mxu0 %vm723_vm3, %v7465_v23  ;;  %v458_v43 = vshll.u32 %v7459_v41, 16  ;;  %v7485_v58 = vld [vmem:[%s7219_s28 + $0x7c] sm:$0xf] }
  0x35   : > { %v7477_v20 = vcombine.low %v413_v10, %v423_v36  ;;  %v441_v55 = vor.u32 %v440_v18, %v436_v1  ;;  %v451_v48 = vrot.slane %v449_v27, 4  ;;  %v432_v16 = vrot.slane %v431_v44, 4 }
  0x36   : > { %v454_v35 = vrot.slane %v452_v51, 5  ;;  %v462_v29 = vshrl.u32 %v7459_v41, 16  ;;  %v468_v57 = vshll.u32 %v7468_v26, 16  ;;  %v460_v6 = vrot.slane %v458_v43, 5 }
  0x37   : > { %10819 = vst [vmem:[#allocation24_spill] sm:$0xff] %v7477_v20  ;;  %v442_v60 = vrot.slane %v441_v55, 4  ;;  %v7489_v10 = vcombine.low %v7450_v52, %v7459_v41  ;;  %v473_v18 = vshrl.u32 %v7475_v45, 16  ;;  %v437_v27 = vsel %vm7271_vm4, %v432_v16, %v436_v1  ;;  %v7508_v1 = vld [vmem:[%s7219_s28 + $0x84] sm:$0xf] }
  0x38   : > { %6606 = vmatmul.mubr.msk.bf16.gmra.mxu1 %vm723_vm3, %v7452_v54  ;;  %v455_v36 = vor.u32 %v454_v35, %v451_v48  ;;  %v464_v44 = vrot.slane %v462_v29, 4  ;;  %v470_v51 = vrot.slane %v468_v57, 5  ;;  %v476_v38 = vshll.u32 %v7475_v45, 16  ;;  %v7514_v57 = vld [vmem:[%s7219_s28 + $0x88] sm:$0xf] }
  0x39   : > { %10820 = vst [vmem:[#allocation25_spill] sm:$0xff] %v7489_v10  ;;  %v447_v43 = vsel %vm7271_vm4, %v442_v60, %v446_v47  ;;  %6579 = vmatprep.mubr.msk.bf16.mxu0 %vm723_vm3, %v7489_v10  ;;  %v475_v55 = vrot.slane %v473_v18, 4  ;;  %v482_v16 = vshll.u32 %v7485_v58, 16  ;;  %6609 = vmatprep.mubr.msk.bf16.mxu1 %vm723_vm3, %v7477_v20  ;;  %v486_v47 = vshrl.u32 %v7485_v58, 16  ;;  %v7587_v20 = vld [vmem:[%s7219_s28 + $0xa8] sm:$0xf] }
  0x3a   : > { %v7510_v35 = vcombine.low %v437_v27, %v447_v43  ;;  %v456_v48 = vrot.slane %v455_v36, 4  ;;  %v465_v29 = vor.u32 %v464_v44, %v460_v6  ;;  %v478_v60 = vrot.slane %v476_v38, 5  ;;  %v7527_v38 = vld [vmem:[%s7219_s28 + $0x8c] sm:$0x1]  ;;  %10830 = vst [vmem:[#allocation35_spill] sm:$0xff] %v7587_v20 }
  0x3b   : > { %v484_v18 = vrot.slane %v482_v16, 5  ;;  %v492_v21 = vshll.u32 %v7497_v50, 16  ;;  %v7519_v2 = vcombine.low %v7475_v45, %v7485_v58  ;;  %v488_v53 = vrot.slane %v486_v47, 4  ;;  %v7535_v47 = vld [vmem:[%s7219_s28 + $0x90] sm:$0xf] }
  0x3c   : > { %10821 = vst [vmem:[#allocation26_spill] sm:$0xff] %v7510_v35  ;;  %v461_v27 = vsel %vm7271_vm4, %v456_v48, %v460_v6  ;;  %v466_v43 = vrot.slane %v465_v29, 4  ;;  %v497_v36 = vshrl.u32 %v7508_v1, 16  ;;  %v479_v44 = vor.u32 %v478_v60, %v475_v55 }
  0x3d   : > { %10822 = vst [vmem:[#allocation27_spill] sm:$0xff] %v7519_v2  ;;  %v494_v30 = vrot.slane %v492_v21, 5  ;;  %6580 = vmatmul.mubr.msk.bf16.gmra.mxu0 %vm723_vm3, %v7519_v2  ;;  %v500_v16 = vshll.u32 %v7508_v1, 16  ;;  %v506_v62 = vshll.u32 %v7514_v57, 16  ;;  %v489_v6 = vor.u32 %v488_v53, %v484_v18  ;;  %v7540_v2 = vld [vmem:[%s7219_s28 + $0x94] sm:$0xf] }
  0x3e   : > { %v471_v46 = vsel %vm7271_vm4, %v466_v43, %v470_v51  ;;  %v499_v48 = vrot.slane %v497_v36, 4  ;;  %v510_v29 = vshrl.u32 %v7514_v57, 16  ;;  %v480_v55 = vrot.slane %v479_v44, 4  ;;  %v7552_v36 = vld [vmem:[%s7219_s28 + $0x98] sm:$0x1] }
  0x3f   : > { %v7537_v21 = vcombine.low %v461_v27, %v471_v46  ;;  %v502_v60 = vrot.slane %v500_v16, 5  ;;  %v508_v39 = vrot.slane %v506_v62, 5  ;;  %v490_v10 = vrot.slane %v489_v6, 4 }
  0x40   : > { %6610 = vmatmul.mubr.msk.bf16.gmra.mxu1 %vm723_vm3, %v7510_v35  ;;  %v512_v51 = vrot.slane %v510_v29, 4  ;;  %v516_v53 = vshll.u32 %v7527_v38, 16  ;;  %v7547_v43 = vcombine.low %v7508_v1, %v7514_v57  ;;  %v485_v46 = vsel %vm7271_vm4, %v480_v55, %v484_v18 }
  0x41   : > { %10823 = vst [vmem:[#allocation28_spill] sm:$0xff] %v7537_v21  ;;  %v503_v27 = vor.u32 %v502_v60, %v499_v48  ;;  %v521_v62 = vshrl.u32 %v7535_v47, 16  ;;  %v524_v44 = vshll.u32 %v7535_v47, 16  ;;  %6613 = vmatprep.mubr.msk.bf16.mxu1 %vm723_vm3, %v7537_v21  ;;  %v495_v16 = vsel %vm7271_vm4, %v490_v10, %v494_v30  ;;  %v7564_v48 = vld [vmem:[%s7219_s28 + $0x9c] sm:$0xf] }
  0x42   : > { %10824 = vst [vmem:[#allocation29_spill] sm:$0xff] %v7547_v43  ;;  %v513_v6 = vor.u32 %v512_v51, %v508_v39  ;;  %v518_v29 = vrot.slane %v516_v53, 5  ;;  %6583 = vmatprep.mubr.msk.bf16.mxu0 %vm723_vm3, %v7547_v43  ;;  %v530_v18 = vshll.u32 %v7540_v2, 16  ;;  %10825 = vst [vmem:[#allocation30_spill] sm:$0xff] %v7564_v48  ;;  %v7566_v55 = vcombine.low %v485_v46, %v495_v16  ;;  %v7571_v51 = vld [vmem:[%s7219_s28 + $0xa0] sm:$0xf] }
  0x43   : > { %v504_v60 = vrot.slane %v503_v27, 4  ;;  %v523_v23 = vrot.slane %v521_v62, 4  ;;  %v526_v24 = vrot.slane %v524_v44, 5  ;;  %v534_v30 = vshrl.u32 %v7540_v2, 16  ;;  %10827 = vst [vmem:[#allocation32_spill] sm:$0xff] %v7571_v51 }
  0x44   : > { %10826 = vst [vmem:[#allocation31_spill] sm:$0xff] %v7566_v55  ;;  %v514_v21 = vrot.slane %v513_v6, 4  ;;  %v532_v35 = vrot.slane %v530_v18, 5  ;;  %v540_v10 = vshll.u32 %v7552_v36, 16  ;;  %v7577_v46 = vcombine.low %v7535_v47, %v7540_v2  ;;  %v7580_v27 = vld [vmem:[%s7219_s28 + $0xa4] sm:$0x1] }
  0x45   : > { %v509_v53 = vsel %vm7271_vm4, %v504_v60, %v508_v39  ;;  %v527_v43 = vor.u32 %v526_v24, %v523_v23  ;;  %10829 = vst [vmem:[#allocation34_spill] sm:$0xff] %v7580_v27  ;;  %v545_v62 = vshrl.u32 %v7564_v48, 16  ;;  %v536_v16 = vrot.slane %v534_v30, 4 }
  0x46   : > { %10828 = vst [vmem:[#allocation33_spill] sm:$0xff] %v7577_v46  ;;  %v519_v44 = vsel %vm7271_vm4, %v514_v21, %v518_v29  ;;  %v542_v6 = vrot.slane %v540_v10, 5  ;;  %v548_v18 = vshll.u32 %v7564_v48, 16  ;;  %6584 = vmatmul.mubr.msk.bf16.gmra.mxu0 %vm723_vm3, %v7577_v46  ;;  %v554_v60 = vshll.u32 %v7571_v51, 16  ;;  %v7599_v10 = vld [vmem:[%s7219_s28 + $0xac] sm:$0xf] }
  0x47   : > { %v7589_v39 = vcombine.low %v509_v53, %v519_v44  ;;  %v528_v24 = vrot.slane %v527_v43, 4  ;;  %v547_v23 = vrot.slane %v545_v62, 4  ;;  %v537_v37 = vor.u32 %v536_v16, %v532_v35  ;;  %10832 = vst [vmem:[#allocation37_spill] sm:$0xff] %v7599_v10  ;;  %v7608_v44 = vld [vmem:[%s7219_s28 + $0xb0] sm:$0x1] }
  0x48   : > { %6614 = vmatmul.mubr.msk.bf16.gmra.mxu1 %vm723_vm3, %v7566_v55  ;;  %v550_v21 = vrot.slane %v548_v18, 5  ;;  %v558_v29 = vshrl.u32 %v7571_v51, 16  ;;  %v564_v30 = vshll.u32 %v7580_v27, 16  ;;  %v556_v53 = vrot.slane %v554_v60, 5  ;;  %10834 = vst [vmem:[#allocation39_spill] sm:$0xff] %v7608_v44 }
  0x49   : > { %10831 = vst [vmem:[#allocation36_spill] sm:$0xff] %v7589_v39  ;;  %v533_v43 = vsel %vm7271_vm4, %v528_v24, %v532_v35  ;;  %v7605_v62 = vcombine.low %v7564_v48, %v7571_v51  ;;  %v569_v16 = vshrl.u32 %v7587_v20, 16  ;;  %6617 = vmatprep.mubr.msk.bf16.mxu1 %vm723_vm3, %v7589_v39  ;;  %v538_v18 = vrot.slane %v537_v37, 4  ;;  %v7630_v51 = vld [vmem:[%s7219_s28 + $0xbc] sm:$0x1] }
  0x4a   : > { %v551_v46 = vor.u32 %v550_v21, %v547_v23  ;;  %v560_v55 = vrot.slane %v558_v29, 4  ;;  %v566_v12 = vrot.slane %v564_v30, 5  ;;  %v572_v24 = vshll.u32 %v7587_v20, 16  ;;  %v7622_v23 = vld [vmem:[%s7219_s28 + $0xb4] sm:$0xf]  ;;  %10838 = vst [vmem:[#allocation43_spill] sm:$0xff] %v7630_v51 }
  0x4b   : > { %10833 = vst [vmem:[#allocation38_spill] sm:$0xff] %v7605_v62  ;;  %6587 = vmatprep.mubr.msk.bf16.mxu0 %vm723_vm3, %v7605_v62  ;;  %v571_v35 = vrot.slane %v569_v16, 4  ;;  %v578_v60 = vshll.u32 %v7599_v10, 16  ;;  %v582_v54 = vshrl.u32 %v7599_v10, 16  ;;  %v543_v56 = vsel %vm7271_vm4, %v538_v18, %v542_v6  ;;  %10835 = vst [vmem:[#allocation40_spill] sm:$0xff] %v7622_v23 }
  0x4c   : > { %v552_v27 = vrot.slane %v551_v46, 4  ;;  %v561_v39 = vor.u32 %v560_v55, %v556_v53  ;;  %v588_v37 = vshll.u32 %v7608_v44, 16  ;;  %v7625_v21 = vld [vmem:[%s7219_s28 + $0xb8] sm:$0xf]  ;;  %v7627_v29 = vcombine.low %v533_v43, %v543_v56 }
  0x4d   : > { %10836 = vst [vmem:[#allocation41_spill] sm:$0xff] %v7625_v21  ;;  %v574_v30 = vrot.slane %v572_v24, 5  ;;  %v580_v16 = vrot.slane %v578_v60, 5  ;;  %v584_v62 = vrot.slane %v582_v54, 4  ;;  %v7636_v55 = vcombine.low %v7587_v20, %v7599_v10 }
  0x4e   : > { %10837 = vst [vmem:[#allocation42_spill] sm:$0xff] %v7627_v29  ;;  %v557_v48 = vsel %vm7271_vm4, %v552_v27, %v556_v53  ;;  %v562_v6 = vrot.slane %v561_v39, 4  ;;  %v590_v46 = vrot.slane %v588_v37, 5  ;;  %v593_v56 = vshrl.u32 %v7622_v23, 16 }
  0x4f   : > { %10839 = vst [vmem:[#allocation44_spill] sm:$0xff] %v7636_v55  ;;  %v575_v18 = vor.u32 %v574_v30, %v571_v35  ;;  %v585_v44 = vor.u32 %v584_v62, %v580_v16  ;;  %v596_v43 = vshll.u32 %v7622_v23, 16  ;;  %6588 = vmatmul.mubr.msk.bf16.gmra.mxu0 %vm723_vm3, %v7636_v55  ;;  %v602_v27 = vshll.u32 %v7625_v21, 16  ;;  %v7650_v62 = vld [vmem:[%s7219_s28 + $0xc0] sm:$0xf] }
  0x50   : > { %v567_v54 = vsel %vm7271_vm4, %v562_v6, %v566_v12  ;;  %6618 = vmatmul.mubr.msk.bf16.gmra.mxu1 %vm723_vm3, %v7627_v29  ;;  %v606_v39 = vshrl.u32 %v7625_v21, 16  ;;  %v612_v53 = vshll.u32 %v7630_v51, 16  ;;  %10840 = vst [vmem:[#allocation45_spill] sm:$0xff] %v7650_v62  ;;  %v595_v12 = vrot.slane %v593_v56, 4  ;;  %v7655_v29 = vld [vmem:[%s7219_s28 + $0xc4] sm:$0xf] }
  0x51   : > { %v7652_v35 = vcombine.low %v557_v48, %v567_v54  ;;  %v576_v24 = vrot.slane %v575_v18, 4  ;;  %v586_v60 = vrot.slane %v585_v44, 4  ;;  %v598_v37 = vrot.slane %v596_v43, 5  ;;  %10842 = vst [vmem:[#allocation47_spill] sm:$0xff] %v7655_v29  ;;  %v7669_v18 = vld [vmem:[%s7219_s28] sm:$0xf] }
  0x52   : > { %v604_v30 = vrot.slane %v602_v27, 5  ;;  %v608_v6 = vrot.slane %v606_v39, 4  ;;  %v614_v55 = vrot.slane %v612_v53, 5  ;;  %v7663_v48 = vcombine.low %v7622_v23, %v7625_v21  ;;  %v7692_v21 = vld [vmem:[%s7219_s28 + $0xc8] sm:$0x1] }
  0x53   : > { %10841 = vst [vmem:[#allocation46_spill] sm:$0xff] %v7652_v35  ;;  %v581_v10 = vsel %vm7271_vm4, %v576_v24, %v580_v16  ;;  %v591_v51 = vsel %vm7271_vm4, %v586_v60, %v590_v46  ;;  %v617_v44 = vshrl.u32 %v7650_v62, 16  ;;  %6621 = vmatprep.mubr.msk.bf16.mxu1 %vm723_vm3, %v7652_v35  ;;  %v599_v43 = vor.u32 %v598_v37, %v595_v12  ;;  %v7675_v46 = vld [vmem:[%s7219_s28 + $0x4] sm:$0xf]  ;;  %v7686_v12 = vld [vmem:[%s7219_s28 + $0x8] sm:$0x1] }
  0x54   : > { %10843 = vst [vmem:[#allocation48_spill] sm:$0xff] %v7663_v48  ;;  %v7671_v56 = vcombine.low %v581_v10, %v591_v51  ;;  %v609_v54 = vor.u32 %v608_v6, %v604_v30  ;;  %v620_v16 = vshll.u32 %v7650_v62, 16  ;;  %6591 = vmatprep.mubr.msk.bf16.mxu0 %vm723_vm3, %v7663_v48  ;;  %v626_v39 = vshll.u32 %v7655_v29, 16 }
  0x55   : > { %v619_v27 = vrot.slane %v617_v44, 4  ;;  %v630_v53 = vshrl.u32 %v7655_v29, 16  ;;  %v7683_v24 = vcombine.low %v7650_v62, %v7655_v29  ;;  %v600_v51 = vrot.slane %v599_v43, 4 }
  0x56   : > { %10844 = vst [vmem:[#allocation49_spill] sm:$0xff] %v7671_v56  ;;  %v610_v10 = vrot.slane %v609_v54, 4  ;;  %v622_v60 = vrot.slane %v620_v16, 5  ;;  %v1198_v37 = vshrl.u32 %v7669_v18, 16  ;;  %v628_v6 = vrot.slane %v626_v39, 5 }
  0x57   : > { %10845 = vst [vmem:[#allocation50_spill] sm:$0xff] %v7683_v24  ;;  %v632_v35 = vrot.slane %v630_v53, 4  ;;  %v1201_v48 = vshll.u32 %v7669_v18, 16  ;;  %v1207_v44 = vshll.u32 %v7675_v46, 16  ;;  %v605_v23 = vsel %vm7271_vm4, %v600_v51, %v604_v30  ;;  %6592 = vmatmul.mubr.msk.bf16.gmra.mxu0 %vm723_vm3, %v7683_v24 }
  0x58   : > { %v615_v43 = vsel %vm7271_vm4, %v610_v10, %v614_v55  ;;  %v623_v54 = vor.u32 %v622_v60, %v619_v27  ;;  %6622 = vmatmul.mubr.msk.bf16.gmra.mxu1 %vm723_vm3, %v7671_v56  ;;  %v1200_v16 = vrot.slane %v1198_v37, 4  ;;  %v1211_v25 = vshrl.u32 %v7675_v46, 16 }
  0x59   : > { %v7702_v39 = vcombine.low %v605_v23, %v615_v43  ;;  %v633_v53 = vor.u32 %v632_v35, %v628_v6  ;;  %v1203_v29 = vrot.slane %v1201_v48, 5  ;;  %v1209_v62 = vrot.slane %v1207_v44, 5 }
  0x5a   : > { %v624_v20 = vrot.slane %v623_v54, 4  ;;  %v1217_v30 = vshll.u32 %v7686_v12, 16  ;;  %v636_v55 = vshll.u32 %v7692_v21, 16  ;;  %v10847_v27 = vrot.slane %v7236_v14, 5 }
  0x5b   : > { %10846 = vst [vmem:[#allocation51_spill] sm:$0xff] %v7702_v39  ;;  %v634_v10 = vrot.slane %v633_v53, 4  ;;  %v1204_v60 = vor.u32 %v1203_v29, %v1200_v16  ;;  %6625 = vmatprep.mubr.msk.bf16.mxu1 %vm723_vm3, %v7702_v39  ;;  %v5739_v23 = vcombine.low %v7669_v18, %v7675_v46  ;;  %v1213_v35 = vrot.slane %v1211_v25, 4 }
  0x5c   : > { %v1866_v51 = vrot.slane %v10847_v27, 4  ;;  %v1219_v48 = vrot.slane %v1217_v30, 5  ;;  %v629_v37 = vsel %vm7271_vm4, %v624_v20, %v628_v6  ;;  %v638_v44 = vrot.slane %v636_v55, 5 }
  0x5d   : > { %v1205_v43 = vrot.slane %v1204_v60, 4  ;;  %v10848_v54 = vrot.slane %v7226_v8, 5  ;;  %v1214_v53 = vor.u32 %v1213_v35, %v1209_v62  ;;  %v10849_v16 = vmov 0 }
  0x5e   : > { %v639_v29 = vsel %vm7271_vm4, %v634_v10, %v638_v44  ;;  %v10850_v16 = vsel %vm7719_vm7, 4294967295, %v10849_v16  ;;  %v1860_v25 = vrot.slane %v7322_v11, 5  ;;  %v1867_v30 = vrot.slane %v7244_v17, 5 }
  0x5f   : > { %v1859_v27 = vrot.slane %v10848_v54, 4  ;;  %10851 = vst [vmem:[#allocation52_spill] sm:$0xff] %v10850_v16  ;;  %v7725_v20 = vcombine.low %v629_v37, %v639_v29  ;;  %v10853_v6 = vmov %v10848_v54  ;;  %v10854_v55 = vrot.slane %v7223_v7, 9 }
  0x60   : > { %v10855_v35 = vrot.slane %v7236_v14, 5  ;;  %v10856_v10 = vrot.slane %v7229_v9, 9  ;;  %v1210_v11 = vsel %vm7271_vm4, %v1205_v43, %v1209_v62  ;;  %v1215_v17 = vrot.slane %v1214_v53, 4 }
  0x61   : > { %10852 = vst [vmem:[#allocation53_spill] sm:$0xff] %v7725_v20  ;;  %v1858_v60 = vsel %vm7719_vm7, %v10854_v55, %v10853_v6  ;;  %v1861_v37 = vsel %vm7719_vm7, %v1859_v27, %v1860_v25  ;;  %v1868_v7 = vsel %vm7719_vm7, %v1866_v51, %v1867_v30  ;;  %6626 = vmatmul.mubr.msk.bf16.gmra.mxu1 %vm723_vm3, %v7725_v20  ;;  %v1972_v43 = vsel %vm772_vm0, %v7267_v33, 0  ;;  %v7763_v51 = vld [vmem:[%s10670_s1 + $0xc] sm:$0x3] }
  0x62   : > { %v1865_v44 = vsel %vm7719_vm7, %v10856_v10, %v10855_v35  ;;  %v7747_v8 = vcombine.low %v1858_v60, %v1861_v37  ;;  %v1220_v9 = vsel %vm7271_vm4, %v1215_v17, %v1219_v48  ;;  %6665 = vmatprep.mubr.msk.bf16.mxu1 %vm723_vm3, %v5739_v23  ;;  %v5761_v54 = vrot.slane %v7358_v59, 9  ;;  %v7781_v59 = vld [vmem:[%s10670_s1 + $0xe] sm:$0x3] }
  0x63   : > { %v7749_v14 = vcombine.low %v1865_v44, %v1868_v7  ;;  %v7754_v62 = vcombine.low %v1210_v11, %v1220_v9  ;;  %v1892_v27 = vrot.slane %v7365_v3, 5  ;;  %v2232_v33 = vsel %vm772_vm0, %v7385_v22, 0 }
  0x64   : > { %10857 = vst [vmem:[#allocation54_spill] sm:$0xff] %v7747_v8  ;;  %v1895_v53 = vrot.slane %v7368_v5, 5  ;;  %v5762_v3 = vrot.slane %v7395_v28, 9  ;;  %v1899_v29 = vrot.slane %v7405_v40, 5  ;;  %v1902_v22 = vrot.slane %v7410_v19, 5 }
  0x65   : > { %10858 = vst [vmem:[#allocation55_spill] sm:$0xff] %v7749_v14  ;;  %6631 = vmatprep.mubr.msk.bf16.mxu0 %vm723_vm3, %v7754_v62  ;;  %v1893_v23 = vsel %vm7719_vm7, %v5761_v54, %v1892_v27  ;;  %v1894_v48 = vrot.slane %v1892_v27, 4  ;;  %v5763_v25 = vrot.slane %v7425_v0, 9  ;;  %v1906_v30 = vrot.slane %v7429_v49, 5 }
  0x66   : > { %6632 = vmatmul.mubr.msk.bf16.vlgmr.msra.gmra.mxu0 %vm723_vm3, %v7362_v63  ;;  %v1900_v28 = vsel %vm7719_vm7, %v5762_v3, %v1899_v29  ;;  %v1901_v40 = vrot.slane %v1899_v29, 4  ;;  %v1909_v19 = vrot.slane %v7438_v32, 5  ;;  %v5764_v49 = vrot.slane %v7450_v52, 9  ;;  %v10865_v29 = vld [vmem:[#allocation30_spill] sm:$0xff] }
  0x67   : > { %6635 = vmatprep.mubr.msk.bf16.mxu0 %vm723_vm3, %v7316_v4  ;;  %6698 = vmatpush3.bf16.msra.mxu0 %v1972_v43  ;;  %v1896_v5 = vsel %vm7719_vm7, %v1894_v48, %v1895_v53  ;;  %v1907_v0 = vsel %vm7719_vm7, %v5763_v25, %v1906_v30  ;;  %v1908_v55 = vrot.slane %v1906_v30, 4  ;;  %v1913_v60 = vrot.slane %v7459_v41, 5  ;;  %v10864_v53 = vld [vmem:[#allocation12_spill] sm:$0xff]  ;;  %v10867_v30 = vld [vmem:[#allocation34_spill] sm:$0xff] }
  0x68   : > { %7111 = vmatprep.subr.msk.bf16.mxu0 %vm772_vm0, %v7763_v51  ;;  %v7794_v6 = vcombine.low %v1893_v23, %v1896_v5  ;;  %v1903_v35 = vsel %vm7719_vm7, %v1901_v40, %v1902_v22  ;;  %v1916_v10 = vrot.slane %v7468_v26, 5  ;;  %v5765_v44 = vrot.slane %v7475_v45, 9  ;;  %v10866_v22 = vld [vmem:[#allocation32_spill] sm:$0xff]  ;;  %v10868_v40 = vld [vmem:[#allocation35_spill] sm:$0xff] }
  0x69   : > { %6666 = vmatmul.mubr.msk.bf16.vlgmr.msra.gmra.mxu1 %vm723_vm3, %v7240_v15  ;;  %v1920_v32 = vrot.slane %v7485_v58, 5  ;;  %v7810_v11 = vcombine.low %v1900_v28, %v1903_v35  ;;  %v1910_v17 = vsel %vm7719_vm7, %v1908_v55, %v1909_v19  ;;  %v1914_v37 = vsel %vm7719_vm7, %v5764_v49, %v1913_v60 }
  0x6a   : > { %6732 = vmatpush3.bf16.msra.mxu1 %v2232_v33  ;;  %6669 = vmatprep.mubr.msk.bf16.mxu1 %vm723_vm3, %v7261_v31  ;;  %10859 = vst [vmem:[#allocation56_spill] sm:$0xff] %v7794_v6  ;;  %v1915_v52 = vrot.slane %v1913_v60, 4  ;;  %v7818_v41 = vcombine.low %v1907_v0, %v1910_v17  ;;  %v1923_v58 = vrot.slane %v7497_v50, 5  ;;  %v5766_v9 = vrot.slane %v7508_v1, 9  ;;  %v10869_v0 = vld [vmem:[#allocation37_spill] sm:$0xff]  ;;  %v10872_v17 = vld [vmem:[#allocation39_spill] sm:$0xff] }
  0x6b   : > { %7112 = vmatprep.subr.msk.bf16.mxu1 %vm772_vm0, %v7781_v59  ;;  %10860 = vst [vmem:[#allocation57_spill] sm:$0xff] %v7810_v11  ;;  %v1921_v26 = vsel %vm7719_vm7, %v5765_v44, %v1920_v32  ;;  %v1922_v45 = vrot.slane %v1920_v32, 4  ;;  %v1927_v43 = vrot.slane %v7514_v57, 5  ;;  %v1930_v54 = vrot.slane %v7527_v38, 5 }
  0x6c   : > { %10861 = vst [vmem:[#allocation58_spill] sm:$0xff] %v7818_v41  ;;  %v1917_v7 = vsel %vm7719_vm7, %v1915_v52, %v1916_v10  ;;  %v5767_v23 = vrot.slane %v7535_v47, 9  ;;  %v1934_v50 = vrot.slane %v7540_v2, 5  ;;  %v1937_v38 = vrot.slane %v7552_v36, 5  ;;  %v10873_v52 = vld [vmem:[#allocation20_spill] sm:$0xff] }
  0x6d   : > { %v7830_v27 = vcombine.low %v1914_v37, %v1917_v7  ;;  %v1924_v33 = vsel %vm7719_vm7, %v1922_v45, %v1923_v58  ;;  %v1928_v1 = vsel %vm7719_vm7, %v5766_v9, %v1927_v43  ;;  %v1929_v57 = vrot.slane %v1927_v43, 4  ;;  %v10874_v9 = vld [vmem:[#allocation22_spill] sm:$0xff] }
  0x6e   : > { %6636 = vmatmul.mubr.msk.bf16.gmra.mxu0 %vm723_vm3, %v7348_v42  ;;  %v7838_v48 = vcombine.low %v1921_v26, %v1924_v33  ;;  %v1935_v3 = vsel %vm7719_vm7, %v5767_v23, %v1934_v50  ;;  %v1936_v47 = vrot.slane %v1934_v50, 4  ;;  %v5768_v2 = vrot.slane %v10865_v29, 9  ;;  %v10876_v33 = vld [vmem:[#allocation40_spill] sm:$0xff]  ;;  %v10877_v50 = vld [vmem:[#allocation41_spill] sm:$0xff] }
  0x6f   : > { %6639 = vmatprep.mubr.msk.bf16.mxu0 %vm723_vm3, %v7376_v13  ;;  %10862 = vst [vmem:[#allocation59_spill] sm:$0xff] %v7830_v27  ;;  %v1941_v5 = vrot.slane %v10866_v22, 5  ;;  %v1931_v25 = vsel %vm7719_vm7, %v1929_v57, %v1930_v54  ;;  %v1944_v28 = vrot.slane %v10867_v30, 5  ;;  %v5769_v19 = vrot.slane %v10868_v40, 9  ;;  %v10883_v30 = vld [vmem:[#allocation19_spill] sm:$0xff] }
  0x70   : > { %10863 = vst [vmem:[#allocation60_spill] sm:$0xff] %v7838_v48  ;;  %v1948_v36 = vrot.slane %v10869_v0, 5  ;;  %v7854_v55 = vcombine.low %v1928_v1, %v1931_v25  ;;  %v1938_v49 = vsel %vm7719_vm7, %v1936_v47, %v1937_v38  ;;  %v1951_v37 = vrot.slane %v10872_v17, 5  ;;  %v10888_v17 = vld [vmem:[#allocation21_spill] sm:$0xff] }
  0x71   : > { %6670 = vmatmul.mubr.msk.bf16.gmra.mxu1 %vm723_vm3, %v7303_v61  ;;  %v1942_v60 = vsel %vm7719_vm7, %v5768_v2, %v1941_v5  ;;  %v1943_v35 = vrot.slane %v1941_v5, 4  ;;  %v7860_v10 = vcombine.low %v1935_v3, %v1938_v49  ;;  %v5822_v45 = vrot.slane %v7669_v18, 9  ;;  %v10880_v3 = vld [vmem:[#allocation17_spill] sm:$0xff]  ;;  %v10882_v5 = vld [vmem:[#allocation47_spill] sm:$0xff] }
  0x72   : > { %6673 = vmatprep.mubr.msk.bf16.mxu1 %vm723_vm3, %v10864_v53  ;;  %10870 = vst [vmem:[#allocation30_spill] sm:$0xff] %v7854_v55  ;;  %v1949_v44 = vsel %vm7719_vm7, %v5769_v19, %v1948_v36  ;;  %v1950_v32 = vrot.slane %v1948_v36, 4  ;;  %v2398_v58 = vrot.slane %v7675_v46, 5  ;;  %v2401_v7 = vrot.slane %v7686_v12, 5  ;;  %v10879_v12 = vld [vmem:[#allocation43_spill] sm:$0xff]  ;;  %v10881_v2 = vld [vmem:[#allocation45_spill] sm:$0xff] }
  0x73   : > { %10871 = vst [vmem:[#allocation32_spill] sm:$0xff] %v7860_v10  ;;  %v1945_v26 = vsel %vm7719_vm7, %v1943_v35, %v1944_v28  ;;  %v5770_v23 = vrot.slane %v10876_v33, 9  ;;  %v1955_v1 = vrot.slane %v10877_v50, 5  ;;  %v1958_v38 = vrot.slane %v10879_v12, 5  ;;  %v10895_v33 = vld [vmem:[#allocation42_spill] sm:$0xff]  ;;  %v10897_v50 = vld [vmem:[#allocation33_spill] sm:$0xff] }
  0x74   : > { %v7874_v43 = vcombine.low %v1942_v60, %v1945_v26  ;;  %v1952_v54 = vsel %vm7719_vm7, %v1950_v32, %v1951_v37  ;;  %v7884_v18 = vsel %vm7719_vm7, %v5822_v45, %v2398_v58  ;;  %v2400_v46 = vrot.slane %v2398_v58, 4  ;;  %v10889_v37 = vld [vmem:[#allocation23_spill] sm:$0xff]  ;;  %v10890_v26 = vld [vmem:[#allocation28_spill] sm:$0xff]  ;;  %v10892_v58 = vld [vmem:[#allocation25_spill] sm:$0xff] }
  0x75   : > { %v7880_v57 = vcombine.low %v1949_v44, %v1952_v54  ;;  %v1956_v47 = vsel %vm7719_vm7, %v5770_v23, %v1955_v1  ;;  %v1957_v29 = vrot.slane %v1955_v1, 4  ;;  %v5771_v22 = vrot.slane %v10881_v2, 9  ;;  %v10885_v44 = vld [vmem:[#allocation24_spill] sm:$0xff]  ;;  %v10891_v45 = vld [vmem:[#allocation31_spill] sm:$0xff]  ;;  %v10896_v23 = vld [vmem:[#allocation29_spill] sm:$0xff] }
  0x76   : > { %6640 = vmatmul.mubr.msk.bf16.gmra.mxu0 %vm723_vm3, %v10873_v52  ;;  %10875 = vst [vmem:[#allocation34_spill] sm:$0xff] %v7874_v43  ;;  %v1962_v25 = vrot.slane %v10882_v5, 5  ;;  %v7897_v28 = vsel %vm7719_vm7, %v2400_v46, %v2401_v7  ;;  %v1965_v40 = vrot.slane %v7692_v21, 5  ;;  %v10887_v21 = vld [vmem:[#allocation26_spill] sm:$0xff]  ;;  %v10893_v7 = vld [vmem:[#allocation27_spill] sm:$0xff]  ;;  %v10894_v54 = vld [vmem:[#allocation36_spill] sm:$0xff] }
  0x77   : > { %6643 = vmatprep.mubr.msk.bf16.mxu0 %vm723_vm3, %v10874_v9  ;;  %10878 = vst [vmem:[#allocation35_spill] sm:$0xff] %v7880_v57  ;;  %v1959_v0 = vsel %vm7719_vm7, %v1957_v29, %v1958_v38  ;;  %v10898_v1 = vld [vmem:[#allocation46_spill] sm:$0xff]  ;;  %v10900_v12 = vld [vmem:[#allocation44_spill] sm:$0xff]  ;;  %v10902_v5 = vld [vmem:[#allocation5_spill] sm:$0xff] }
  0x78   : > { %v1963_v36 = vsel %vm7719_vm7, %v5771_v22, %v1962_v25  ;;  %v1964_v49 = vrot.slane %v1962_v25, 4  ;;  %v7906_v60 = vcombine.low %v1956_v47, %v1959_v0  ;;  %v10899_v46 = vld [vmem:[#allocation38_spill] sm:$0xff]  ;;  %v10901_v38 = vld [vmem:[#allocation4_spill] sm:$0xff]  ;;  %v1874_v25 = vrot.slane %v10902_v5, 5 }
  0x79   : > { %6674 = vmatmul.mubr.msk.bf16.gmra.mxu1 %vm723_vm3, %v10880_v3  ;;  %v1871_v47 = vrot.slane %v10901_v38, 5  ;;  %v7150_v29 = vld [vmem:[%s7219_s28 + $0x24] sm:$0xf]  ;;  %v10904_v0 = vld [vmem:[#allocation8_spill] sm:$0xff]  ;;  %v10905_v38 = vld [vmem:[#allocation13_spill] sm:$0xff] }
  0x7a   : > { %6677 = vmatprep.mubr.msk.bf16.mxu1 %vm723_vm3, %v10883_v30  ;;  %10884 = vst [vmem:[#allocation37_spill] sm:$0xff] %v7906_v60  ;;  %v1966_v35 = vsel %vm7719_vm7, %v1964_v49, %v1965_v40  ;;  %v5758_v2 = vrot.slane %v7150_v29, 9  ;;  %v10903_v40 = vld [vmem:[#allocation48_spill] sm:$0xff]  ;;  %v1885_v19 = vrot.slane %v10905_v38, 5  ;;  %v2412_v29 = vsel %vm772_vm0, %v7763_v51, 0 }
  0x7b   : > { %v7912_v32 = vcombine.low %v1963_v36, %v1966_v35  ;;  %v1873_v22 = vrot.slane %v1871_v47, 4  ;;  %v1878_v36 = vrot.slane %v10904_v0, 5  ;;  %v5891_v5 = vld [vmem:[%s10670_s1 + $0x12] sm:$0x3]  ;;  %v10907_v0 = vld [vmem:[#allocation6_spill] sm:$0xff]  ;;  %v2610_v51 = vsel %vm772_vm0, %v7781_v59, 0 }
  0x7c   : > { %v1872_v49 = vsel %vm7719_vm7, %v5758_v2, %v1871_v47  ;;  %v5759_v24 = vrot.slane %v10907_v0, 9  ;;  %v10908_v2 = vld [vmem:[#allocation9_spill] sm:$0xff]  ;;  %v1887_v38 = vrot.slane %v1885_v19, 4 }
  0x7d   : > { %10886 = vst [vmem:[#allocation39_spill] sm:$0xff] %v7912_v32  ;;  %v1875_v35 = vsel %vm7719_vm7, %v1873_v22, %v1874_v25  ;;  %v1880_v47 = vrot.slane %v1878_v36, 4  ;;  %v10909_v22 = vld [vmem:[#allocation11_spill] sm:$0xff] }
  0x7e   : > { %6644 = vmatmul.mubr.msk.bf16.gmra.mxu0 %vm723_vm3, %v10885_v44  ;;  %v7968_v15 = vcombine.low %v1872_v49, %v1875_v35  ;;  %v5760_v25 = vrot.slane %v10909_v22, 9  ;;  %v5890_v49 = vld [vmem:[%s10670_s1 + $0x10] sm:$0x3]  ;;  %v1879_v59 = vsel %vm7719_vm7, %v5759_v24, %v1878_v36  ;;  %v10913_v36 = vcombine.low %v7884_v18, %v7897_v28  ;;  %v8075_v18 = vld [vmem:[%s10670_s1 + $0x14] sm:$0x3] }
  0x7f   : > { %6647 = vmatprep.mubr.msk.bf16.mxu0 %vm723_vm3, %v10887_v21  ;;  %v3047_v22 = vsel %vm772_vm0, %v5891_v5, 0 }
  0x80   : > { %10906 = vst [vmem:[#allocation20_spill] sm:$0xff] %v7968_v15 }
  0x81   : > { %6678 = vmatmul.mubr.msk.bf16.gmra.mxu1 %vm723_vm3, %v10888_v17 }
  0x82   : > { %6681 = vmatprep.mubr.msk.bf16.mxu1 %vm723_vm3, %v10889_v37 }
  0x86   : > { %6648 = vmatmul.mubr.msk.bf16.gmra.mxu0 %vm723_vm3, %v10890_v26 }
  0x87   : > { %6651 = vmatprep.mubr.msk.bf16.mxu0 %vm723_vm3, %v10891_v45 }
  0x89   : > { %6682 = vmatmul.mubr.msk.bf16.gmra.mxu1 %vm723_vm3, %v10892_v58 }
  0x8a   : > { %6685 = vmatprep.mubr.msk.bf16.mxu1 %vm723_vm3, %v10893_v7 }
  0x8e   : > { %6652 = vmatmul.mubr.msk.bf16.gmra.mxu0 %vm723_vm3, %v10894_v54 }
  0x8f   : > { %6655 = vmatprep.mubr.msk.bf16.mxu0 %vm723_vm3, %v10895_v33 }
  0x91   : > { %6686 = vmatmul.mubr.msk.bf16.gmra.mxu1 %vm723_vm3, %v10896_v23 }
  0x92   : > { %6689 = vmatprep.mubr.msk.bf16.mxu1 %vm723_vm3, %v10897_v50 }
  0x96   : > { %6656 = vmatmul.mubr.msk.bf16.gmra.mxu0 %vm723_vm3, %v10898_v1 }
  0x97   : > { %6659 = vmatprep.mubr.msk.bf16.mxu0 %vm723_vm3, %v7671_v56 }
  0x99   : > { %6690 = vmatmul.mubr.msk.bf16.gmra.mxu1 %vm723_vm3, %v10899_v46 }
  0x9a   : > { %6693 = vmatprep.mubr.msk.bf16.mxu1 %vm723_vm3, %v10900_v12  ;;  %v10910_v12 = vld [vmem:[#allocation14_spill] sm:$0xff] }
  0x9b   : > { %v1888_v46 = vrot.slane %v10910_v12, 5  ;;  %v1886_v12 = vsel %vm7719_vm7, %v5760_v25, %v1885_v19 }
  0x9e   : > { %6660 = vmatmul.mubr.msk.bf16.gmra.mxu0 %vm723_vm3, %v7702_v39 }
  0x9f   : > { %6699 = vmatprep.mubr.msk.bf16.mxu0 %vm723_vm3, %v7362_v63 }
  0xa1   : > { %6694 = vmatmul.mubr.msk.bf16.gmra.mxu1 %vm723_vm3, %v10903_v40  ;;  %v1881_v40 = vrot.slane %v10908_v2, 5 }
  0xa2   : > { %6733 = vmatprep.mubr.msk.bf16.mxu1 %vm723_vm3, %v7747_v8 }
  0xa3   : > { %v1882_v35 = vsel %vm7719_vm7, %v1880_v47, %v1881_v40 }
  0xa4   : > { %v7995_v0 = vcombine.low %v1879_v59, %v1882_v35 }
  0xa6   : > { %6700 = vmatmul.mubr.msk.bf16.vlgmr.msra.gmra.mxu0 %vm723_vm3, %v7316_v4  ;;  %10911 = vst [vmem:[#allocation22_spill] sm:$0xff] %v7995_v0 }
  0xa7   : > { %6703 = vmatprep.mubr.msk.bf16.mxu0 %vm723_vm3, %v7348_v42  ;;  %6766 = vmatpush3.bf16.msra.mxu0 %v2412_v29  ;;  %v1889_v29 = vsel %vm7719_vm7, %v1887_v38, %v1888_v46 }
  0xa8   : > { %7113 = vmatprep.subr.msk.bf16.mxu0 %vm772_vm0, %v5891_v5  ;;  %v7999_v2 = vcombine.low %v1886_v12, %v1889_v29  ;;  %v8091_v5 = vld [vmem:[%s10670_s1 + $0x16] sm:$0x3] }
  0xa9   : > { %6734 = vmatmul.mubr.msk.bf16.vlgmr.msra.gmra.mxu1 %vm723_vm3, %v7749_v14 }
  0xaa   : > { %6800 = vmatpush3.bf16.msra.mxu1 %v2610_v51  ;;  %6737 = vmatprep.mubr.msk.bf16.mxu1 %vm723_vm3, %v7968_v15  ;;  %10912 = vst [vmem:[#allocation40_spill] sm:$0xff] %v7999_v2 }
  0xab   : > { %7114 = vmatprep.subr.msk.bf16.mxu1 %vm772_vm0, %v5890_v49 }
  0xae   : > { %6704 = vmatmul.mubr.msk.bf16.gmra.mxu0 %vm723_vm3, %v7376_v13 }
  0xaf   : > { %6707 = vmatprep.mubr.msk.bf16.mxu0 %vm723_vm3, %v10873_v52 }
  0xb1   : > { %6738 = vmatmul.mubr.msk.bf16.gmra.mxu1 %vm723_vm3, %v7995_v0 }
  0xb2   : > { %6741 = vmatprep.mubr.msk.bf16.mxu1 %vm723_vm3, %v7999_v2 }
  0xb6   : > { %6708 = vmatmul.mubr.msk.bf16.gmra.mxu0 %vm723_vm3, %v10874_v9 }
  0xb7   : > { %6711 = vmatprep.mubr.msk.bf16.mxu0 %vm723_vm3, %v10885_v44 }
  0xb9   : > { %6742 = vmatmul.mubr.msk.bf16.gmra.mxu1 %vm723_vm3, %v7794_v6 }
  0xba   : > { %6745 = vmatprep.mubr.msk.bf16.mxu1 %vm723_vm3, %v7810_v11 }
  0xbe   : > { %6712 = vmatmul.mubr.msk.bf16.gmra.mxu0 %vm723_vm3, %v10887_v21 }
  0xbf   : > { %6715 = vmatprep.mubr.msk.bf16.mxu0 %vm723_vm3, %v10890_v26 }
  0xc1   : > { %6746 = vmatmul.mubr.msk.bf16.gmra.mxu1 %vm723_vm3, %v7818_v41 }
  0xc2   : > { %6749 = vmatprep.mubr.msk.bf16.mxu1 %vm723_vm3, %v7830_v27 }
  0xc6   : > { %6716 = vmatmul.mubr.msk.bf16.gmra.mxu0 %vm723_vm3, %v10891_v45 }
  0xc7   : > { %6719 = vmatprep.mubr.msk.bf16.mxu0 %vm723_vm3, %v10894_v54 }
  0xc9   : > { %6750 = vmatmul.mubr.msk.bf16.gmra.mxu1 %vm723_vm3, %v7838_v48 }
  0xca   : > { %6753 = vmatprep.mubr.msk.bf16.mxu1 %vm723_vm3, %v7854_v55 }
  0xce   : > { %6720 = vmatmul.mubr.msk.bf16.gmra.mxu0 %vm723_vm3, %v10895_v33 }
  0xcf   : > { %6723 = vmatprep.mubr.msk.bf16.mxu0 %vm723_vm3, %v10898_v1 }
  0xd1   : > { %6754 = vmatmul.mubr.msk.bf16.gmra.mxu1 %vm723_vm3, %v7860_v10 }
  0xd2   : > { %6757 = vmatprep.mubr.msk.bf16.mxu1 %vm723_vm3, %v7874_v43 }
  0xd6   : > { %6724 = vmatmul.mubr.msk.bf16.gmra.mxu0 %vm723_vm3, %v7671_v56 }
  0xd7   : > { %6727 = vmatprep.mubr.msk.bf16.mxu0 %vm723_vm3, %v7702_v39  ;;  %v8043_v24 = vpop.f32.mrf.mxu0 }
  0xd9   : > { %6758 = vmatmul.mubr.msk.bf16.gmra.mxu1 %vm723_vm3, %v7880_v57  ;;  %v8047_v19 = vpop.f32.mrf.mxu0 }
  0xda   : > { %6761 = vmatprep.mubr.msk.bf16.mxu1 %vm723_vm3, %v7906_v60 }
  0xdb   : > { %v8051_v46 = vpop.f32.mrf.mxu0 }
  0xdd   : > { %v8053_v40 = vpop.f32.mrf.mxu0 }
  0xde   : > { %6728 = vmatmul.mubr.msk.bf16.gmra.mxu0 %vm723_vm3, %v7725_v20 }
  0xdf   : > { %6767 = vmatprep.mubr.msk.bf16.mxu0 %vm723_vm3, %v10913_v36 }
  0xe1   : > { %6762 = vmatmul.mubr.msk.bf16.gmra.mxu1 %vm723_vm3, %v7912_v32  ;;  %v8063_v47 = vpop.f32.mrf.mxu0 }
  0xe2   : > { %6801 = vmatprep.mubr.msk.bf16.mxu1 %vm723_vm3, %v7754_v62  ;;  %v3217_v62 = vsel %vm772_vm0, %v5890_v49, 0 }
  0xe3   : > { %v8067_v51 = vpop.f32.mrf.mxu0 }
  0xe5   : > { %v8070_v25 = vpop.f32.mrf.mxu0 }
  0xe6   : > { %6768 = vmatmul.mubr.msk.bf16.vlgmr.msra.gmra.mxu0 %vm723_vm3, %v7747_v8 }
  0xe7   : > { %6771 = vmatprep.mubr.msk.bf16.mxu0 %vm723_vm3, %v7749_v14  ;;  %6834 = vmatpush3.bf16.msra.mxu0 %v3047_v22  ;;  %v8082_v28 = vpop.f32.mrf.mxu0 }
  0xe8   : > { %v8084_v38 = vpop.f32.mrf.mxu1  ;;  %7115 = vmatprep.subr.msk.bf16.mxu0 %vm772_vm0, %v8075_v18 }
  0xe9   : > { %6802 = vmatmul.mubr.msk.bf16.vlgmr.msra.gmra.mxu1 %vm723_vm3, %v7362_v63 }
  0xea   : > { %6868 = vmatpush3.bf16.msra.mxu1 %v3217_v62  ;;  %v8095_v59 = vpop.f32.mrf.mxu1  ;;  %6805 = vmatprep.mubr.msk.bf16.mxu1 %vm723_vm3, %v7316_v4 }
  0xeb   : > { %v8099_v49 = vpop.f32.mrf.mxu0  ;;  %7116 = vmatprep.subr.msk.bf16.mxu1 %vm772_vm0, %v8091_v5 }
  0xec   : > { %v8103_v35 = vpop.f32.mrf.mxu1 }
  0xed   : > { %v8105_v12 = vpop.f32.mrf.mxu0 }
  0xee   : > { %6772 = vmatmul.mubr.msk.bf16.gmra.mxu0 %vm723_vm3, %v7968_v15  ;;  %v8109_v29 = vpop.f32.mrf.mxu1 }
  0xef   : > { %6775 = vmatprep.mubr.msk.bf16.mxu0 %vm723_vm3, %v7995_v0  ;;  %v8113_v36 = vpop.f32.mrf.mxu0 }
  0xf0   : > { %v8115_v22 = vpop.f32.mrf.mxu1 }
  0xf1   : > { %6806 = vmatmul.mubr.msk.bf16.gmra.mxu1 %vm723_vm3, %v7348_v42  ;;  %v8119_v62 = vpop.f32.mrf.mxu0 }
  0xf2   : > { %v8121_v8 = vpop.f32.mrf.mxu1  ;;  %6809 = vmatprep.mubr.msk.bf16.mxu1 %vm723_vm3, %v7376_v13 }
  0xf4   : > { %v8125_v32 = vpop.f32.mrf.mxu1  ;;  %v8127_v16 = vpop.f32.mrf.mxu0 }
  0xf6   : > { %6776 = vmatmul.mubr.msk.bf16.gmra.mxu0 %vm723_vm3, %v7999_v2  ;;  %v8131_v0 = vpop.f32.mrf.mxu1  ;;  %v8135_v15 = vpop.f32.mrf.mxu0 }
  0xf7   : > { %6779 = vmatprep.mubr.msk.bf16.mxu0 %vm723_vm3, %v7794_v6  ;;  %10914 = vst [vmem:[#allocation41_spill] sm:$0xff] %v8135_v15 }
  0xf8   : > { %v8137_v14 = vpop.f32.mrf.mxu1  ;;  %v8141_v63 = vpop.f32.mrf.mxu0 }
  0xf9   : > { %6810 = vmatmul.mubr.msk.bf16.gmra.mxu1 %vm723_vm3, %v10873_v52  ;;  %10915 = vst [vmem:[#allocation43_spill] sm:$0xff] %v8141_v63 }
  0xfa   : > { %v8143_v20 = vpop.f32.mrf.mxu1  ;;  %6813 = vmatprep.mubr.msk.bf16.mxu1 %vm723_vm3, %v10874_v9  ;;  %v8147_v2 = vpop.f32.mrf.mxu0 }
  0xfb   : > { %10916 = vst [vmem:[#allocation17_spill] sm:$0xff] %v8147_v2 }
  0xfc   : > { %v8149_v50 = vpop.f32.mrf.mxu1 }
  0xfd   : > { %v8151_v23 = vpop.f32.mrf.mxu0 }
  0xfe   : > { %10917 = vst [vmem:[#allocation45_spill] sm:$0xff] %v8151_v23  ;;  %6780 = vmatmul.mubr.msk.bf16.gmra.mxu0 %vm723_vm3, %v7810_v11  ;;  %v8155_v6 = vpop.f32.mrf.mxu1 }
  0xff   : > { %6783 = vmatprep.mubr.msk.bf16.mxu0 %vm723_vm3, %v7818_v41  ;;  %v8159_v7 = vpop.f32.mrf.mxu0 }
 0x100   : > { %10918 = vst [vmem:[#allocation47_spill] sm:$0xff] %v8159_v7  ;;  %v8161_v63 = vpop.f32.mrf.mxu1 }
 0x101   : > { %6814 = vmatmul.mubr.msk.bf16.gmra.mxu1 %vm723_vm3, %v10885_v44  ;;  %v8165_v2 = vpop.f32.mrf.mxu0 }
 0x102   : > { %10919 = vst [vmem:[#allocation19_spill] sm:$0xff] %v8165_v2  ;;  %v8167_v15 = vpop.f32.mrf.mxu1  ;;  %6817 = vmatprep.mubr.msk.bf16.mxu1 %vm723_vm3, %v10887_v21 }
 0x103   : > { %10920 = vst [vmem:[#allocation24_spill] sm:$0xff] %v8167_v15  ;;  %v8171_v11 = vpop.f32.mrf.mxu0 }
 0x104   : > { %10921 = vst [vmem:[#allocation26_spill] sm:$0xff] %v8171_v11  ;;  %v8173_v23 = vpop.f32.mrf.mxu1 }
 0x105   : > { %10922 = vst [vmem:[#allocation21_spill] sm:$0xff] %v8173_v23 }
 0x106   : > { %6784 = vmatmul.mubr.msk.bf16.gmra.mxu0 %vm723_vm3, %v7830_v27  ;;  %v8177_v41 = vpop.f32.mrf.mxu1  ;;  %v8181_v7 = vpop.f32.mrf.mxu0 }
 0x107   : > { %10923 = vst [vmem:[#allocation23_spill] sm:$0xff] %v8177_v41  ;;  %6787 = vmatprep.mubr.msk.bf16.mxu0 %vm723_vm3, %v7838_v48  ;;  %10924 = vst [vmem:[#allocation28_spill] sm:$0xff] %v8181_v7 }
 0x108   : > { %v8183_v2 = vpop.f32.mrf.mxu1  ;;  %v8187_v15 = vpop.f32.mrf.mxu0 }
 0x109   : > { %6818 = vmatmul.mubr.msk.bf16.gmra.mxu1 %vm723_vm3, %v10890_v26  ;;  %10925 = vst [vmem:[#allocation31_spill] sm:$0xff] %v8187_v15 }
 0x10a   : > { %v8189_v11 = vpop.f32.mrf.mxu1  ;;  %6821 = vmatprep.mubr.msk.bf16.mxu1 %vm723_vm3, %v10891_v45  ;;  %v8193_v27 = vpop.f32.mrf.mxu0 }
 0x10b   : > { %10926 = vst [vmem:[#allocation25_spill] sm:$0xff] %v8193_v27 }
 0x10c   : > { %v8195_v41 = vpop.f32.mrf.mxu1  ;;  %v8197_v23 = vpop.f32.mrf.mxu0 }
 0x10d   : > { %10927 = vst [vmem:[#allocation4_spill] sm:$0xff] %v8195_v41  ;;  %10928 = vst [vmem:[#allocation5_spill] sm:$0xff] %v8197_v23 }
 0x10e   : > { %6788 = vmatmul.mubr.msk.bf16.gmra.mxu0 %vm723_vm3, %v7854_v55  ;;  %v8201_v48 = vpop.f32.mrf.mxu1 }
 0x10f   : > { %10929 = vst [vmem:[#allocation8_spill] sm:$0xff] %v8201_v48  ;;  %6791 = vmatprep.mubr.msk.bf16.mxu0 %vm723_vm3, %v7860_v10  ;;  %v8205_v15 = vpop.f32.mrf.mxu0 }
 0x110   : > { %10930 = vst [vmem:[#allocation13_spill] sm:$0xff] %v8205_v15  ;;  %v8207_v7 = vpop.f32.mrf.mxu1 }
 0x111   : > { %10931 = vst [vmem:[#allocation6_spill] sm:$0xff] %v8207_v7  ;;  %6822 = vmatmul.mubr.msk.bf16.gmra.mxu1 %vm723_vm3, %v10894_v54  ;;  %v8211_v27 = vpop.f32.mrf.mxu0 }
 0x112   : > { %10932 = vst [vmem:[#allocation9_spill] sm:$0xff] %v8211_v27  ;;  %v8213_v23 = vpop.f32.mrf.mxu1  ;;  %6825 = vmatprep.mubr.msk.bf16.mxu1 %vm723_vm3, %v10895_v33 }
 0x113   : > { %10933 = vst [vmem:[#allocation11_spill] sm:$0xff] %v8213_v23  ;;  %v8217_v55 = vpop.f32.mrf.mxu0 }
 0x114   : > { %10934 = vst [vmem:[#allocation14_spill] sm:$0xff] %v8217_v55  ;;  %v8219_v48 = vpop.f32.mrf.mxu1 }
 0x115   : > { %10935 = vst [vmem:[#allocation61_spill] sm:$0xff] %v8219_v48  ;;  %v8223_v10 = vpop.f32.mrf.mxu0 }
 0x116   : > { %6792 = vmatmul.mubr.msk.bf16.gmra.mxu0 %vm723_vm3, %v7874_v43  ;;  %10936 = vst [vmem:[#allocation62_spill] sm:$0xff] %v8223_v10  ;;  %v8225_v15 = vpop.f32.mrf.mxu1  ;;  %v8242_v43 = vld [vmem:[%s7219_s28 + $0xcc] sm:$0xf]  ;;  %v8245_v10 = vld [vmem:[%s7219_s28 + $0xd0] sm:$0xf] }
 0x117   : > { %10937 = vst [vmem:[#allocation63_spill] sm:$0xff] %v8225_v15  ;;  %6795 = vmatprep.mubr.msk.bf16.mxu0 %vm723_vm3, %v7880_v57  ;;  %v8229_v27 = vpop.f32.mrf.mxu0  ;;  %v3011_v57 = vshrl.u32 %v8242_v43, 16  ;;  %v5892_v34 = vcombine.low %v8242_v43, %v8245_v10 }
 0x118   : > { %10938 = vst [vmem:[#allocation64_spill] sm:$0xff] %v8229_v27  ;;  %v8231_v23 = vpop.f32.mrf.mxu1  ;;  %v3014_v27 = vshll.u32 %v8242_v43, 16 }
 0x119   : > { %10939 = vst [vmem:[#allocation65_spill] sm:$0xff] %v8231_v23  ;;  %6826 = vmatmul.mubr.msk.bf16.gmra.mxu1 %vm723_vm3, %v10898_v1  ;;  %v8235_v55 = vpop.f32.mrf.mxu0  ;;  %v3024_v23 = vshrl.u32 %v8245_v10, 16  ;;  %v3013_v1 = vrot.slane %v3011_v57, 4 }
 0x11a   : > { %10940 = vst [vmem:[#allocation66_spill] sm:$0xff] %v8235_v55  ;;  %v8237_v48 = vpop.f32.mrf.mxu1  ;;  %6829 = vmatprep.mubr.msk.bf16.mxu1 %vm723_vm3, %v7671_v56  ;;  %v3020_v55 = vshll.u32 %v8245_v10, 16  ;;  %v3016_v7 = vrot.slane %v3014_v27, 5 }
 0x11b   : > { %10941 = vst [vmem:[#allocation67_spill] sm:$0xff] %v8237_v48  ;;  %v8255_v48 = vpop.f32.mrf.mxu0  ;;  %v3026_v54 = vrot.slane %v3024_v23, 4  ;;  %v1079_v23 = vadd.f32 %v8084_v38, %v8043_v24  ;;  %v8302_v24 = vld [vmem:[%s10670_s1 + $0x18] sm:$0x3] }
 0x11c   : > { %v8247_v15 = vpop.f32.mrf.mxu1  ;;  %10943 = vst [vmem:[#allocation69_spill] sm:$0xff] %v8255_v48  ;;  %v8265_v33 = vrot.slane %v3020_v55, 5  ;;  %v8282_v55 = vld [vmem:[%s10670_s1 + $0x1a] sm:$0x3] }
 0x11d   : > { %10942 = vst [vmem:[#allocation68_spill] sm:$0xff] %v8247_v15  ;;  %v8267_v41 = vpop.f32.mrf.mxu0 }
 0x11e   : > { %6796 = vmatmul.mubr.msk.bf16.gmra.mxu0 %vm723_vm3, %v7906_v60  ;;  %v8257_v56 = vpop.f32.mrf.mxu1  ;;  %v252_v60 = vld [vmem:[%s7219_s28 + $0xd4] sm:$0x1]  ;;  %v3027_v57 = vor.u32 %v3026_v54, %v8265_v33 }
 0x11f   : > { %10944 = vst [vmem:[#allocation70_spill] sm:$0xff] %v8257_v56  ;;  %6835 = vmatprep.mubr.msk.bf16.mxu0 %vm723_vm3, %v7261_v31  ;;  %v3383_v31 = vsel %vm772_vm0, %v8075_v18, 0  ;;  %v3017_v56 = vor.u32 %v3016_v7, %v3013_v1  ;;  %v3030_v27 = vshll.u32 %v252_v60, 16  ;;  %v3581_v60 = vsel %vm772_vm0, %v8091_v5, 0 }
 0x120   : > { %v1071_v7 = vadd.f32 %v8095_v59, %v8047_v19  ;;  %v3028_v19 = vrot.slane %v3027_v57, 4  ;;  %v1082_v5 = vadd.f32 %v8103_v35, %v8051_v46 }
 0x121   : > { %v8261_v15 = vpop.f32.mrf.mxu1  ;;  %6830 = vmatmul.mubr.msk.bf16.gmra.mxu1 %vm723_vm3, %v7702_v39  ;;  %v3032_v38 = vrot.slane %v3030_v27, 5 }
 0x122   : > { %10945 = vst [vmem:[#allocation71_spill] sm:$0xff] %v8261_v15  ;;  %6869 = vmatprep.mubr.msk.bf16.mxu1 %vm723_vm3, %v7316_v4 }
 0x123   : > { %v8272_v48 = vpop.f32.mrf.mxu1 }
 0x125   : > { %v8276_v15 = vpop.f32.mrf.mxu1 }
 0x126   : > { %v6633_v4 = vpop.f32.mrf.mxu0  ;;  %6836 = vmatmul.mubr.msk.bf16.vlgmr.msra.gmra.mxu0 %vm723_vm3, %v7303_v61 }
 0x127   : > { %v8289_v18 = vpop.f32.mrf.mxu1  ;;  %6839 = vmatprep.mubr.msk.bf16.mxu0 %vm723_vm3, %v10864_v53  ;;  %6902 = vmatpush3.bf16.msra.mxu0 %v3383_v31  ;;  %v1395_v54 = vadd.f32 %v6633_v4, %v1079_v23  ;;  %v3018_v4 = vrot.slane %v3017_v56, 4  ;;  %v1074_v56 = vadd.f32 %v8109_v29, %v8053_v40 }
 0x128   : > { %v1266_v1 = vpop.f32.mrf.mxu0  ;;  %7117 = vmatprep.subr.msk.bf16.mxu0 %vm772_vm0, %v8282_v55 }
 0x129   : > { %v6667_v31 = vpop.f32.mrf.mxu1  ;;  %6870 = vmatmul.mubr.msk.bf16.vlgmr.msra.gmra.mxu1 %vm723_vm3, %v7348_v42  ;;  %v1393_v59 = vadd.f32 %v1266_v1, %v1071_v7  ;;  %v3033_v7 = vsel %vm7271_vm4, %v3028_v19, %v3032_v38  ;;  %v1098_v38 = vadd.f32 %v8125_v32, %v8070_v25  ;;  %v1111_v32 = vadd.f32 %v8137_v14, %v8099_v49 }
 0x12a   : > { %v6634_v23 = vpop.f32.mrf.mxu0  ;;  %v1601_v53 = vadd.f32 %v6667_v31, %v1395_v54  ;;  %6936 = vmatpush3.bf16.msra.mxu1 %v3581_v60  ;;  %6873 = vmatprep.mubr.msk.bf16.mxu1 %vm723_vm3, %v7376_v13  ;;  %v3023_v60 = vsel %vm7271_vm4, %v3018_v4, %v8265_v33  ;;  %v1095_v54 = vadd.f32 %v8115_v22, %v8063_v47 }
 0x12b   : > { %v1472_v61 = vpop.f32.mrf.mxu1  ;;  %7118 = vmatprep.subr.msk.bf16.mxu1 %vm772_vm0, %v8302_v24  ;;  %v1396_v57 = vadd.f32 %v6634_v23, %v1082_v5  ;;  %v1087_v33 = vadd.f32 %v8121_v8, %v8067_v51  ;;  %v8340_v19 = vcombine.low %v3023_v60, %v3033_v7  ;;  %v1090_v5 = vadd.f32 %v8131_v0, %v8082_v28 }
 0x12c   : > { %v1269_v27 = vpop.f32.mrf.mxu0  ;;  %1806 = vst.msk [vmem:[%s8307_s27 + $0x10] sm:$0xff] %vm1631_vm8, %v1601_v53  ;;  %v1599_v46 = vadd.f32 %v1472_v61, %v1393_v59  ;;  %v1704_v59 = vmul.f32 %v1601_v53, %v1601_v53  ;;  %v1635_v0 = vsel %vm1631_vm8, %v1601_v53, 0.0 }
 0x12d   : > { %v6668_v35 = vpop.f32.mrf.mxu1  ;;  %v1394_v1 = vadd.f32 %v1269_v27, %v1074_v56  ;;  %10946 = vst [vmem:[#allocation72_spill] sm:$0xff] %v8340_v19 }
 0x12e   : > { %v6637_v31 = vpop.f32.mrf.mxu0  ;;  %6840 = vmatmul.mubr.msk.bf16.gmra.mxu0 %vm723_vm3, %v10880_v3  ;;  %1804 = vst.msk [vmem:[%s8307_s27] sm:$0xff] %vm1631_vm8, %v1599_v46  ;;  %v1602_v61 = vadd.f32 %v6668_v35, %v1396_v57  ;;  %v1702_v40 = vmul.f32 %v1599_v46, %v1599_v46  ;;  %v1632_v23 = vsel %vm1631_vm8, %v1599_v46, 0.0  ;;  %v1737_v14 = vsel %vm1631_vm8, %v1704_v59, 0.0 }
 0x12f   : > { %v1475_v29 = vpop.f32.mrf.mxu1  ;;  %6843 = vmatprep.mubr.msk.bf16.mxu0 %vm723_vm3, %v10883_v30  ;;  %v1399_v47 = vadd.f32 %v6637_v31, %v1095_v54 }
 0x130   : > { %v1282_v22 = vpop.f32.mrf.mxu0  ;;  %1807 = vst.msk [vmem:[%s8307_s27 + $0x18] sm:$0xff] %vm1631_vm8, %v1602_v61  ;;  %v1600_v4 = vadd.f32 %v1475_v29, %v1394_v1  ;;  %v1734_v25 = vsel %vm1631_vm8, %v1702_v40, 0.0  ;;  %v1705_v7 = vmul.f32 %v1602_v61, %v1602_v61  ;;  %v1103_v29 = vadd.f32 %v8143_v20, %v8105_v12 }
 0x131   : > { %v6671_v56 = vpop.f32.mrf.mxu1  ;;  %6874 = vmatmul.mubr.msk.bf16.gmra.mxu1 %vm723_vm3, %v10873_v52  ;;  %v1397_v8 = vadd.f32 %v1282_v22, %v1087_v33  ;;  %v1637_v40 = vsel %vm1631_vm8, %v1602_v61, 0.0  ;;  %v1114_v20 = vadd.f32 %v8149_v50, %v8113_v36  ;;  %v8375_v61 = vsel %vm772_vm0, %v8282_v55, 0 }
 0x132   : > { %v6638_v51 = vpop.f32.mrf.mxu0  ;;  %v1633_v57 = vsel %vm1631_vm8, %v1600_v4, 0.0  ;;  %v1703_v27 = vmul.f32 %v1600_v4, %v1600_v4  ;;  %1805 = vst.msk [vmem:[%s8307_s27 + $0x8] sm:$0xff] %vm1631_vm8, %v1600_v4  ;;  %v1605_v35 = vadd.f32 %v6671_v56, %v1399_v47  ;;  %6877 = vmatprep.mubr.msk.bf16.mxu1 %vm723_vm3, %v10874_v9 }
 0x133   : > { %v1634_v28 = vadd.f32 %v1633_v57, %v1632_v23  ;;  %v1488_v46 = vpop.f32.mrf.mxu1  ;;  %v1400_v60 = vadd.f32 %v6638_v51, %v1098_v38 }
 0x134   : > { %v1285_v54 = vpop.f32.mrf.mxu0  ;;  %v1735_v1 = vsel %vm1631_vm8, %v1703_v27, 0.0  ;;  %1810 = vst.msk [vmem:[%s8307_s27 + $0x30] sm:$0xff] %vm1631_vm8, %v1605_v35  ;;  %v1603_v31 = vadd.f32 %v1488_v46, %v1397_v8  ;;  %v1708_v36 = vmul.f32 %v1605_v35, %v1605_v35 }
 0x135   : > { %v1636_v49 = vadd.f32 %v1635_v0, %v1634_v28  ;;  %v1736_v53 = vadd.f32 %v1735_v1, %v1734_v25  ;;  %v6672_v33 = vpop.f32.mrf.mxu1  ;;  %v1398_v47 = vadd.f32 %v1285_v54, %v1090_v5  ;;  %v1739_v5 = vsel %vm1631_vm8, %v1705_v7, 0.0 }
 0x136   : > { %v6641_v22 = vpop.f32.mrf.mxu0  ;;  %6844 = vmatmul.mubr.msk.bf16.gmra.mxu0 %vm723_vm3, %v10888_v17  ;;  %v1706_v4 = vmul.f32 %v1603_v31, %v1603_v31  ;;  %1808 = vst.msk [vmem:[%s8307_s27 + $0x20] sm:$0xff] %vm1631_vm8, %v1603_v31  ;;  %v1606_v38 = vadd.f32 %v6672_v33, %v1400_v60  ;;  %v1639_v51 = vsel %vm1631_vm8, %v1603_v31, 0.0  ;;  %v1106_v7 = vadd.f32 %v8155_v6, %v8119_v62 }
 0x137   : > { %v1738_v12 = vadd.f32 %v1737_v14, %v1736_v53  ;;  %v1638_v59 = vadd.f32 %v1637_v40, %v1636_v49  ;;  %v1491_v23 = vpop.f32.mrf.mxu1  ;;  %6847 = vmatprep.mubr.msk.bf16.mxu0 %vm723_vm3, %v10889_v37  ;;  %v1403_v56 = vadd.f32 %v6641_v22, %v1111_v32  ;;  %v1643_v54 = vsel %vm1631_vm8, %v1605_v35, 0.0 }
 0x138   : > { %v1298_v8 = vpop.f32.mrf.mxu0  ;;  %1811 = vst.msk [vmem:[%s8307_s27 + $0x38] sm:$0xff] %vm1631_vm8, %v1606_v38  ;;  %v1604_v50 = vadd.f32 %v1491_v23, %v1398_v47  ;;  %v1741_v0 = vsel %vm1631_vm8, %v1706_v4, 0.0  ;;  %v1709_v49 = vmul.f32 %v1606_v38, %v1606_v38  ;;  %v1127_v47 = vadd.f32 %v8161_v63, %v8127_v16  ;;  %v10949_v16 = vld [vmem:[#allocation43_spill] sm:$0xff] }
 0x139   : > { %v1640_v57 = vadd.f32 %v1639_v51, %v1638_v59  ;;  %v1740_v27 = vadd.f32 %v1739_v5, %v1738_v12  ;;  %v6675_v25 = vpop.f32.mrf.mxu1  ;;  %6878 = vmatmul.mubr.msk.bf16.gmra.mxu1 %vm723_vm3, %v10885_v44  ;;  %v1401_v55 = vadd.f32 %v1298_v8, %v1103_v29  ;;  %v1745_v22 = vsel %vm1631_vm8, %v1708_v36, 0.0  ;;  %v10947_v5 = vld [vmem:[#allocation41_spill] sm:$0xff] }
 0x13a   : > { %v6642_v28 = vpop.f32.mrf.mxu0  ;;  %v1641_v32 = vsel %vm1631_vm8, %v1604_v50, 0.0  ;;  %v1707_v46 = vmul.f32 %v1604_v50, %v1604_v50  ;;  %1809 = vst.msk [vmem:[%s8307_s27 + $0x28] sm:$0xff] %vm1631_vm8, %v1604_v50  ;;  %v1609_v60 = vadd.f32 %v6675_v25, %v1403_v56  ;;  %6881 = vmatprep.mubr.msk.bf16.mxu1 %vm723_vm3, %v10887_v21  ;;  %v1645_v4 = vsel %vm1631_vm8, %v1606_v38, 0.0  ;;  %v10948_v56 = vld [vmem:[#allocation24_spill] sm:$0xff]  ;;  %v10950_v8 = vld [vmem:[#allocation21_spill] sm:$0xff]  ;;  %v10951_v38 = vld [vmem:[#allocation27_spill] sm:$0xff] }
 0x13b   : > { %v1742_v1 = vadd.f32 %v1741_v0, %v1740_v27  ;;  %v1642_v31 = vadd.f32 %v1641_v32, %v1640_v57  ;;  %v1504_v14 = vpop.f32.mrf.mxu1  ;;  %v1404_v29 = vadd.f32 %v6642_v28, %v1114_v20  ;;  %v1119_v63 = vadd.f32 %v10948_v56, %v10947_v5  ;;  %v10954_v56 = vld [vmem:[#allocation45_spill] sm:$0xff] }
 0x13c   : > { %v1301_v53 = vpop.f32.mrf.mxu0  ;;  %v1743_v33 = vsel %vm1631_vm8, %v1707_v46, 0.0  ;;  %1814 = vst.msk [vmem:[%s8307_s27 + $0x50] sm:$0xff] %vm1631_vm8, %v1609_v60  ;;  %v1607_v40 = vadd.f32 %v1504_v14, %v1401_v55  ;;  %v1130_v51 = vadd.f32 %v10950_v8, %v10949_v16  ;;  %v1747_v27 = vsel %vm1631_vm8, %v1709_v49, 0.0 }
 0x13d   : > { %v1644_v6 = vadd.f32 %v1643_v54, %v1642_v31  ;;  %v1744_v62 = vadd.f32 %v1743_v33, %v1742_v1  ;;  %v6676_v35 = vpop.f32.mrf.mxu1  ;;  %v1402_v12 = vadd.f32 %v1301_v53, %v1106_v7  ;;  %v1712_v32 = vmul.f32 %v1609_v60, %v1609_v60  ;;  %v10952_v33 = vld [vmem:[#allocation17_spill] sm:$0xff] }
 0x13e   : > { %v6645_v20 = vpop.f32.mrf.mxu0  ;;  %6848 = vmatmul.mubr.msk.bf16.gmra.mxu0 %vm723_vm3, %v10892_v58  ;;  %v1710_v59 = vmul.f32 %v1607_v40, %v1607_v40  ;;  %1812 = vst.msk [vmem:[%s8307_s27 + $0x40] sm:$0xff] %vm1631_vm8, %v1607_v40  ;;  %v1610_v23 = vadd.f32 %v6676_v35, %v1404_v29  ;;  %v1647_v55 = vsel %vm1631_vm8, %v1607_v40, 0.0  ;;  %v10953_v40 = vld [vmem:[#allocation23_spill] sm:$0xff] }
 0x13f   : > { %v1746_v50 = vadd.f32 %v1745_v22, %v1744_v62  ;;  %v1646_v36 = vadd.f32 %v1645_v4, %v1644_v6  ;;  %v1507_v57 = vpop.f32.mrf.mxu1  ;;  %6851 = vmatprep.mubr.msk.bf16.mxu0 %vm723_vm3, %v10951_v38  ;;  %v1407_v0 = vadd.f32 %v6645_v20, %v1127_v47  ;;  %v1122_v47 = vadd.f32 %v10953_v40, %v10952_v33 }
 0x140   : > { %v1314_v25 = vpop.f32.mrf.mxu0  ;;  %1815 = vst.msk [vmem:[%s8307_s27 + $0x58] sm:$0xff] %vm1631_vm8, %v1610_v23  ;;  %v1608_v28 = vadd.f32 %v1507_v57, %v1402_v12  ;;  %v1749_v54 = vsel %vm1631_vm8, %v1710_v59, 0.0  ;;  %v1651_v22 = vsel %vm1631_vm8, %v1609_v60, 0.0  ;;  %v1713_v12 = vmul.f32 %v1610_v23, %v1610_v23 }
 0x141   : > { %v1648_v46 = vadd.f32 %v1647_v55, %v1646_v36  ;;  %v1748_v7 = vadd.f32 %v1747_v27, %v1746_v50  ;;  %v6679_v1 = vpop.f32.mrf.mxu1  ;;  %6882 = vmatmul.mubr.msk.bf16.gmra.mxu1 %vm723_vm3, %v10890_v26  ;;  %v1405_v31 = vadd.f32 %v1314_v25, %v1119_v63  ;;  %v1143_v63 = vadd.f32 %v8183_v2, %v10954_v56  ;;  %v10955_v27 = vld [vmem:[#allocation29_spill] sm:$0xff]  ;;  %v10956_v55 = vld [vmem:[#allocation47_spill] sm:$0xff]  ;;  %v10962_v56 = vld [vmem:[#allocation26_spill] sm:$0xff] }
 0x142   : > { %v6646_v14 = vpop.f32.mrf.mxu0  ;;  %v1649_v29 = vsel %vm1631_vm8, %v1608_v28, 0.0  ;;  %v1711_v49 = vmul.f32 %v1608_v28, %v1608_v28  ;;  %1813 = vst.msk [vmem:[%s8307_s27 + $0x48] sm:$0xff] %vm1631_vm8, %v1608_v28  ;;  %v1613_v53 = vadd.f32 %v6679_v1, %v1407_v0  ;;  %6885 = vmatprep.mubr.msk.bf16.mxu1 %vm723_vm3, %v10891_v45  ;;  %v1753_v16 = vsel %vm1631_vm8, %v1712_v32, 0.0  ;;  %v10957_v28 = vld [vmem:[#allocation19_spill] sm:$0xff]  ;;  %v10958_v32 = vld [vmem:[#allocation4_spill] sm:$0xff] }
 0x143   : > { %v1750_v6 = vadd.f32 %v1749_v54, %v1748_v7  ;;  %v1650_v62 = vadd.f32 %v1649_v29, %v1648_v46  ;;  %v1520_v35 = vpop.f32.mrf.mxu1  ;;  %v1408_v4 = vadd.f32 %v6646_v14, %v1130_v51  ;;  %v1653_v36 = vsel %vm1631_vm8, %v1610_v23, 0.0  ;;  %v10959_v23 = vld [vmem:[#allocation33_spill] sm:$0xff] }
 0x144   : > { %v1317_v20 = vpop.f32.mrf.mxu0  ;;  %v1751_v59 = vsel %vm1631_vm8, %v1711_v49, 0.0  ;;  %1818 = vst.msk [vmem:[%s8307_s27 + $0x70] sm:$0xff] %vm1631_vm8, %v1613_v53  ;;  %v1611_v5 = vadd.f32 %v1520_v35, %v1405_v31  ;;  %v1135_v2 = vadd.f32 %v8189_v11, %v10956_v55  ;;  %v1146_v46 = vadd.f32 %v10958_v32, %v10957_v28  ;;  %v10964_v28 = vld [vmem:[#allocation28_spill] sm:$0xff]  ;;  %v10965_v32 = vld [vmem:[#allocation6_spill] sm:$0xff] }
 0x145   : > { %v1652_v8 = vadd.f32 %v1651_v22, %v1650_v62  ;;  %v1752_v50 = vadd.f32 %v1751_v59, %v1750_v6  ;;  %v6680_v60 = vpop.f32.mrf.mxu1  ;;  %v1406_v57 = vadd.f32 %v1317_v20, %v1122_v47  ;;  %v1755_v31 = vsel %vm1631_vm8, %v1713_v12, 0.0  ;;  %v10960_v62 = vld [vmem:[#allocation36_spill] sm:$0xff] }
 0x146   : > { %v6649_v51 = vpop.f32.mrf.mxu0  ;;  %6852 = vmatmul.mubr.msk.bf16.gmra.mxu0 %vm723_vm3, %v10955_v27  ;;  %v1714_v0 = vmul.f32 %v1611_v5, %v1611_v5  ;;  %1816 = vst.msk [vmem:[%s8307_s27 + $0x60] sm:$0xff] %vm1631_vm8, %v1611_v5  ;;  %v1614_v25 = vadd.f32 %v6680_v60, %v1408_v4  ;;  %v1655_v49 = vsel %vm1631_vm8, %v1611_v5, 0.0  ;;  %v1716_v11 = vmul.f32 %v1613_v53, %v1613_v53  ;;  %v10961_v5 = vld [vmem:[#allocation42_spill] sm:$0xff] }
 0x147   : > { %v1754_v7 = vadd.f32 %v1753_v16, %v1752_v50  ;;  %v1654_v54 = vadd.f32 %v1653_v36, %v1652_v8  ;;  %v1523_v1 = vpop.f32.mrf.mxu1  ;;  %6855 = vmatprep.mubr.msk.bf16.mxu0 %vm723_vm3, %v10959_v23  ;;  %v1411_v14 = vadd.f32 %v6649_v51, %v1143_v63  ;;  %v10963_v63 = vld [vmem:[#allocation8_spill] sm:$0xff]  ;;  %v1659_v8 = vsel %vm1631_vm8, %v1613_v53, 0.0 }
 0x148   : > { %v1330_v29 = vpop.f32.mrf.mxu0  ;;  %1819 = vst.msk [vmem:[%s8307_s27 + $0x78] sm:$0xff] %vm1631_vm8, %v1614_v25  ;;  %v1612_v33 = vadd.f32 %v1523_v1, %v1406_v57  ;;  %v1757_v22 = vsel %vm1631_vm8, %v1714_v0, 0.0  ;;  %v1138_v16 = vadd.f32 %v10963_v63, %v10962_v56  ;;  %v1717_v51 = vmul.f32 %v1614_v25, %v1614_v25 }
 0x149   : > { %v1656_v40 = vadd.f32 %v1655_v49, %v1654_v54  ;;  %v1756_v47 = vadd.f32 %v1755_v31, %v1754_v7  ;;  %v6683_v6 = vpop.f32.mrf.mxu1  ;;  %6886 = vmatmul.mubr.msk.bf16.gmra.mxu1 %vm723_vm3, %v10960_v62  ;;  %v1409_v35 = vadd.f32 %v1330_v29, %v1135_v2  ;;  %v1159_v7 = vadd.f32 %v10965_v32, %v10964_v28  ;;  %v10966_v49 = vld [vmem:[#allocation38_spill] sm:$0xff] }
 0x14a   : > { %v6650_v4 = vpop.f32.mrf.mxu0  ;;  %v1657_v12 = vsel %vm1631_vm8, %v1612_v33, 0.0  ;;  %v1715_v20 = vmul.f32 %v1612_v33, %v1612_v33  ;;  %1817 = vst.msk [vmem:[%s8307_s27 + $0x68] sm:$0xff] %vm1631_vm8, %v1612_v33  ;;  %v1617_v59 = vadd.f32 %v6683_v6, %v1411_v14  ;;  %6889 = vmatprep.mubr.msk.bf16.mxu1 %vm723_vm3, %v10961_v5  ;;  %v1761_v54 = vsel %vm1631_vm8, %v1716_v11, 0.0  ;;  %v10970_v11 = vld [vmem:[#allocation61_spill] sm:$0xff]  ;;  %v10972_v32 = vld [vmem:[#allocation46_spill] sm:$0xff] }
 0x14b   : > { %v1758_v50 = vadd.f32 %v1757_v22, %v1756_v47  ;;  %v1658_v60 = vadd.f32 %v1657_v12, %v1656_v40  ;;  %v1536_v36 = vpop.f32.mrf.mxu1  ;;  %v1412_v57 = vadd.f32 %v6650_v4, %v1146_v46  ;;  %v1661_v14 = vsel %vm1631_vm8, %v1614_v25, 0.0  ;;  %v10967_v47 = vld [vmem:[#allocation31_spill] sm:$0xff]  ;;  %v10971_v25 = vld [vmem:[#allocation44_spill] sm:$0xff] }
 0x14c   : > { %v1333_v0 = vpop.f32.mrf.mxu0  ;;  %v1759_v55 = vsel %vm1631_vm8, %v1715_v20, 0.0  ;;  %1822 = vst.msk [vmem:[%s8307_s27 + $0x90] sm:$0xff] %vm1631_vm8, %v1617_v59  ;;  %v1615_v2 = vadd.f32 %v1536_v36, %v1409_v35  ;;  %v10968_v22 = vld [vmem:[#allocation11_spill] sm:$0xff]  ;;  %v10969_v35 = vld [vmem:[#allocation25_spill] sm:$0xff]  ;;  %v1763_v63 = vsel %vm1631_vm8, %v1717_v51, 0.0  ;;  %v1720_v36 = vmul.f32 %v1617_v59, %v1617_v59 }
 0x14d   : > { %v1660_v1 = vadd.f32 %v1659_v8, %v1658_v60  ;;  %v1760_v31 = vadd.f32 %v1759_v55, %v1758_v50  ;;  %v6684_v53 = vpop.f32.mrf.mxu1  ;;  %v1410_v29 = vadd.f32 %v1333_v0, %v1138_v16  ;;  %v1151_v6 = vadd.f32 %v10968_v22, %v10967_v47 }
 0x14e   : > { %v6653_v46 = vpop.f32.mrf.mxu0  ;;  %6856 = vmatmul.mubr.msk.bf16.gmra.mxu0 %vm723_vm3, %v10966_v49  ;;  %v1718_v33 = vmul.f32 %v1615_v2, %v1615_v2  ;;  %1820 = vst.msk [vmem:[%s8307_s27 + $0x80] sm:$0xff] %vm1631_vm8, %v1615_v2  ;;  %v1618_v40 = vadd.f32 %v6684_v53, %v1412_v57  ;;  %v1162_v4 = vadd.f32 %v10970_v11, %v10969_v35  ;;  %v1663_v50 = vsel %vm1631_vm8, %v1615_v2, 0.0  ;;  %v10974_v53 = vld [vmem:[#allocation5_spill] sm:$0xff] }
 0x14f   : > { %v1762_v12 = vadd.f32 %v1761_v54, %v1760_v31  ;;  %v1662_v20 = vadd.f32 %v1661_v14, %v1660_v1  ;;  %v1539_v56 = vpop.f32.mrf.mxu1  ;;  %6859 = vmatprep.mubr.msk.bf16.mxu0 %vm723_vm3, %v10971_v25  ;;  %v1415_v16 = vadd.f32 %v6653_v46, %v1159_v7  ;;  %v10973_v31 = vld [vmem:[#allocation49_spill] sm:$0xff]  ;;  %v10975_v14 = vld [vmem:[#allocation63_spill] sm:$0xff]  ;;  %v1667_v46 = vsel %vm1631_vm8, %v1617_v59, 0.0 }
 0x150   : > { %v1346_v8 = vpop.f32.mrf.mxu0  ;;  %1823 = vst.msk [vmem:[%s8307_s27 + $0x98] sm:$0xff] %vm1631_vm8, %v1618_v40  ;;  %v1616_v60 = vadd.f32 %v1539_v56, %v1410_v29  ;;  %v1765_v55 = vsel %vm1631_vm8, %v1718_v33, 0.0  ;;  %v1154_v29 = vadd.f32 %v10975_v14, %v10974_v53  ;;  %v1721_v35 = vmul.f32 %v1618_v40, %v1618_v40  ;;  %v10976_v56 = vld [vmem:[#allocation13_spill] sm:$0xff]  ;;  %v10981_v53 = vld [vmem:[#allocation14_spill] sm:$0xff] }
 0x151   : > { %v1664_v57 = vadd.f32 %v1663_v50, %v1662_v20  ;;  %v1764_v0 = vadd.f32 %v1763_v63, %v1762_v12  ;;  %v6687_v28 = vpop.f32.mrf.mxu1  ;;  %6890 = vmatmul.mubr.msk.bf16.gmra.mxu1 %vm723_vm3, %v10972_v32  ;;  %v1413_v54 = vadd.f32 %v1346_v8, %v1151_v6  ;;  %v10977_v63 = vld [vmem:[#allocation65_spill] sm:$0xff]  ;;  %v1769_v8 = vsel %vm1631_vm8, %v1720_v36, 0.0  ;;  %v10982_v36 = vld [vmem:[#allocation68_spill] sm:$0xff] }
 0x152   : > { %v6654_v51 = vpop.f32.mrf.mxu0  ;;  %v1665_v7 = vsel %vm1631_vm8, %v1616_v60, 0.0  ;;  %v1719_v1 = vmul.f32 %v1616_v60, %v1616_v60  ;;  %1821 = vst.msk [vmem:[%s8307_s27 + $0x88] sm:$0xff] %vm1631_vm8, %v1616_v60  ;;  %v1621_v2 = vadd.f32 %v6687_v28, %v1415_v16  ;;  %6893 = vmatprep.mubr.msk.bf16.mxu1 %vm723_vm3, %v10973_v31  ;;  %v1175_v16 = vadd.f32 %v10977_v63, %v10976_v56 }
 0x153   : > { %v1766_v33 = vadd.f32 %v1765_v55, %v1764_v0  ;;  %v1666_v47 = vadd.f32 %v1665_v7, %v1664_v57  ;;  %v1552_v22 = vpop.f32.mrf.mxu1  ;;  %v1416_v6 = vadd.f32 %v6654_v51, %v1162_v4  ;;  %v1669_v57 = vsel %vm1631_vm8, %v1618_v40, 0.0  ;;  %v10978_v55 = vld [vmem:[#allocation48_spill] sm:$0xff]  ;;  %v10979_v51 = vld [vmem:[#allocation9_spill] sm:$0xff]  ;;  %v10980_v7 = vld [vmem:[#allocation67_spill] sm:$0xff] }
 0x154   : > { %v1349_v11 = vpop.f32.mrf.mxu0  ;;  %v1767_v12 = vsel %vm1631_vm8, %v1719_v1, 0.0  ;;  %1826 = vst.msk [vmem:[%s8307_s27 + $0xb0] sm:$0xff] %vm1631_vm8, %v1621_v2  ;;  %v1619_v20 = vadd.f32 %v1552_v22, %v1413_v54  ;;  %v1167_v1 = vadd.f32 %v10980_v7, %v10979_v51  ;;  %v1178_v14 = vadd.f32 %v10982_v36, %v10981_v53  ;;  %v10983_v40 = vld [vmem:[#allocation50_spill] sm:$0xff] }
 0x155   : > { %v1668_v50 = vadd.f32 %v1667_v46, %v1666_v47  ;;  %v1768_v60 = vadd.f32 %v1767_v12, %v1766_v33  ;;  %v6688_v59 = vpop.f32.mrf.mxu1  ;;  %v1414_v0 = vadd.f32 %v1349_v11, %v1154_v29  ;;  %v1771_v29 = vsel %vm1631_vm8, %v1721_v35, 0.0  ;;  %v10986_v51 = vld [vmem:[#allocation70_spill] sm:$0xff] }
 0x156   : > { %v6657_v4 = vpop.f32.mrf.mxu0  ;;  %6860 = vmatmul.mubr.msk.bf16.gmra.mxu0 %vm723_vm3, %v10978_v55  ;;  %v1722_v28 = vmul.f32 %v1619_v20, %v1619_v20  ;;  %1824 = vst.msk [vmem:[%s8307_s27 + $0xa0] sm:$0xff] %vm1631_vm8, %v1619_v20  ;;  %v1622_v54 = vadd.f32 %v6688_v59, %v1416_v6  ;;  %v1671_v12 = vsel %vm1631_vm8, %v1619_v20, 0.0  ;;  %v1724_v56 = vmul.f32 %v1621_v2, %v1621_v2 }
 0x157   : > { %v1770_v46 = vadd.f32 %v1769_v8, %v1768_v60  ;;  %v1670_v33 = vadd.f32 %v1669_v57, %v1668_v50  ;;  %v1555_v47 = vpop.f32.mrf.mxu1  ;;  %6863 = vmatprep.mubr.msk.bf16.mxu0 %vm723_vm3, %v10983_v40  ;;  %v1419_v22 = vadd.f32 %v6657_v4, %v1175_v16  ;;  %v10984_v4 = vld [vmem:[#allocation53_spill] sm:$0xff] }
 0x158   : > { %v1362_v11 = vpop.f32.mrf.mxu0  ;;  %1827 = vst.msk [vmem:[%s8307_s27 + $0xb8] sm:$0xff] %vm1631_vm8, %v1622_v54  ;;  %v1620_v6 = vadd.f32 %v1555_v47, %v1414_v0  ;;  %v1773_v8 = vsel %vm1631_vm8, %v1722_v28, 0.0  ;;  %v10985_v0 = vld [vmem:[#allocation62_spill] sm:$0xff]  ;;  %v1675_v28 = vsel %vm1631_vm8, %v1621_v2, 0.0 }
 0x159   : > { %v1672_v63 = vadd.f32 %v1671_v12, %v1670_v33  ;;  %v1772_v59 = vadd.f32 %v1771_v29, %v1770_v46  ;;  %v6691_v50 = vpop.f32.mrf.mxu1  ;;  %6894 = vmatmul.mubr.msk.bf16.gmra.mxu1 %vm723_vm3, %v7702_v39  ;;  %v1417_v60 = vadd.f32 %v1362_v11, %v1167_v1  ;;  %v1170_v7 = vadd.f32 %v10986_v51, %v10985_v0  ;;  %v10987_v11 = vld [vmem:[#allocation64_spill] sm:$0xff]  ;;  %v10988_v12 = vld [vmem:[#allocation71_spill] sm:$0xff] }
 0x15a   : > { %v6658_v35 = vpop.f32.mrf.mxu0  ;;  %v1673_v16 = vsel %vm1631_vm8, %v1620_v6, 0.0  ;;  %v1723_v57 = vmul.f32 %v1620_v6, %v1620_v6  ;;  %1825 = vst.msk [vmem:[%s8307_s27 + $0xa8] sm:$0xff] %vm1631_vm8, %v1620_v6  ;;  %v1625_v20 = vadd.f32 %v6691_v50, %v1419_v22  ;;  %6897 = vmatprep.mubr.msk.bf16.mxu1 %vm723_vm3, %v10984_v4  ;;  %v1725_v33 = vmul.f32 %v1622_v54, %v1622_v54 }
 0x15b   : > { %v1774_v53 = vadd.f32 %v1773_v8, %v1772_v59  ;;  %v1674_v36 = vadd.f32 %v1673_v16, %v1672_v63  ;;  %v1568_v46 = vpop.f32.mrf.mxu1  ;;  %v1420_v1 = vadd.f32 %v6658_v35, %v1178_v14  ;;  %v1191_v6 = vadd.f32 %v10988_v12, %v10987_v11  ;;  %v10989_v35 = vld [vmem:[#allocation66_spill] sm:$0xff]  ;;  %v10990_v16 = vld [vmem:[#allocation69_spill] sm:$0xff] }
 0x15c   : > { %v1365_v47 = vpop.f32.mrf.mxu0  ;;  %v1775_v29 = vsel %vm1631_vm8, %v1723_v57, 0.0  ;;  %1830 = vst.msk [vmem:[%s8307_s27 + $0xd0] sm:$0xff] %vm1631_vm8, %v1625_v20  ;;  %v1623_v22 = vadd.f32 %v1568_v46, %v1417_v60  ;;  %v1777_v50 = vsel %vm1631_vm8, %v1724_v56, 0.0  ;;  %v1677_v63 = vsel %vm1631_vm8, %v1622_v54, 0.0 }
 0x15d   : > { %v1676_v0 = vadd.f32 %v1675_v28, %v1674_v36  ;;  %v1776_v51 = vadd.f32 %v1775_v29, %v1774_v53  ;;  %v6692_v2 = vpop.f32.mrf.mxu1  ;;  %v1418_v59 = vadd.f32 %v1365_v47, %v1170_v7  ;;  %v1183_v56 = vadd.f32 %v8272_v48, %v10989_v35  ;;  %v10991_v53 = vld [vmem:[#allocation16_spill] sm:$0xff] }
 0x15e   : > { %v6661_v14 = vpop.f32.mrf.mxu0  ;;  %6864 = vmatmul.mubr.msk.bf16.gmra.mxu0 %vm723_vm3, %v5892_v34  ;;  %v1726_v8 = vmul.f32 %v1623_v22, %v1623_v22  ;;  %1828 = vst.msk [vmem:[%s8307_s27 + $0xc0] sm:$0xff] %vm1631_vm8, %v1623_v22  ;;  %v1626_v60 = vadd.f32 %v6692_v2, %v1420_v1  ;;  %v1194_v57 = vadd.f32 %v8276_v15, %v10990_v16  ;;  %v1779_v10 = vsel %vm1631_vm8, %v1725_v33, 0.0 }
 0x15f   : > { %v1778_v28 = vadd.f32 %v1777_v50, %v1776_v51  ;;  %v1678_v54 = vadd.f32 %v1677_v63, %v1676_v0  ;;  %v1571_v7 = vpop.f32.mrf.mxu1  ;;  %6903 = vmatprep.mubr.msk.bf16.mxu0 %vm723_vm3, %v10991_v53  ;;  %v1423_v43 = vadd.f32 %v6661_v14, %v1191_v6  ;;  %v1679_v36 = vsel %vm1631_vm8, %v1623_v22, 0.0  ;;  %v10992_v50 = vld [vmem:[#allocation2_spill] sm:$0xff] }
 0x160   : > { %v1378_v34 = vpop.f32.mrf.mxu0  ;;  %1831 = vst.msk [vmem:[%s8307_s27 + $0xd8] sm:$0xff] %vm1631_vm8, %v1626_v60  ;;  %v1624_v46 = vadd.f32 %v1571_v7, %v1418_v59  ;;  %v1728_v48 = vmul.f32 %v1625_v20, %v1625_v20  ;;  %v1781_v15 = vsel %vm1631_vm8, %v1726_v8, 0.0  ;;  %v1186_v0 = vadd.f32 %v8289_v18, %v8267_v41  ;;  %v8561_v41 = vld [vmem:[%s10670_s1 + $0x1c] sm:$0x3] }
 0x161   : > { %v1680_v1 = vadd.f32 %v1679_v36, %v1678_v54  ;;  %v1780_v47 = vadd.f32 %v1779_v10, %v1778_v28  ;;  %v6695_v29 = vpop.f32.mrf.mxu1  ;;  %6898 = vmatmul.mubr.msk.bf16.gmra.mxu1 %vm723_vm3, %v8340_v19  ;;  %v1421_v11 = vadd.f32 %v1378_v34, %v1183_v56  ;;  %v1683_v51 = vsel %vm1631_vm8, %v1625_v20, 0.0 }
 0x162   : > { %v6662_v33 = vpop.f32.mrf.mxu0  ;;  %v1681_v12 = vsel %vm1631_vm8, %v1624_v46, 0.0  ;;  %v1727_v6 = vmul.f32 %v1624_v46, %v1624_v46  ;;  %1829 = vst.msk [vmem:[%s8307_s27 + $0xc8] sm:$0xff] %vm1631_vm8, %v1624_v46  ;;  %v1629_v22 = vadd.f32 %v6695_v29, %v1423_v43  ;;  %6937 = vmatprep.mubr.msk.bf16.mxu1 %vm723_vm3, %v10992_v50  ;;  %v1729_v8 = vmul.f32 %v1626_v60, %v1626_v60  ;;  %v10993_v43 = vld [vmem:[#allocation10_spill] sm:$0xff] }
 0x163   : > { %v1782_v2 = vadd.f32 %v1781_v15, %v1780_v47  ;;  %v1682_v63 = vadd.f32 %v1681_v12, %v1680_v1  ;;  %v1584_v59 = vpop.f32.mrf.mxu1  ;;  %v1424_v14 = vadd.f32 %v6662_v33, %v1194_v57  ;;  %v1785_v28 = vsel %vm1631_vm8, %v1728_v48, 0.0 }
 0x164   : > { %v1381_v35 = vpop.f32.mrf.mxu0  ;;  %v1783_v56 = vsel %vm1631_vm8, %v1727_v6, 0.0  ;;  %1834 = vst.msk [vmem:[%s8307_s27 + $0xf0] sm:$0xff] %vm1631_vm8, %v1629_v22  ;;  %v1627_v16 = vadd.f32 %v1584_v59, %v1421_v11  ;;  %v1685_v18 = vsel %vm1631_vm8, %v1626_v60, 0.0  ;;  %v4164_v60 = vsel %vm772_vm0, %v8302_v24, 0  ;;  %v10994_v6 = vld [vmem:[#allocation3_spill] sm:$0xff] }
 0x165   : > { %v1684_v54 = vadd.f32 %v1683_v51, %v1682_v63  ;;  %v1784_v7 = vadd.f32 %v1783_v56, %v1782_v2  ;;  %v6696_v10 = vpop.f32.mrf.mxu1  ;;  %v1422_v20 = vadd.f32 %v1381_v35, %v1186_v0  ;;  %v1787_v47 = vsel %vm1631_vm8, %v1729_v8, 0.0  ;;  %v10995_v59 = vld [vmem:[#allocation7_spill] sm:$0xff] }
 0x166   : > { %v8564_v57 = vpop.f32.mrf.mxu0  ;;  %6904 = vmatmul.mubr.msk.bf16.vlgmr.msra.gmra.mxu0 %vm723_vm3, %v10993_v43  ;;  %v1730_v34 = vmul.f32 %v1627_v16, %v1627_v16  ;;  %1832 = vst.msk [vmem:[%s8307_s27 + $0xe0] sm:$0xff] %vm1631_vm8, %v1627_v16  ;;  %v1630_v36 = vadd.f32 %v6696_v10, %v1424_v14  ;;  %v1687_v29 = vsel %vm1631_vm8, %v1627_v16, 0.0  ;;  %v1732_v50 = vmul.f32 %v1629_v22, %v1629_v22 }
 0x167   : > { %v1786_v46 = vadd.f32 %v1785_v28, %v1784_v7  ;;  %v1686_v48 = vadd.f32 %v1685_v18, %v1684_v54  ;;  %v1587_v1 = vpop.f32.mrf.mxu1  ;;  %6907 = vmatprep.mubr.msk.bf16.mxu0 %vm723_vm3, %v7348_v42  ;;  %6970 = vmatpush3.bf16.msra.mxu0 %v8375_v61  ;;  %v8586_v61 = vld [vmem:[%s10670_s1 + $0x1e] sm:$0x3]  ;;  %v1691_v56 = vsel %vm1631_vm8, %v1629_v22, 0.0 }
 0x168   : > { %v8576_v15 = vpop.f32.mrf.mxu0  ;;  %1835 = vst.msk [vmem:[%s8307_s27 + $0xf8] sm:$0xff] %vm1631_vm8, %v1630_v36  ;;  %v1628_v11 = vadd.f32 %v1587_v1, %v1422_v20  ;;  %7119 = vmatprep.subr.msk.bf16.mxu0 %vm772_vm0, %v8561_v41  ;;  %v1789_v0 = vsel %vm1631_vm8, %v1730_v34, 0.0  ;;  %v1733_v16 = vmul.f32 %v1630_v36, %v1630_v36  ;;  %v1793_v20 = vsel %vm1631_vm8, %v1732_v50, 0.0 }
 0x169   : > { %v1688_v33 = vadd.f32 %v1687_v29, %v1686_v48  ;;  %v1788_v24 = vadd.f32 %v1787_v47, %v1786_v46  ;;  %v8588_v12 = vpop.f32.mrf.mxu1  ;;  %6938 = vmatmul.mubr.msk.bf16.vlgmr.msra.gmra.mxu1 %vm723_vm3, %v10994_v6  ;;  %v1693_v34 = vsel %vm1631_vm8, %v1630_v36, 0.0 }
 0x16a   : > { %v8593_v51 = vpop.f32.mrf.mxu0  ;;  %v1689_v2 = vsel %vm1631_vm8, %v1628_v11, 0.0  ;;  %v1731_v63 = vmul.f32 %v1628_v11, %v1628_v11  ;;  %1833 = vst.msk [vmem:[%s8307_s27 + $0xe8] sm:$0xff] %vm1631_vm8, %v1628_v11  ;;  %7004 = vmatpush3.bf16.msra.mxu1 %v4164_v60  ;;  %6941 = vmatprep.mubr.msk.bf16.mxu1 %vm723_vm3, %v10995_v59  ;;  %v1795_v60 = vsel %vm1631_vm8, %v1733_v16, 0.0  ;;  %v10998_v11 = vld [vmem:[#allocation12_spill] sm:$0xff] }
 0x16b   : > { %v1790_v14 = vadd.f32 %v1789_v0, %v1788_v24  ;;  %v1690_v8 = vadd.f32 %v1689_v2, %v1688_v33  ;;  %v8600_v35 = vpop.f32.mrf.mxu1  ;;  %7120 = vmatprep.subr.msk.bf16.mxu1 %vm772_vm0, %v8586_v61 }
 0x16c   : > { %v8605_v28 = vpop.f32.mrf.mxu0  ;;  %v1791_v54 = vsel %vm1631_vm8, %v1731_v63, 0.0 }
 0x16d   : > { %v1692_v7 = vadd.f32 %v1691_v56, %v1690_v8  ;;  %v1792_v10 = vadd.f32 %v1791_v54, %v1790_v14  ;;  %v8608_v18 = vpop.f32.mrf.mxu1 }
 0x16e   : > { %v8612_v46 = vpop.f32.mrf.mxu0  ;;  %6908 = vmatmul.mubr.msk.bf16.gmra.mxu0 %vm723_vm3, %v7376_v13 }
 0x16f   : > { %v8616_v48 = vadd.f32 %v1693_v34, %v1692_v7  ;;  %v1794_v22 = vadd.f32 %v1793_v20, %v1792_v10  ;;  %v8618_v1 = vpop.f32.mrf.mxu1  ;;  %6911 = vmatprep.mubr.msk.bf16.mxu0 %vm723_vm3, %v10873_v52 }
 0x170   : > { %v8623_v47 = vpop.f32.mrf.mxu0 }
 0x171   : > { %10996 = vst [vmem:[#allocation41_spill] sm:$0xff] %v8616_v48  ;;  %v8625_v29 = vadd.f32 %v1795_v60, %v1794_v22  ;;  %v8627_v36 = vpop.f32.mrf.mxu1  ;;  %6942 = vmatmul.mubr.msk.bf16.gmra.mxu1 %vm723_vm3, %v10998_v11 }
 0x172   : > { %v8631_v33 = vpop.f32.mrf.mxu0  ;;  %6945 = vmatprep.mubr.msk.bf16.mxu1 %vm723_vm3, %v10880_v3 }
 0x173   : > { %10997 = vst [vmem:[#allocation24_spill] sm:$0xff] %v8625_v29  ;;  %v8635_v24 = vpop.f32.mrf.mxu1 }
 0x174   : > { %v8637_v6 = vpop.f32.mrf.mxu0 }
 0x175   : > { %v8639_v50 = vpop.f32.mrf.mxu1 }
 0x176   : > { %v8641_v0 = vpop.f32.mrf.mxu0  ;;  %6912 = vmatmul.mubr.msk.bf16.gmra.mxu0 %vm723_vm3, %v10874_v9 }
 0x177   : > { %v8645_v2 = vpop.f32.mrf.mxu1  ;;  %6915 = vmatprep.mubr.msk.bf16.mxu0 %vm723_vm3, %v10885_v44 }
 0x178   : > { %v8649_v63 = vpop.f32.mrf.mxu0 }
 0x179   : > { %v8651_v59 = vpop.f32.mrf.mxu1  ;;  %6946 = vmatmul.mubr.msk.bf16.gmra.mxu1 %vm723_vm3, %v10883_v30 }
 0x17a   : > { %v8655_v3 = vpop.f32.mrf.mxu0  ;;  %6949 = vmatprep.mubr.msk.bf16.mxu1 %vm723_vm3, %v10888_v17 }
 0x17b   : > { %v8659_v14 = vpop.f32.mrf.mxu1 }
 0x17c   : > { %v8661_v8 = vpop.f32.mrf.mxu0 }
 0x17d   : > { %v8663_v56 = vpop.f32.mrf.mxu1 }
 0x17e   : > { %v8665_v16 = vpop.f32.mrf.mxu0  ;;  %6916 = vmatmul.mubr.msk.bf16.gmra.mxu0 %vm723_vm3, %v10887_v21 }
 0x17f   : > { %v8669_v54 = vpop.f32.mrf.mxu1  ;;  %6919 = vmatprep.mubr.msk.bf16.mxu0 %vm723_vm3, %v10890_v26 }
 0x180   : > { %v8673_v30 = vpop.f32.mrf.mxu0 }
 0x181   : > { %v8675_v7 = vpop.f32.mrf.mxu1  ;;  %6950 = vmatmul.mubr.msk.bf16.gmra.mxu1 %vm723_vm3, %v10889_v37 }
 0x182   : > { %v8679_v17 = vpop.f32.mrf.mxu0  ;;  %6953 = vmatprep.mubr.msk.bf16.mxu1 %vm723_vm3, %v10892_v58 }
 0x183   : > { %v8683_v10 = vpop.f32.mrf.mxu1 }
 0x184   : > { %v8685_v20 = vpop.f32.mrf.mxu0 }
 0x185   : > { %v8687_v34 = vpop.f32.mrf.mxu1 }
 0x186   : > { %v8689_v22 = vpop.f32.mrf.mxu0  ;;  %6920 = vmatmul.mubr.msk.bf16.gmra.mxu0 %vm723_vm3, %v10891_v45 }
 0x187   : > { %v8693_v60 = vpop.f32.mrf.mxu1  ;;  %6923 = vmatprep.mubr.msk.bf16.mxu0 %vm723_vm3, %v10960_v62 }
 0x188   : > { %v8697_v37 = vpop.f32.mrf.mxu0 }
 0x189   : > { %10999 = vst [vmem:[#allocation43_spill] sm:$0xff] %v8697_v37  ;;  %v8699_v11 = vpop.f32.mrf.mxu1  ;;  %6954 = vmatmul.mubr.msk.bf16.gmra.mxu1 %vm723_vm3, %v10951_v38 }
 0x18a   : > { %v8703_v58 = vpop.f32.mrf.mxu0  ;;  %6957 = vmatprep.mubr.msk.bf16.mxu1 %vm723_vm3, %v10955_v27 }
 0x18b   : > { %11000 = vst [vmem:[#allocation21_spill] sm:$0xff] %v8703_v58  ;;  %v8707_v29 = vpop.f32.mrf.mxu1 }
 0x18c   : > { %v8709_v48 = vpop.f32.mrf.mxu0 }
 0x18d   : > { %11001 = vst [vmem:[#allocation27_spill] sm:$0xff] %v8709_v48  ;;  %v8711_v53 = vpop.f32.mrf.mxu1 }
 0x18e   : > { %v8713_v19 = vpop.f32.mrf.mxu0  ;;  %6924 = vmatmul.mubr.msk.bf16.gmra.mxu0 %vm723_vm3, %v10961_v5 }
 0x18f   : > { %11002 = vst [vmem:[#allocation17_spill] sm:$0xff] %v8713_v19  ;;  %v8717_v37 = vpop.f32.mrf.mxu1  ;;  %6927 = vmatprep.mubr.msk.bf16.mxu0 %vm723_vm3, %v10972_v32 }
 0x190   : > { %11003 = vst [vmem:[#allocation23_spill] sm:$0xff] %v8717_v37  ;;  %v8721_v38 = vpop.f32.mrf.mxu0 }
 0x191   : > { %11004 = vst [vmem:[#allocation45_spill] sm:$0xff] %v8721_v38  ;;  %v8723_v58 = vpop.f32.mrf.mxu1  ;;  %6958 = vmatmul.mubr.msk.bf16.gmra.mxu1 %vm723_vm3, %v10959_v23 }
 0x192   : > { %v8727_v27 = vpop.f32.mrf.mxu0  ;;  %6961 = vmatprep.mubr.msk.bf16.mxu1 %vm723_vm3, %v10966_v49 }
 0x193   : > { %11005 = vst [vmem:[#allocation29_spill] sm:$0xff] %v8727_v27  ;;  %v8731_v19 = vpop.f32.mrf.mxu1 }
 0x194   : > { %v8733_v48 = vpop.f32.mrf.mxu0 }
 0x195   : > { %11006 = vst [vmem:[#allocation47_spill] sm:$0xff] %v8733_v48  ;;  %v8735_v37 = vpop.f32.mrf.mxu1 }
 0x196   : > { %v8737_v5 = vpop.f32.mrf.mxu0  ;;  %6928 = vmatmul.mubr.msk.bf16.gmra.mxu0 %vm723_vm3, %v10973_v31 }
 0x197   : > { %11007 = vst [vmem:[#allocation19_spill] sm:$0xff] %v8737_v5  ;;  %v8741_v38 = vpop.f32.mrf.mxu1  ;;  %6931 = vmatprep.mubr.msk.bf16.mxu0 %vm723_vm3, %v7702_v39 }
 0x198   : > { %11008 = vst [vmem:[#allocation4_spill] sm:$0xff] %v8741_v38  ;;  %v8745_v23 = vpop.f32.mrf.mxu0 }
 0x199   : > { %11009 = vst [vmem:[#allocation33_spill] sm:$0xff] %v8745_v23  ;;  %v8747_v27 = vpop.f32.mrf.mxu1  ;;  %6962 = vmatmul.mubr.msk.bf16.gmra.mxu1 %vm723_vm3, %v10971_v25 }
 0x19a   : > { %11010 = vst [vmem:[#allocation36_spill] sm:$0xff] %v8747_v27  ;;  %v8751_v49 = vpop.f32.mrf.mxu0  ;;  %6965 = vmatprep.mubr.msk.bf16.mxu1 %vm723_vm3, %v10978_v55 }
 0x19b   : > { %11011 = vst [vmem:[#allocation26_spill] sm:$0xff] %v8751_v49  ;;  %v8755_v5 = vpop.f32.mrf.mxu1 }
 0x19c   : > { %11012 = vst [vmem:[#allocation8_spill] sm:$0xff] %v8755_v5  ;;  %v8757_v48 = vpop.f32.mrf.mxu0 }
 0x19d   : > { %11013 = vst [vmem:[#allocation28_spill] sm:$0xff] %v8757_v48  ;;  %v8759_v38 = vpop.f32.mrf.mxu1 }
 0x19e   : > { %11014 = vst [vmem:[#allocation6_spill] sm:$0xff] %v8759_v38  ;;  %v8761_v39 = vpop.f32.mrf.mxu0  ;;  %6932 = vmatmul.mubr.msk.bf16.gmra.mxu0 %vm723_vm3, %v10984_v4  ;;  %v11020_v38 = vld [vmem:[#allocation55_spill] sm:$0xff] }
 0x19f   : > { %11015 = vst [vmem:[#allocation38_spill] sm:$0xff] %v8761_v39  ;;  %v8765_v23 = vpop.f32.mrf.mxu1  ;;  %6971 = vmatprep.mubr.msk.bf16.mxu0 %vm723_vm3, %v10993_v43 }
 0x1a0   : > { %11016 = vst [vmem:[#allocation31_spill] sm:$0xff] %v8765_v23  ;;  %v8769_v25 = vpop.f32.mrf.mxu0  ;;  %v4330_v23 = vsel %vm772_vm0, %v8561_v41, 0  ;;  %v4528_v41 = vsel %vm772_vm0, %v8586_v61, 0  ;;  %v11026_v61 = vld [vmem:[#allocation22_spill] sm:$0xff] }
 0x1a1   : > { %11017 = vst [vmem:[#allocation11_spill] sm:$0xff] %v8769_v25  ;;  %v8771_v55 = vpop.f32.mrf.mxu1  ;;  %6966 = vmatmul.mubr.msk.bf16.gmra.mxu1 %vm723_vm3, %v10983_v40  ;;  %v7151_v25 = vld [vmem:[%s7219_s28 + $0xd0] sm:$0xf]  ;;  %v2277_v40 = vadd.f32 %v8588_v12, %v8564_v57 }
 0x1a2   : > { %11018 = vst [vmem:[#allocation25_spill] sm:$0xff] %v8771_v55  ;;  %v8775_v48 = vpop.f32.mrf.mxu0  ;;  %7005 = vmatprep.mubr.msk.bf16.mxu1 %vm723_vm3, %v11020_v38  ;;  %v3984_v55 = vrot.slane %v7151_v25, 5  ;;  %v2269_v25 = vadd.f32 %v8600_v35, %v8576_v15  ;;  %v11025_v12 = vld [vmem:[#allocation20_spill] sm:$0xff] }
 0x1a3   : > { %11019 = vst [vmem:[#allocation61_spill] sm:$0xff] %v8775_v48  ;;  %v8779_v39 = vpop.f32.mrf.mxu1  ;;  %v7153_v15 = vld [vmem:[%s7219_s28 + $0xd4] sm:$0x1] }
 0x1a4   : > { %11021 = vst [vmem:[#allocation44_spill] sm:$0xff] %v8779_v39  ;;  %v8781_v4 = vpop.f32.mrf.mxu0  ;;  %v3986_v48 = vrot.slane %v3984_v55, 4  ;;  %v3987_v35 = vrot.slane %v7153_v15, 5  ;;  %v11028_v15 = vld [vmem:[#allocation40_spill] sm:$0xff] }
 0x1a5   : > { %11022 = vst [vmem:[#allocation46_spill] sm:$0xff] %v8781_v4  ;;  %v8785_v43 = vpop.f32.mrf.mxu1 }
 0x1a6   : > { %11023 = vst [vmem:[#allocation49_spill] sm:$0xff] %v8785_v43  ;;  %v6769_v49 = vpop.f32.mrf.mxu0  ;;  %6972 = vmatmul.mubr.msk.bf16.vlgmr.msra.gmra.mxu0 %vm723_vm3, %v7348_v42  ;;  %v7152_v42 = vld [vmem:[%s7219_s28 + $0xcc] sm:$0xf] }
 0x1a7   : > { %v8792_v38 = vpop.f32.mrf.mxu1  ;;  %6975 = vmatprep.mubr.msk.bf16.mxu0 %vm723_vm3, %v7376_v13  ;;  %7038 = vmatpush3.bf16.msra.mxu0 %v4330_v23  ;;  %v2577_v4 = vadd.f32 %v6769_v49, %v2277_v40  ;;  %v2280_v23 = vadd.f32 %v8608_v18, %v8593_v51  ;;  %v2272_v40 = vadd.f32 %v8618_v1, %v8605_v28 }
 0x1a8   : > { %11024 = vst [vmem:[#allocation5_spill] sm:$0xff] %v8792_v38  ;;  %v2448_v43 = vpop.f32.mrf.mxu0  ;;  %v5992_v38 = vrot.slane %v7152_v42, 9  ;;  %v2293_v18 = vadd.f32 %v8627_v36, %v8612_v46  ;;  %v2285_v46 = vadd.f32 %v8635_v24, %v8623_v47 }
 0x1a9   : > { %v6803_v57 = vpop.f32.mrf.mxu1  ;;  %7006 = vmatmul.mubr.msk.bf16.vlgmr.msra.gmra.mxu1 %vm723_vm3, %v11025_v12  ;;  %v2575_v13 = vadd.f32 %v2448_v43, %v2269_v25 }
 0x1aa   : > { %v6770_v39 = vpop.f32.mrf.mxu0  ;;  %v2775_v5 = vadd.f32 %v6803_v57, %v2577_v4  ;;  %7072 = vmatpush3.bf16.msra.mxu1 %v4528_v41  ;;  %7009 = vmatprep.mubr.msk.bf16.mxu1 %vm723_vm3, %v11026_v61  ;;  %v8814_v4 = vsel %vm7719_vm7, %v5992_v38, %v3984_v55  ;;  %v2296_v57 = vadd.f32 %v8639_v50, %v8631_v33  ;;  %v11029_v33 = vld [vmem:[#allocation56_spill] sm:$0xff] }
 0x1ab   : > { %v2646_v49 = vpop.f32.mrf.mxu1  ;;  %v2578_v12 = vadd.f32 %v6770_v39, %v2280_v23  ;;  %v2288_v50 = vadd.f32 %v8645_v2, %v8637_v6 }
 0x1ac   : > { %v2451_v42 = vpop.f32.mrf.mxu0  ;;  %5860 = vst.msk [vmem:[%s8307_s27 + $0x110] sm:$0xff] %vm1631_vm8, %v2775_v5  ;;  %v2773_v27 = vadd.f32 %v2646_v49, %v2575_v13  ;;  %v8824_v13 = vsel %vm7719_vm7, %v3986_v48, %v3987_v35 }
 0x1ad   : > { %v6804_v43 = vpop.f32.mrf.mxu1  ;;  %v2576_v41 = vadd.f32 %v2451_v42, %v2272_v40  ;;  %v6011_v35 = vcombine.low %v8814_v4, %v8824_v13 }
 0x1ae   : > { %v6773_v25 = vpop.f32.mrf.mxu0  ;;  %6976 = vmatmul.mubr.msk.bf16.gmra.mxu0 %vm723_vm3, %v10873_v52  ;;  %5858 = vst.msk [vmem:[%s8307_s27 + $0x100] sm:$0xff] %vm1631_vm8, %v2773_v27  ;;  %v2776_v39 = vadd.f32 %v6804_v43, %v2578_v12  ;;  %v2875_v28 = vmul.f32 %v2773_v27, %v2773_v27  ;;  %v2877_v12 = vmul.f32 %v2775_v5, %v2775_v5  ;;  %v2805_v48 = vsel %vm1631_vm8, %v2773_v27, 0.0 }
 0x1af   : > { %v2649_v1 = vpop.f32.mrf.mxu1  ;;  %6979 = vmatprep.mubr.msk.bf16.mxu0 %vm723_vm3, %v10874_v9  ;;  %v2581_v36 = vadd.f32 %v6773_v25, %v2293_v18  ;;  %v2808_v27 = vsel %vm1631_vm8, %v2775_v5, 0.0 }
 0x1b0   : > { %v2464_v38 = vpop.f32.mrf.mxu0  ;;  %5861 = vst.msk [vmem:[%s8307_s27 + $0x118] sm:$0xff] %vm1631_vm8, %v2776_v39  ;;  %v2774_v55 = vadd.f32 %v2649_v1, %v2576_v41  ;;  %v2907_v43 = vsel %vm1631_vm8, %v2875_v28, 0.0  ;;  %v2878_v25 = vmul.f32 %v2776_v39, %v2776_v39  ;;  %v2910_v6 = vsel %vm1631_vm8, %v2877_v12, 0.0 }
 0x1b1   : > { %v6807_v23 = vpop.f32.mrf.mxu1  ;;  %7010 = vmatmul.mubr.msk.bf16.gmra.mxu1 %vm723_vm3, %v11028_v15  ;;  %v2579_v49 = vadd.f32 %v2464_v38, %v2285_v46  ;;  %v2309_v38 = vadd.f32 %v8651_v59, %v8641_v0  ;;  %v2810_v28 = vsel %vm1631_vm8, %v2776_v39, 0.0  ;;  %v2301_v0 = vadd.f32 %v8659_v14, %v8649_v63 }
 0x1b2   : > { %v6774_v47 = vpop.f32.mrf.mxu0  ;;  %v2806_v24 = vsel %vm1631_vm8, %v2774_v55, 0.0  ;;  %v2876_v40 = vmul.f32 %v2774_v55, %v2774_v55  ;;  %5859 = vst.msk [vmem:[%s8307_s27 + $0x108] sm:$0xff] %vm1631_vm8, %v2774_v55  ;;  %v2779_v42 = vadd.f32 %v6807_v23, %v2581_v36  ;;  %7013 = vmatprep.mubr.msk.bf16.mxu1 %vm723_vm3, %v11029_v33  ;;  %v2312_v59 = vadd.f32 %v8663_v56, %v8655_v3 }
 0x1b3   : > { %v2807_v51 = vadd.f32 %v2806_v24, %v2805_v48  ;;  %v2662_v18 = vpop.f32.mrf.mxu1  ;;  %v2582_v41 = vadd.f32 %v6774_v47, %v2296_v57  ;;  %v2912_v39 = vsel %vm1631_vm8, %v2878_v25, 0.0 }
 0x1b4   : > { %v2467_v1 = vpop.f32.mrf.mxu0  ;;  %v2908_v46 = vsel %vm1631_vm8, %v2876_v40, 0.0  ;;  %5864 = vst.msk [vmem:[%s8307_s27 + $0x130] sm:$0xff] %vm1631_vm8, %v2779_v42  ;;  %v2777_v36 = vadd.f32 %v2662_v18, %v2579_v49  ;;  %v2881_v63 = vmul.f32 %v2779_v42, %v2779_v42  ;;  %v11030_v18 = vld [vmem:[#allocation57_spill] sm:$0xff] }
 0x1b5   : > { %v2809_v2 = vadd.f32 %v2808_v27, %v2807_v51  ;;  %v2909_v5 = vadd.f32 %v2908_v46, %v2907_v43  ;;  %v6808_v55 = vpop.f32.mrf.mxu1  ;;  %v2580_v48 = vadd.f32 %v2467_v1, %v2288_v50 }
 0x1b6   : > { %v6777_v57 = vpop.f32.mrf.mxu0  ;;  %6980 = vmatmul.mubr.msk.bf16.gmra.mxu0 %vm723_vm3, %v10885_v44  ;;  %v2879_v23 = vmul.f32 %v2777_v36, %v2777_v36  ;;  %5862 = vst.msk [vmem:[%s8307_s27 + $0x120] sm:$0xff] %vm1631_vm8, %v2777_v36  ;;  %v2780_v49 = vadd.f32 %v6808_v55, %v2582_v41  ;;  %v2812_v27 = vsel %vm1631_vm8, %v2777_v36, 0.0 }
 0x1b7   : > { %v2911_v12 = vadd.f32 %v2910_v6, %v2909_v5  ;;  %v2811_v47 = vadd.f32 %v2810_v28, %v2809_v2  ;;  %v2665_v24 = vpop.f32.mrf.mxu1  ;;  %6983 = vmatprep.mubr.msk.bf16.mxu0 %vm723_vm3, %v10887_v21  ;;  %v2585_v40 = vadd.f32 %v6777_v57, %v2309_v38  ;;  %v11031_v38 = vld [vmem:[#allocation58_spill] sm:$0xff]  ;;  %v2304_v6 = vadd.f32 %v8669_v54, %v8661_v8 }
 0x1b8   : > { %v2480_v50 = vpop.f32.mrf.mxu0  ;;  %5865 = vst.msk [vmem:[%s8307_s27 + $0x138] sm:$0xff] %vm1631_vm8, %v2780_v49  ;;  %v2778_v43 = vadd.f32 %v2665_v24, %v2580_v48  ;;  %v2914_v3 = vsel %vm1631_vm8, %v2879_v23, 0.0  ;;  %v2816_v2 = vsel %vm1631_vm8, %v2779_v42, 0.0  ;;  %v2882_v57 = vmul.f32 %v2780_v49, %v2780_v49 }
 0x1b9   : > { %v2813_v14 = vadd.f32 %v2812_v27, %v2811_v47  ;;  %v2913_v51 = vadd.f32 %v2912_v39, %v2911_v12  ;;  %v6811_v56 = vpop.f32.mrf.mxu1  ;;  %7014 = vmatmul.mubr.msk.bf16.gmra.mxu1 %vm723_vm3, %v11030_v18  ;;  %v2583_v41 = vadd.f32 %v2480_v50, %v2301_v0  ;;  %v2325_v47 = vadd.f32 %v8675_v7, %v8665_v16 }
 0x1ba   : > { %v6778_v25 = vpop.f32.mrf.mxu0  ;;  %v2814_v1 = vsel %vm1631_vm8, %v2778_v43, 0.0  ;;  %v2880_v46 = vmul.f32 %v2778_v43, %v2778_v43  ;;  %5863 = vst.msk [vmem:[%s8307_s27 + $0x128] sm:$0xff] %vm1631_vm8, %v2778_v43  ;;  %v2783_v36 = vadd.f32 %v6811_v56, %v2585_v40  ;;  %7017 = vmatprep.mubr.msk.bf16.mxu1 %vm723_vm3, %v11031_v38  ;;  %v2918_v24 = vsel %vm1631_vm8, %v2881_v63, 0.0 }
 0x1bb   : > { %v2915_v5 = vadd.f32 %v2914_v3, %v2913_v51  ;;  %v2815_v55 = vadd.f32 %v2814_v1, %v2813_v14  ;;  %v2678_v28 = vpop.f32.mrf.mxu1  ;;  %v2586_v48 = vadd.f32 %v6778_v25, %v2312_v59  ;;  %v2818_v39 = vsel %vm1631_vm8, %v2780_v49, 0.0  ;;  %v11032_v1 = vld [vmem:[#allocation59_spill] sm:$0xff] }
 0x1bc   : > { %v2483_v23 = vpop.f32.mrf.mxu0  ;;  %v2916_v0 = vsel %vm1631_vm8, %v2880_v46, 0.0  ;;  %5868 = vst.msk [vmem:[%s8307_s27 + $0x150] sm:$0xff] %vm1631_vm8, %v2783_v36  ;;  %v2781_v12 = vadd.f32 %v2678_v28, %v2583_v41  ;;  %v2317_v16 = vadd.f32 %v8683_v10, %v8673_v30  ;;  %v2328_v7 = vadd.f32 %v8687_v34, %v8679_v17  ;;  %v11033_v28 = vld [vmem:[#allocation60_spill] sm:$0xff] }
 0x1bd   : > { %v2817_v8 = vadd.f32 %v2816_v2, %v2815_v55  ;;  %v2917_v54 = vadd.f32 %v2916_v0, %v2915_v5  ;;  %v6812_v42 = vpop.f32.mrf.mxu1  ;;  %v2584_v40 = vadd.f32 %v2483_v23, %v2304_v6  ;;  %v2920_v49 = vsel %vm1631_vm8, %v2882_v57, 0.0 }
 0x1be   : > { %v6781_v59 = vpop.f32.mrf.mxu0  ;;  %6984 = vmatmul.mubr.msk.bf16.gmra.mxu0 %vm723_vm3, %v10890_v26  ;;  %v2883_v50 = vmul.f32 %v2781_v12, %v2781_v12  ;;  %5866 = vst.msk [vmem:[%s8307_s27 + $0x140] sm:$0xff] %vm1631_vm8, %v2781_v12  ;;  %v2784_v27 = vadd.f32 %v6812_v42, %v2586_v48  ;;  %v2820_v56 = vsel %vm1631_vm8, %v2781_v12, 0.0  ;;  %v2885_v30 = vmul.f32 %v2783_v36, %v2783_v36 }
 0x1bf   : > { %v2919_v43 = vadd.f32 %v2918_v24, %v2917_v54  ;;  %v2819_v63 = vadd.f32 %v2818_v39, %v2817_v8  ;;  %v2681_v14 = vpop.f32.mrf.mxu1  ;;  %6987 = vmatprep.mubr.msk.bf16.mxu0 %vm723_vm3, %v10891_v45  ;;  %v2589_v51 = vadd.f32 %v6781_v59, %v2325_v47  ;;  %v2320_v48 = vadd.f32 %v8693_v60, %v8685_v20 }
 0x1c0   : > { %v2496_v3 = vpop.f32.mrf.mxu0  ;;  %5869 = vst.msk [vmem:[%s8307_s27 + $0x158] sm:$0xff] %vm1631_vm8, %v2784_v27  ;;  %v2782_v41 = vadd.f32 %v2681_v14, %v2584_v40  ;;  %v2922_v17 = vsel %vm1631_vm8, %v2883_v50, 0.0  ;;  %v2824_v57 = vsel %vm1631_vm8, %v2783_v36, 0.0  ;;  %v2886_v24 = vmul.f32 %v2784_v27, %v2784_v27 }
 0x1c1   : > { %v2821_v10 = vadd.f32 %v2820_v56, %v2819_v63  ;;  %v2921_v25 = vadd.f32 %v2920_v49, %v2919_v43  ;;  %v6815_v34 = vpop.f32.mrf.mxu1  ;;  %7018 = vmatmul.mubr.msk.bf16.gmra.mxu1 %vm723_vm3, %v11032_v1  ;;  %v2587_v46 = vadd.f32 %v2496_v3, %v2317_v16  ;;  %v2341_v39 = vadd.f32 %v8699_v11, %v8689_v22  ;;  %v11034_v63 = vld [vmem:[#allocation43_spill] sm:$0xff]  ;;  %v11035_v11 = vld [vmem:[#allocation21_spill] sm:$0xff] }
 0x1c2   : > { %v6782_v6 = vpop.f32.mrf.mxu0  ;;  %v2822_v2 = vsel %vm1631_vm8, %v2782_v41, 0.0  ;;  %v2884_v5 = vmul.f32 %v2782_v41, %v2782_v41  ;;  %5867 = vst.msk [vmem:[%s8307_s27 + $0x148] sm:$0xff] %vm1631_vm8, %v2782_v41  ;;  %v2787_v55 = vadd.f32 %v6815_v34, %v2589_v51  ;;  %7021 = vmatprep.mubr.msk.bf16.mxu1 %vm723_vm3, %v11033_v28  ;;  %v2926_v40 = vsel %vm1631_vm8, %v2885_v30, 0.0 }
 0x1c3   : > { %v2923_v23 = vadd.f32 %v2922_v17, %v2921_v25  ;;  %v2823_v0 = vadd.f32 %v2822_v2, %v2821_v10  ;;  %v2694_v12 = vpop.f32.mrf.mxu1  ;;  %v2590_v47 = vadd.f32 %v6782_v6, %v2328_v7  ;;  %v2826_v59 = vsel %vm1631_vm8, %v2784_v27, 0.0  ;;  %v11036_v27 = vld [vmem:[#allocation42_spill] sm:$0xff] }
 0x1c4   : > { %v2499_v8 = vpop.f32.mrf.mxu0  ;;  %v2924_v54 = vsel %vm1631_vm8, %v2884_v5, 0.0  ;;  %5872 = vst.msk [vmem:[%s8307_s27 + $0x170] sm:$0xff] %vm1631_vm8, %v2787_v55  ;;  %v2785_v42 = vadd.f32 %v2694_v12, %v2587_v46  ;;  %v2333_v22 = vadd.f32 %v8707_v29, %v11034_v63  ;;  %v2344_v14 = vadd.f32 %v8711_v53, %v11035_v11  ;;  %v11037_v6 = vld [vmem:[#allocation30_spill] sm:$0xff]  ;;  %v11039_v12 = vld [vmem:[#allocation27_spill] sm:$0xff] }
 0x1c5   : > { %v2825_v20 = vadd.f32 %v2824_v57, %v2823_v0  ;;  %v2925_v60 = vadd.f32 %v2924_v54, %v2923_v23  ;;  %v6816_v36 = vpop.f32.mrf.mxu1  ;;  %v2588_v50 = vadd.f32 %v2499_v8, %v2320_v48  ;;  %v2928_v56 = vsel %vm1631_vm8, %v2886_v24, 0.0  ;;  %v11038_v0 = vld [vmem:[#allocation32_spill] sm:$0xff] }
 0x1c6   : > { %v6785_v16 = vpop.f32.mrf.mxu0  ;;  %6988 = vmatmul.mubr.msk.bf16.gmra.mxu0 %vm723_vm3, %v10960_v62  ;;  %v2887_v7 = vmul.f32 %v2785_v42, %v2785_v42  ;;  %5870 = vst.msk [vmem:[%s8307_s27 + $0x160] sm:$0xff] %vm1631_vm8, %v2785_v42  ;;  %v2788_v43 = vadd.f32 %v6816_v36, %v2590_v47  ;;  %v2828_v10 = vsel %vm1631_vm8, %v2785_v42, 0.0  ;;  %v2889_v29 = vmul.f32 %v2787_v55, %v2787_v55  ;;  %v11040_v47 = vld [vmem:[#allocation23_spill] sm:$0xff] }
 0x1c7   : > { %v2927_v49 = vadd.f32 %v2926_v40, %v2925_v60  ;;  %v2827_v51 = vadd.f32 %v2826_v59, %v2825_v20  ;;  %v2697_v3 = vpop.f32.mrf.mxu1  ;;  %6991 = vmatprep.mubr.msk.bf16.mxu0 %vm723_vm3, %v11036_v27  ;;  %v2593_v41 = vadd.f32 %v6785_v16, %v2341_v39  ;;  %v2336_v24 = vadd.f32 %v11040_v47, %v11039_v12 }
 0x1c8   : > { %v2512_v30 = vpop.f32.mrf.mxu0  ;;  %5873 = vst.msk [vmem:[%s8307_s27 + $0x178] sm:$0xff] %vm1631_vm8, %v2788_v43  ;;  %v2786_v25 = vadd.f32 %v2697_v3, %v2588_v50  ;;  %v2930_v53 = vsel %vm1631_vm8, %v2887_v7, 0.0  ;;  %v2832_v8 = vsel %vm1631_vm8, %v2787_v55, 0.0  ;;  %v2890_v20 = vmul.f32 %v2788_v43, %v2788_v43  ;;  %v11041_v50 = vld [vmem:[#allocation17_spill] sm:$0xff] }
 0x1c9   : > { %v2829_v17 = vadd.f32 %v2828_v10, %v2827_v51  ;;  %v2929_v34 = vadd.f32 %v2928_v56, %v2927_v49  ;;  %v6819_v46 = vpop.f32.mrf.mxu1  ;;  %7022 = vmatmul.mubr.msk.bf16.gmra.mxu1 %vm723_vm3, %v11037_v6  ;;  %v2591_v2 = vadd.f32 %v2512_v30, %v2333_v22  ;;  %v2357_v16 = vadd.f32 %v8723_v58, %v11041_v50  ;;  %v11042_v56 = vld [vmem:[#allocation45_spill] sm:$0xff] }
 0x1ca   : > { %v6786_v5 = vpop.f32.mrf.mxu0  ;;  %v2830_v48 = vsel %vm1631_vm8, %v2786_v25, 0.0  ;;  %v2888_v57 = vmul.f32 %v2786_v25, %v2786_v25  ;;  %5871 = vst.msk [vmem:[%s8307_s27 + $0x168] sm:$0xff] %vm1631_vm8, %v2786_v25  ;;  %v2791_v23 = vadd.f32 %v6819_v46, %v2593_v41  ;;  %7025 = vmatprep.mubr.msk.bf16.mxu1 %vm723_vm3, %v11038_v0  ;;  %v2934_v7 = vsel %vm1631_vm8, %v2889_v29, 0.0  ;;  %v11043_v41 = vld [vmem:[#allocation29_spill] sm:$0xff] }
 0x1cb   : > { %v2931_v54 = vadd.f32 %v2930_v53, %v2929_v34  ;;  %v2831_v42 = vadd.f32 %v2830_v48, %v2829_v17  ;;  %v2710_v39 = vpop.f32.mrf.mxu1  ;;  %v2594_v40 = vadd.f32 %v6786_v5, %v2344_v14  ;;  %v2834_v11 = vsel %vm1631_vm8, %v2788_v43, 0.0 }
 0x1cc   : > { %v2515_v60 = vpop.f32.mrf.mxu0  ;;  %v2932_v36 = vsel %vm1631_vm8, %v2888_v57, 0.0  ;;  %5876 = vst.msk [vmem:[%s8307_s27 + $0x190] sm:$0xff] %vm1631_vm8, %v2791_v23  ;;  %v2789_v59 = vadd.f32 %v2710_v39, %v2591_v2  ;;  %v2349_v58 = vadd.f32 %v8731_v19, %v11042_v56  ;;  %v2360_v30 = vadd.f32 %v8735_v37, %v11043_v41  ;;  %v11044_v57 = vld [vmem:[#allocation34_spill] sm:$0xff]  ;;  %v11046_v39 = vld [vmem:[#allocation47_spill] sm:$0xff] }
 0x1cd   : > { %v2833_v63 = vadd.f32 %v2832_v8, %v2831_v42  ;;  %v2933_v22 = vadd.f32 %v2932_v36, %v2931_v54  ;;  %v6820_v55 = vpop.f32.mrf.mxu1  ;;  %v2592_v49 = vadd.f32 %v2515_v60, %v2336_v24  ;;  %v2936_v43 = vsel %vm1631_vm8, %v2890_v20, 0.0  ;;  %v11045_v42 = vld [vmem:[#allocation35_spill] sm:$0xff] }
 0x1ce   : > { %v6789_v14 = vpop.f32.mrf.mxu0  ;;  %6992 = vmatmul.mubr.msk.bf16.gmra.mxu0 %vm723_vm3, %v10972_v32  ;;  %v2891_v51 = vmul.f32 %v2789_v59, %v2789_v59  ;;  %5874 = vst.msk [vmem:[%s8307_s27 + $0x180] sm:$0xff] %vm1631_vm8, %v2789_v59  ;;  %v2792_v3 = vadd.f32 %v6820_v55, %v2594_v40  ;;  %v2836_v53 = vsel %vm1631_vm8, %v2789_v59, 0.0  ;;  %v2893_v19 = vmul.f32 %v2791_v23, %v2791_v23  ;;  %v11047_v40 = vld [vmem:[#allocation4_spill] sm:$0xff] }
 0x1cf   : > { %v2935_v10 = vadd.f32 %v2934_v7, %v2933_v22  ;;  %v2835_v25 = vadd.f32 %v2834_v11, %v2833_v63  ;;  %v2713_v29 = vpop.f32.mrf.mxu1  ;;  %6995 = vmatprep.mubr.msk.bf16.mxu0 %vm723_vm3, %v10973_v31  ;;  %v2597_v17 = vadd.f32 %v6789_v14, %v2357_v16  ;;  %v2352_v20 = vadd.f32 %v11047_v40, %v11046_v39  ;;  %v11048_v11 = vld [vmem:[#allocation19_spill] sm:$0xff] }
 0x1d0   : > { %v2528_v34 = vpop.f32.mrf.mxu0  ;;  %5877 = vst.msk [vmem:[%s8307_s27 + $0x198] sm:$0xff] %vm1631_vm8, %v2792_v3  ;;  %v2790_v46 = vadd.f32 %v2713_v29, %v2592_v49  ;;  %v2938_v37 = vsel %vm1631_vm8, %v2891_v51, 0.0  ;;  %v2840_v60 = vsel %vm1631_vm8, %v2791_v23, 0.0  ;;  %v2894_v7 = vmul.f32 %v2792_v3, %v2792_v3  ;;  %v11049_v49 = vld [vmem:[#allocation36_spill] sm:$0xff] }
 0x1d1   : > { %v2837_v2 = vadd.f32 %v2836_v53, %v2835_v25  ;;  %v2937_v5 = vadd.f32 %v2936_v43, %v2935_v10  ;;  %v6823_v48 = vpop.f32.mrf.mxu1  ;;  %7026 = vmatmul.mubr.msk.bf16.gmra.mxu1 %vm723_vm3, %v11044_v57  ;;  %v2595_v12 = vadd.f32 %v2528_v34, %v2349_v58  ;;  %v2373_v14 = vadd.f32 %v11049_v49, %v11048_v11  ;;  %v11050_v25 = vld [vmem:[#allocation51_spill] sm:$0xff]  ;;  %v11052_v34 = vld [vmem:[#allocation8_spill] sm:$0xff] }
 0x1d2   : > { %v6790_v47 = vpop.f32.mrf.mxu0  ;;  %v2838_v24 = vsel %vm1631_vm8, %v2790_v46, 0.0  ;;  %v2892_v8 = vmul.f32 %v2790_v46, %v2790_v46  ;;  %5875 = vst.msk [vmem:[%s8307_s27 + $0x188] sm:$0xff] %vm1631_vm8, %v2790_v46  ;;  %v2795_v54 = vadd.f32 %v6823_v48, %v2597_v17  ;;  %7029 = vmatprep.mubr.msk.bf16.mxu1 %vm723_vm3, %v11045_v42  ;;  %v2942_v51 = vsel %vm1631_vm8, %v2893_v19, 0.0  ;;  %v11051_v17 = vld [vmem:[#allocation33_spill] sm:$0xff]  ;;  %v11053_v46 = vld [vmem:[#allocation26_spill] sm:$0xff]  ;;  %v11057_v11 = vld [vmem:[#allocation39_spill] sm:$0xff] }
 0x1d3   : > { %v2939_v36 = vadd.f32 %v2938_v37, %v2937_v5  ;;  %v2839_v59 = vadd.f32 %v2838_v24, %v2837_v2  ;;  %v2726_v50 = vpop.f32.mrf.mxu1  ;;  %v2598_v16 = vadd.f32 %v6790_v47, %v2360_v30  ;;  %v2842_v41 = vsel %vm1631_vm8, %v2792_v3, 0.0  ;;  %v11054_v19 = vld [vmem:[#allocation6_spill] sm:$0xff]  ;;  %v11055_v3 = vld [vmem:[#allocation53_spill] sm:$0xff]  ;;  %v11058_v49 = vld [vmem:[#allocation28_spill] sm:$0xff] }
 0x1d4   : > { %v2531_v63 = vpop.f32.mrf.mxu0  ;;  %v2940_v22 = vsel %vm1631_vm8, %v2892_v8, 0.0  ;;  %5880 = vst.msk [vmem:[%s8307_s27 + $0x1b0] sm:$0xff] %vm1631_vm8, %v2795_v54  ;;  %v2793_v55 = vadd.f32 %v2726_v50, %v2595_v12  ;;  %v2365_v53 = vadd.f32 %v11052_v34, %v11051_v17  ;;  %v2376_v2 = vadd.f32 %v11054_v19, %v11053_v46  ;;  %v11056_v50 = vld [vmem:[#allocation37_spill] sm:$0xff] }
 0x1d5   : > { %v2841_v56 = vadd.f32 %v2840_v60, %v2839_v59  ;;  %v2941_v58 = vadd.f32 %v2940_v22, %v2939_v36  ;;  %v6824_v23 = vpop.f32.mrf.mxu1  ;;  %v2596_v10 = vadd.f32 %v2531_v63, %v2352_v20  ;;  %v2944_v12 = vsel %vm1631_vm8, %v2894_v7, 0.0  ;;  %v11061_v46 = vld [vmem:[#allocation25_spill] sm:$0xff] }
 0x1d6   : > { %v6793_v30 = vpop.f32.mrf.mxu0  ;;  %6996 = vmatmul.mubr.msk.bf16.gmra.mxu0 %vm723_vm3, %v11050_v25  ;;  %v2895_v29 = vmul.f32 %v2793_v55, %v2793_v55  ;;  %5878 = vst.msk [vmem:[%s8307_s27 + $0x1a0] sm:$0xff] %vm1631_vm8, %v2793_v55  ;;  %v2796_v43 = vadd.f32 %v6824_v23, %v2598_v16  ;;  %v2844_v8 = vsel %vm1631_vm8, %v2793_v55, 0.0  ;;  %v2897_v40 = vmul.f32 %v2795_v54, %v2795_v54 }
 0x1d7   : > { %v2943_v5 = vadd.f32 %v2942_v51, %v2941_v58  ;;  %v2843_v37 = vadd.f32 %v2842_v41, %v2841_v56  ;;  %v2729_v48 = vpop.f32.mrf.mxu1  ;;  %6999 = vmatprep.mubr.msk.bf16.mxu0 %vm723_vm3, %v11055_v3  ;;  %v2601_v47 = vadd.f32 %v6793_v30, %v2373_v14  ;;  %v11059_v14 = vld [vmem:[#allocation31_spill] sm:$0xff]  ;;  %v2848_v56 = vsel %vm1631_vm8, %v2795_v54, 0.0 }
 0x1d8   : > { %v2544_v24 = vpop.f32.mrf.mxu0  ;;  %5881 = vst.msk [vmem:[%s8307_s27 + $0x1b8] sm:$0xff] %vm1631_vm8, %v2796_v43  ;;  %v2794_v39 = vadd.f32 %v2729_v48, %v2596_v10  ;;  %v2946_v36 = vsel %vm1631_vm8, %v2895_v29, 0.0  ;;  %v2368_v51 = vadd.f32 %v11059_v14, %v11058_v49  ;;  %v2898_v30 = vmul.f32 %v2796_v43, %v2796_v43 }
 0x1d9   : > { %v2845_v20 = vadd.f32 %v2844_v8, %v2843_v37  ;;  %v2945_v60 = vadd.f32 %v2944_v12, %v2943_v5  ;;  %v6827_v59 = vpop.f32.mrf.mxu1  ;;  %7030 = vmatmul.mubr.msk.bf16.gmra.mxu1 %vm723_vm3, %v11056_v50  ;;  %v2599_v16 = vadd.f32 %v2544_v24, %v2365_v53  ;;  %v11060_v53 = vld [vmem:[#allocation38_spill] sm:$0xff]  ;;  %v2950_v5 = vsel %vm1631_vm8, %v2897_v40, 0.0  ;;  %v11062_v24 = vld [vmem:[#allocation72_spill] sm:$0xff]  ;;  %v11066_v40 = vld [vmem:[#allocation49_spill] sm:$0xff] }
 0x1da   : > { %v6794_v7 = vpop.f32.mrf.mxu0  ;;  %v2846_v63 = vsel %vm1631_vm8, %v2794_v39, 0.0  ;;  %v2896_v22 = vmul.f32 %v2794_v39, %v2794_v39  ;;  %5879 = vst.msk [vmem:[%s8307_s27 + $0x1a8] sm:$0xff] %vm1631_vm8, %v2794_v39  ;;  %v2799_v55 = vadd.f32 %v6827_v59, %v2601_v47  ;;  %7033 = vmatprep.mubr.msk.bf16.mxu1 %vm723_vm3, %v11057_v11  ;;  %v2389_v19 = vadd.f32 %v11061_v46, %v11060_v53  ;;  %v11065_v59 = vld [vmem:[#allocation61_spill] sm:$0xff] }
 0x1db   : > { %v2947_v58 = vadd.f32 %v2946_v36, %v2945_v60  ;;  %v2847_v23 = vadd.f32 %v2846_v63, %v2845_v20  ;;  %v2742_v41 = vpop.f32.mrf.mxu1  ;;  %v2602_v10 = vadd.f32 %v6794_v7, %v2376_v2  ;;  %v2850_v12 = vsel %vm1631_vm8, %v2796_v43, 0.0  ;;  %v11063_v20 = vld [vmem:[#allocation11_spill] sm:$0xff]  ;;  %v11064_v60 = vld [vmem:[#allocation44_spill] sm:$0xff]  ;;  %v11067_v43 = vld [vmem:[#allocation54_spill] sm:$0xff] }
 0x1dc   : > { %v2547_v29 = vpop.f32.mrf.mxu0  ;;  %v2948_v17 = vsel %vm1631_vm8, %v2896_v22, 0.0  ;;  %5884 = vst.msk [vmem:[%s8307_s27 + $0x1d0] sm:$0xff] %vm1631_vm8, %v2799_v55  ;;  %v2797_v34 = vadd.f32 %v2742_v41, %v2599_v16  ;;  %v2381_v36 = vadd.f32 %v11064_v60, %v11063_v20  ;;  %v2392_v16 = vadd.f32 %v11066_v40, %v11065_v59 }
 0x1dd   : > { %v2849_v37 = vadd.f32 %v2848_v56, %v2847_v23  ;;  %v2949_v48 = vadd.f32 %v2948_v17, %v2947_v58  ;;  %v6828_v54 = vpop.f32.mrf.mxu1  ;;  %v2600_v47 = vadd.f32 %v2547_v29, %v2368_v51  ;;  %v2952_v49 = vsel %vm1631_vm8, %v2898_v30, 0.0 }
 0x1de   : > { %v6797_v2 = vpop.f32.mrf.mxu0  ;;  %7000 = vmatmul.mubr.msk.bf16.gmra.mxu0 %vm723_vm3, %v11062_v24  ;;  %v2899_v8 = vmul.f32 %v2797_v34, %v2797_v34  ;;  %5882 = vst.msk [vmem:[%s8307_s27 + $0x1c0] sm:$0xff] %vm1631_vm8, %v2797_v34  ;;  %v2800_v39 = vadd.f32 %v6828_v54, %v2602_v10  ;;  %v2852_v56 = vsel %vm1631_vm8, %v2797_v34, 0.0  ;;  %v2901_v23 = vmul.f32 %v2799_v55, %v2799_v55 }
 0x1df   : > { %v2951_v7 = vadd.f32 %v2950_v5, %v2949_v48  ;;  %v2851_v63 = vadd.f32 %v2850_v12, %v2849_v37  ;;  %v2745_v22 = vpop.f32.mrf.mxu1  ;;  %7039 = vmatprep.mubr.msk.bf16.mxu0 %vm723_vm3, %v11067_v43  ;;  %v2605_v14 = vadd.f32 %v6797_v2, %v2389_v19  ;;  %v11068_v5 = vld [vmem:[#allocation16_spill] sm:$0xff]  ;;  %v11069_v37 = vld [vmem:[#allocation46_spill] sm:$0xff]  ;;  %v11070_v48 = vld [vmem:[#allocation5_spill] sm:$0xff]  ;;  %v2856_v12 = vsel %vm1631_vm8, %v2799_v55, 0.0 }
 0x1e0   : > { %v2560_v51 = vpop.f32.mrf.mxu0  ;;  %5885 = vst.msk [vmem:[%s8307_s27 + $0x1d8] sm:$0xff] %vm1631_vm8, %v2800_v39  ;;  %v2798_v58 = vadd.f32 %v2745_v22, %v2600_v47  ;;  %v2954_v29 = vsel %vm1631_vm8, %v2899_v8, 0.0  ;;  %v2384_v54 = vadd.f32 %v11070_v48, %v11069_v37  ;;  %v2902_v2 = vmul.f32 %v2800_v39, %v2800_v39  ;;  %v11071_v22 = vld [vmem:[#allocation55_spill] sm:$0xff] }
 0x1e1   : > { %v2853_v41 = vadd.f32 %v2852_v56, %v2851_v63  ;;  %v2953_v10 = vadd.f32 %v2952_v49, %v2951_v7  ;;  %v6831_v17 = vpop.f32.mrf.mxu1  ;;  %7034 = vmatmul.mubr.msk.bf16.gmra.mxu1 %vm723_vm3, %v6011_v35  ;;  %v2603_v30 = vadd.f32 %v2560_v51, %v2381_v36  ;;  %v2958_v60 = vsel %vm1631_vm8, %v2901_v23, 0.0  ;;  %v11072_v49 = vld [vmem:[#allocation41_spill] sm:$0xff]  ;;  %v11073_v23 = vld [vmem:[#allocation20_spill] sm:$0xff] }
 0x1e2   : > { %v6798_v53 = vpop.f32.mrf.mxu0  ;;  %v2854_v46 = vsel %vm1631_vm8, %v2798_v58, 0.0  ;;  %v2900_v34 = vmul.f32 %v2798_v58, %v2798_v58  ;;  %5883 = vst.msk [vmem:[%s8307_s27 + $0x1c8] sm:$0xff] %vm1631_vm8, %v2798_v58  ;;  %v2803_v19 = vadd.f32 %v6831_v17, %v2605_v14  ;;  %7073 = vmatprep.mubr.msk.bf16.mxu1 %vm723_vm3, %v11068_v5  ;;  %v2858_v55 = vsel %vm1631_vm8, %v2800_v39, 0.0  ;;  %v11074_v17 = vld [vmem:[#allocation24_spill] sm:$0xff]  ;;  %v11075_v5 = vld [vmem:[#allocation10_spill] sm:$0xff] }
 0x1e3   : > { %v2955_v4 = vadd.f32 %v2954_v29, %v2953_v10  ;;  %v2855_v13 = vadd.f32 %v2854_v46, %v2853_v41  ;;  %v2758_v35 = vpop.f32.mrf.mxu1  ;;  %v2606_v47 = vadd.f32 %v6798_v53, %v2392_v16  ;;  %v1695_v14 = vrot.slane %v11072_v49, 4 }
 0x1e4   : > { %v2563_v24 = vpop.f32.mrf.mxu0  ;;  %v2956_v8 = vsel %vm1631_vm8, %v2900_v34, 0.0  ;;  %5888 = vst.msk [vmem:[%s8307_s27 + $0x1f0] sm:$0xff] %vm1631_vm8, %v2803_v19  ;;  %v2801_v20 = vadd.f32 %v2758_v35, %v2603_v30  ;;  %v2960_v39 = vsel %vm1631_vm8, %v2902_v2, 0.0  ;;  %v1797_v30 = vrot.slane %v11074_v17, 4 }
 0x1e5   : > { %v2857_v36 = vadd.f32 %v2856_v12, %v2855_v13  ;;  %v2957_v59 = vadd.f32 %v2956_v8, %v2955_v4  ;;  %v6832_v40 = vpop.f32.mrf.mxu1  ;;  %v2604_v7 = vadd.f32 %v2563_v24, %v2384_v54  ;;  %v2905_v37 = vmul.f32 %v2803_v19, %v2803_v19  ;;  %v11076_v13 = vld [vmem:[#allocation15_spill] sm:$0xff] }
 0x1e6   : > { %v9047_v63 = vpop.f32.mrf.mxu0  ;;  %7040 = vmatmul.mubr.msk.bf16.vlgmr.msra.gmra.mxu0 %vm723_vm3, %v11071_v22  ;;  %v2903_v16 = vmul.f32 %v2801_v20, %v2801_v20  ;;  %5886 = vst.msk [vmem:[%s8307_s27 + $0x1e0] sm:$0xff] %vm1631_vm8, %v2801_v20  ;;  %v2804_v43 = vadd.f32 %v6832_v40, %v2606_v47  ;;  %v2860_v10 = vsel %vm1631_vm8, %v2801_v20, 0.0  ;;  %v1696_v35 = vadd.f32 %v1695_v14, %v11072_v49 }
 0x1e7   : > { %v2959_v51 = vadd.f32 %v2958_v60, %v2957_v59  ;;  %v2859_v56 = vadd.f32 %v2858_v55, %v2857_v36  ;;  %v2761_v58 = vpop.f32.mrf.mxu1  ;;  %7043 = vmatprep.mubr.msk.bf16.mxu0 %vm723_vm3, %v11073_v23  ;;  %v2864_v8 = vsel %vm1631_vm8, %v2803_v19, 0.0  ;;  %v1798_v59 = vadd.f32 %v1797_v30, %v11074_v17  ;;  %v11077_v17 = vld [vmem:[#allocation18_spill] sm:$0xff] }
 0x1e8   : > { %v9057_v41 = vpop.f32.mrf.mxu0  ;;  %5889 = vst.msk [vmem:[%s8307_s27 + $0x1f8] sm:$0xff] %vm1631_vm8, %v2804_v43  ;;  %v2802_v29 = vadd.f32 %v2761_v58, %v2604_v7  ;;  %v2962_v48 = vsel %vm1631_vm8, %v2903_v16, 0.0  ;;  %v2906_v20 = vmul.f32 %v2804_v43, %v2804_v43  ;;  %v2966_v22 = vsel %vm1631_vm8, %v2905_v37, 0.0 }
 0x1e9   : > { %v2861_v53 = vadd.f32 %v2860_v10, %v2859_v56  ;;  %v2961_v46 = vadd.f32 %v2960_v39, %v2959_v51  ;;  %v9063_v34 = vpop.f32.mrf.mxu1  ;;  %7074 = vmatmul.mubr.msk.bf16.vlgmr.msra.gmra.mxu1 %vm723_vm3, %v11075_v5  ;;  %v2866_v16 = vsel %vm1631_vm8, %v2804_v43, 0.0  ;;  %v1697_v19 = vrot.slane %v1696_v35, 2 }
 0x1ea   : > { %v9068_v54 = vpop.f32.mrf.mxu0  ;;  %v2862_v12 = vsel %vm1631_vm8, %v2802_v29, 0.0  ;;  %v2904_v4 = vmul.f32 %v2802_v29, %v2802_v29  ;;  %5887 = vst.msk [vmem:[%s8307_s27 + $0x1e8] sm:$0xff] %vm1631_vm8, %v2802_v29  ;;  %7077 = vmatprep.mubr.msk.bf16.mxu1 %vm723_vm3, %v11076_v13  ;;  %v2968_v58 = vsel %vm1631_vm8, %v2906_v20, 0.0  ;;  %v1799_v39 = vrot.slane %v1798_v59, 2 }
 0x1eb   : > { %v2963_v47 = vadd.f32 %v2962_v48, %v2961_v46  ;;  %v2863_v2 = vadd.f32 %v2862_v12, %v2861_v53  ;;  %v9076_v24 = vpop.f32.mrf.mxu1  ;;  %v1698_v30 = vadd.f32 %v1697_v19, %v1696_v35 }
 0x1ec   : > { %v9079_v60 = vpop.f32.mrf.mxu0  ;;  %v2964_v36 = vsel %vm1631_vm8, %v2904_v4, 0.0  ;;  %v1800_v37 = vadd.f32 %v1799_v39, %v1798_v59 }
 0x1ed   : > { %v2865_v40 = vadd.f32 %v2864_v8, %v2863_v2  ;;  %v2965_v55 = vadd.f32 %v2964_v36, %v2963_v47  ;;  %v9083_v7 = vpop.f32.mrf.mxu1  ;;  %v1699_v47 = vrot.slane %v1698_v30, 1 }
 0x1ee   : > { %v9087_v49 = vpop.f32.mrf.mxu0  ;;  %7044 = vmatmul.mubr.msk.bf16.gmra.mxu0 %vm723_vm3, %v11026_v61  ;;  %v1801_v20 = vrot.slane %v1800_v37, 1 }
 0x1ef   : > { %v2867_v14 = vadd.f32 %v2866_v16, %v2865_v40  ;;  %v2967_v51 = vadd.f32 %v2966_v22, %v2965_v55  ;;  %v9091_v56 = vpop.f32.mrf.mxu1  ;;  %7047 = vmatprep.mubr.msk.bf16.mxu0 %vm723_vm3, %v11028_v15 }
 0x1f0   : > { %v9096_v23 = vpop.f32.mrf.mxu0 }
 0x1f1   : > { %v2868_v10 = vrot.slane %v2867_v14, 4  ;;  %v2969_v43 = vadd.f32 %v2968_v58, %v2967_v51  ;;  %v9098_v29 = vpop.f32.mrf.mxu1  ;;  %7078 = vmatmul.mubr.msk.bf16.gmra.mxu1 %vm723_vm3, %v11077_v17 }
 0x1f2   : > { %v9102_v61 = vpop.f32.mrf.mxu0  ;;  %7081 = vmatprep.mubr.msk.bf16.mxu1 %vm723_vm3, %v10873_v52 }
 0x1f3   : > { %v2869_v53 = vadd.f32 %v2868_v10, %v2867_v14  ;;  %v2970_v15 = vrot.slane %v2969_v43, 4  ;;  %v9106_v46 = vpop.f32.mrf.mxu1  ;;  %v1802_v14 = vadd.f32 %v1801_v20, %v1800_v37 }
 0x1f4   : > { %v9108_v5 = vpop.f32.mrf.mxu0 }
 0x1f5   : > { %v2870_v48 = vrot.slane %v2869_v53, 2  ;;  %v2971_v12 = vadd.f32 %v2970_v15, %v2969_v43  ;;  %v9110_v4 = vpop.f32.mrf.mxu1 }
 0x1f6   : > { %v9112_v13 = vpop.f32.mrf.mxu0  ;;  %7048 = vmatmul.mubr.msk.bf16.gmra.mxu0 %vm723_vm3, %v11029_v33  ;;  %v1700_v33 = vadd.f32 %v1699_v47, %v1698_v30 }
 0x1f7   : > { %v2871_v2 = vadd.f32 %v2870_v48, %v2869_v53  ;;  %v2972_v52 = vrot.slane %v2971_v12, 2  ;;  %v9116_v35 = vpop.f32.mrf.mxu1  ;;  %7051 = vmatprep.mubr.msk.bf16.mxu0 %vm723_vm3, %v11030_v18 }
 0x1f8   : > { %v9120_v8 = vpop.f32.mrf.mxu0 }
 0x1f9   : > { %v2872_v36 = vrot.slane %v2871_v2, 1  ;;  %v2973_v59 = vadd.f32 %v2972_v52, %v2971_v12  ;;  %v9122_v40 = vpop.f32.mrf.mxu1  ;;  %7082 = vmatmul.mubr.msk.bf16.gmra.mxu1 %vm723_vm3, %v10874_v9 }
 0x1fa   : > { %v9126_v55 = vpop.f32.mrf.mxu0  ;;  %7085 = vmatprep.mubr.msk.bf16.mxu1 %vm723_vm3, %v10885_v44 }
 0x1fb   : > { %v2873_v22 = vadd.f32 %v2872_v36, %v2871_v2  ;;  %v2974_v16 = vrot.slane %v2973_v59, 1  ;;  %v9130_v19 = vpop.f32.mrf.mxu1 }
 0x1fc   : > { %v9132_v18 = vpop.f32.mrf.mxu0 }
 0x1fd   : > { %v9134_v51 = vadd.f32 %v2873_v22, %v1700_v33  ;;  %v2975_v58 = vadd.f32 %v2974_v16, %v2973_v59  ;;  %v9136_v39 = vpop.f32.mrf.mxu1 }
 0x1fe   : > { %v9138_v10 = vpop.f32.mrf.mxu0  ;;  %7052 = vmatmul.mubr.msk.bf16.gmra.mxu0 %vm723_vm3, %v11031_v38 }
 0x1ff   : > { %11078 = vst [vmem:[#allocation63_spill] sm:$0xff] %v9134_v51  ;;  %v9142_v9 = vadd.f32 %v2975_v58, %v1802_v14  ;;  %v9144_v44 = vpop.f32.mrf.mxu1  ;;  %7055 = vmatprep.mubr.msk.bf16.mxu0 %vm723_vm3, %v11032_v1 }
 0x200   : > { %v9148_v43 = vpop.f32.mrf.mxu0 }
 0x201   : > { %11079 = vst [vmem:[#allocation13_spill] sm:$0xff] %v9142_v9  ;;  %v9150_v17 = vpop.f32.mrf.mxu1  ;;  %7086 = vmatmul.mubr.msk.bf16.gmra.mxu1 %vm723_vm3, %v10887_v21 }
 0x202   : > { %v9154_v30 = vpop.f32.mrf.mxu0  ;;  %7089 = vmatprep.mubr.msk.bf16.mxu1 %vm723_vm3, %v10890_v26 }
 0x203   : > { %v9158_v38 = vpop.f32.mrf.mxu1 }
 0x204   : > { %v9160_v53 = vpop.f32.mrf.mxu0 }
 0x205   : > { %v9162_v15 = vpop.f32.mrf.mxu1 }
 0x206   : > { %v9164_v37 = vpop.f32.mrf.mxu0  ;;  %7056 = vmatmul.mubr.msk.bf16.gmra.mxu0 %vm723_vm3, %v11033_v28 }
 0x207   : > { %v9168_v1 = vpop.f32.mrf.mxu1  ;;  %7059 = vmatprep.mubr.msk.bf16.mxu0 %vm723_vm3, %v11037_v6 }
 0x208   : > { %v9172_v21 = vpop.f32.mrf.mxu0 }
 0x209   : > { %v9174_v48 = vpop.f32.mrf.mxu1  ;;  %7090 = vmatmul.mubr.msk.bf16.gmra.mxu1 %vm723_vm3, %v10891_v45 }
 0x20a   : > { %v9178_v26 = vpop.f32.mrf.mxu0  ;;  %7093 = vmatprep.mubr.msk.bf16.mxu1 %vm723_vm3, %v10960_v62 }
 0x20b   : > { %v9182_v12 = vpop.f32.mrf.mxu1 }
 0x20c   : > { %v9184_v28 = vpop.f32.mrf.mxu0 }
 0x20d   : > { %v9186_v47 = vpop.f32.mrf.mxu1 }
 0x20e   : > { %v9188_v2 = vpop.f32.mrf.mxu0  ;;  %7060 = vmatmul.mubr.msk.bf16.gmra.mxu0 %vm723_vm3, %v11038_v0 }
 0x20f   : > { %v9192_v6 = vpop.f32.mrf.mxu1  ;;  %7063 = vmatprep.mubr.msk.bf16.mxu0 %vm723_vm3, %v11044_v57 }
 0x210   : > { %v9196_v45 = vpop.f32.mrf.mxu0 }
 0x211   : > { %v9198_v52 = vpop.f32.mrf.mxu1  ;;  %7094 = vmatmul.mubr.msk.bf16.gmra.mxu1 %vm723_vm3, %v11036_v27 }
 0x212   : > { %v9202_v62 = vpop.f32.mrf.mxu0  ;;  %7097 = vmatprep.mubr.msk.bf16.mxu1 %vm723_vm3, %v10972_v32 }
 0x213   : > { %v9206_v20 = vpop.f32.mrf.mxu1 }
 0x214   : > { %v9208_v0 = vpop.f32.mrf.mxu0 }
 0x215   : > { %v9210_v36 = vpop.f32.mrf.mxu1 }
 0x216   : > { %v9212_v59 = vpop.f32.mrf.mxu0  ;;  %7064 = vmatmul.mubr.msk.bf16.gmra.mxu0 %vm723_vm3, %v11045_v42 }
 0x217   : > { %v9216_v57 = vpop.f32.mrf.mxu1  ;;  %7067 = vmatprep.mubr.msk.bf16.mxu0 %vm723_vm3, %v11056_v50 }
 0x218   : > { %v9220_v27 = vpop.f32.mrf.mxu0 }
 0x219   : > { %v9222_v33 = vpop.f32.mrf.mxu1  ;;  %7098 = vmatmul.mubr.msk.bf16.gmra.mxu1 %vm723_vm3, %v10973_v31 }
 0x21a   : > { %v9226_v32 = vpop.f32.mrf.mxu0  ;;  %7101 = vmatprep.mubr.msk.bf16.mxu1 %vm723_vm3, %v11050_v25 }
 0x21b   : > { %11080 = vst [vmem:[#allocation65_spill] sm:$0xff] %v9226_v32  ;;  %v9230_v22 = vpop.f32.mrf.mxu1 }
 0x21c   : > { %11081 = vst [vmem:[#allocation48_spill] sm:$0xff] %v9230_v22  ;;  %v9232_v42 = vpop.f32.mrf.mxu0 }
 0x21d   : > { %11082 = vst [vmem:[#allocation9_spill] sm:$0xff] %v9232_v42  ;;  %v9234_v16 = vpop.f32.mrf.mxu1 }
 0x21e   : > { %11083 = vst [vmem:[#allocation67_spill] sm:$0xff] %v9234_v16  ;;  %v9236_v14 = vpop.f32.mrf.mxu0  ;;  %7068 = vmatmul.mubr.msk.bf16.gmra.mxu0 %vm723_vm3, %v11057_v11  ;;  %v3262_v11 = vadd.f32 %v9063_v34, %v9047_v63  ;;  %v3257_v63 = vadd.f32 %v9091_v56, %v9079_v60  ;;  %v3270_v60 = vadd.f32 %v9106_v46, %v9096_v23 }
 0x21f   : > { %11084 = vst [vmem:[#allocation14_spill] sm:$0xff] %v9236_v14  ;;  %v9240_v50 = vpop.f32.mrf.mxu1  ;;  %v3273_v46 = vadd.f32 %v9116_v35, %v9108_v5 }
 0x220   : > { %11085 = vst [vmem:[#allocation68_spill] sm:$0xff] %v9240_v50  ;;  %v9242_v58 = vpop.f32.mrf.mxu0 }
 0x221   : > { %11086 = vst [vmem:[#allocation50_spill] sm:$0xff] %v9242_v58  ;;  %v9244_v31 = vpop.f32.mrf.mxu1  ;;  %7102 = vmatmul.mubr.msk.bf16.gmra.mxu1 %vm723_vm3, %v11055_v3  ;;  %v3254_v58 = vadd.f32 %v9076_v24, %v9057_v41 }
 0x222   : > { %11087 = vst [vmem:[#allocation62_spill] sm:$0xff] %v9244_v31  ;;  %v9248_v25 = vpop.f32.mrf.mxu0 }
 0x223   : > { %11088 = vst [vmem:[#allocation70_spill] sm:$0xff] %v9248_v25  ;;  %v9250_v9 = vpop.f32.mrf.mxu1 }
 0x224   : > { %11089 = vst [vmem:[#allocation64_spill] sm:$0xff] %v9250_v9  ;;  %v9252_v51 = vpop.f32.mrf.mxu0  ;;  %v3265_v9 = vadd.f32 %v9083_v7, %v9068_v54 }
 0x225   : > { %11090 = vst [vmem:[#allocation71_spill] sm:$0xff] %v9252_v51  ;;  %v9254_v42 = vpop.f32.mrf.mxu1 }
 0x226   : > { %11091 = vst [vmem:[#allocation66_spill] sm:$0xff] %v9254_v42  ;;  %v6905_v14 = vpop.f32.mrf.mxu0 }
 0x227   : > { %v9258_v50 = vpop.f32.mrf.mxu1  ;;  %v3548_v31 = vadd.f32 %v6905_v14, %v3262_v11  ;;  %v3278_v14 = vadd.f32 %v9098_v29, %v9087_v49 }
 0x228   : > { %11092 = vst [vmem:[#allocation69_spill] sm:$0xff] %v9258_v50  ;;  %v3419_v3 = vpop.f32.mrf.mxu0 }
 0x229   : > { %v6939_v25 = vpop.f32.mrf.mxu1  ;;  %v3546_v51 = vadd.f32 %v3419_v3, %v3254_v58 }
 0x22a   : > { %v6906_v16 = vpop.f32.mrf.mxu0  ;;  %v3746_v42 = vadd.f32 %v6939_v25, %v3548_v31 }
 0x22b   : > { %v3617_v32 = vpop.f32.mrf.mxu1  ;;  %v3549_v34 = vadd.f32 %v6906_v16, %v3265_v9 }
 0x22c   : > { %v3422_v50 = vpop.f32.mrf.mxu0  ;;  %5962 = vst.msk [vmem:[%s8307_s27 + $0x210] sm:$0xff] %vm1631_vm8, %v3746_v42  ;;  %v3744_v41 = vadd.f32 %v3617_v32, %v3546_v51  ;;  %v3281_v32 = vadd.f32 %v9110_v4, %v9102_v61  ;;  %v3848_v49 = vmul.f32 %v3746_v42, %v3746_v42 }
 0x22d   : > { %v6940_v24 = vpop.f32.mrf.mxu1  ;;  %v3547_v11 = vadd.f32 %v3422_v50, %v3257_v63 }
 0x22e   : > { %v6909_v22 = vpop.f32.mrf.mxu0  ;;  %5960 = vst.msk [vmem:[%s8307_s27 + $0x200] sm:$0xff] %vm1631_vm8, %v3744_v41  ;;  %v3747_v54 = vadd.f32 %v6940_v24, %v3549_v34  ;;  %v3846_v7 = vmul.f32 %v3744_v41, %v3744_v41  ;;  %v3776_v29 = vsel %vm1631_vm8, %v3744_v41, 0.0  ;;  %v3881_v5 = vsel %vm1631_vm8, %v3848_v49, 0.0 }
 0x22f   : > { %v3620_v58 = vpop.f32.mrf.mxu1  ;;  %v3552_v56 = vadd.f32 %v6909_v22, %v3278_v14  ;;  %v3779_v22 = vsel %vm1631_vm8, %v3746_v42, 0.0 }
 0x230   : > { %v3435_v9 = vpop.f32.mrf.mxu0  ;;  %5963 = vst.msk [vmem:[%s8307_s27 + $0x218] sm:$0xff] %vm1631_vm8, %v3747_v54  ;;  %v3745_v51 = vadd.f32 %v3620_v58, %v3547_v11  ;;  %v3878_v61 = vsel %vm1631_vm8, %v3846_v7, 0.0  ;;  %v3849_v41 = vmul.f32 %v3747_v54, %v3747_v54  ;;  %v3294_v58 = vadd.f32 %v9122_v40, %v9112_v13 }
 0x231   : > { %v6943_v16 = vpop.f32.mrf.mxu1  ;;  %v3550_v50 = vadd.f32 %v3435_v9, %v3270_v60  ;;  %v3781_v7 = vsel %vm1631_vm8, %v3747_v54, 0.0  ;;  %v3297_v13 = vadd.f32 %v9136_v39, %v9126_v55 }
 0x232   : > { %v6910_v31 = vpop.f32.mrf.mxu0  ;;  %v3777_v25 = vsel %vm1631_vm8, %v3745_v51, 0.0  ;;  %v3847_v3 = vmul.f32 %v3745_v51, %v3745_v51  ;;  %5961 = vst.msk [vmem:[%s8307_s27 + $0x208] sm:$0xff] %vm1631_vm8, %v3745_v51  ;;  %v3750_v23 = vadd.f32 %v6943_v16, %v3552_v56 }
 0x233   : > { %v3778_v4 = vadd.f32 %v3777_v25, %v3776_v29  ;;  %v3633_v63 = vpop.f32.mrf.mxu1  ;;  %v3553_v34 = vadd.f32 %v6910_v31, %v3281_v32  ;;  %v3286_v29 = vadd.f32 %v9130_v19, %v9120_v8 }
 0x234   : > { %v3438_v24 = vpop.f32.mrf.mxu0  ;;  %v3879_v14 = vsel %vm1631_vm8, %v3847_v3, 0.0  ;;  %5966 = vst.msk [vmem:[%s8307_s27 + $0x230] sm:$0xff] %vm1631_vm8, %v3750_v23  ;;  %v3748_v11 = vadd.f32 %v3633_v63, %v3550_v50  ;;  %v3883_v50 = vsel %vm1631_vm8, %v3849_v41, 0.0  ;;  %v3289_v41 = vadd.f32 %v9144_v44, %v9132_v18 }
 0x235   : > { %v3780_v35 = vadd.f32 %v3779_v22, %v3778_v4  ;;  %v3880_v42 = vadd.f32 %v3879_v14, %v3878_v61  ;;  %v6944_v60 = vpop.f32.mrf.mxu1  ;;  %v3551_v56 = vadd.f32 %v3438_v24, %v3273_v46  ;;  %v3852_v46 = vmul.f32 %v3750_v23, %v3750_v23 }
 0x236   : > { %v6913_v9 = vpop.f32.mrf.mxu0  ;;  %v3850_v51 = vmul.f32 %v3748_v11, %v3748_v11  ;;  %5964 = vst.msk [vmem:[%s8307_s27 + $0x220] sm:$0xff] %vm1631_vm8, %v3748_v11  ;;  %v3751_v32 = vadd.f32 %v6944_v60, %v3553_v34  ;;  %v3783_v25 = vsel %vm1631_vm8, %v3748_v11, 0.0  ;;  %v3787_v24 = vsel %vm1631_vm8, %v3750_v23, 0.0 }
 0x237   : > { %v3882_v40 = vadd.f32 %v3881_v5, %v3880_v42  ;;  %v3782_v49 = vadd.f32 %v3781_v7, %v3780_v35  ;;  %v3636_v16 = vpop.f32.mrf.mxu1  ;;  %v3556_v31 = vadd.f32 %v6913_v9, %v3294_v58  ;;  %v3889_v9 = vsel %vm1631_vm8, %v3852_v46, 0.0 }
 0x238   : > { %v3451_v54 = vpop.f32.mrf.mxu0  ;;  %5967 = vst.msk [vmem:[%s8307_s27 + $0x238] sm:$0xff] %vm1631_vm8, %v3751_v32  ;;  %v3749_v3 = vadd.f32 %v3636_v16, %v3551_v56  ;;  %v3885_v8 = vsel %vm1631_vm8, %v3850_v51, 0.0  ;;  %v3853_v35 = vmul.f32 %v3751_v32, %v3751_v32  ;;  %v3310_v56 = vadd.f32 %v9150_v17, %v9138_v10 }
 0x239   : > { %v3784_v22 = vadd.f32 %v3783_v25, %v3782_v49  ;;  %v3884_v61 = vadd.f32 %v3883_v50, %v3882_v40  ;;  %v6947_v19 = vpop.f32.mrf.mxu1  ;;  %v3554_v55 = vadd.f32 %v3451_v54, %v3286_v29  ;;  %v3789_v51 = vsel %vm1631_vm8, %v3751_v32, 0.0 }
 0x23a   : > { %v6914_v39 = vpop.f32.mrf.mxu0  ;;  %v3785_v4 = vsel %vm1631_vm8, %v3749_v3, 0.0  ;;  %v3851_v63 = vmul.f32 %v3749_v3, %v3749_v3  ;;  %5965 = vst.msk [vmem:[%s8307_s27 + $0x228] sm:$0xff] %vm1631_vm8, %v3749_v3  ;;  %v3754_v34 = vadd.f32 %v6947_v19, %v3556_v31  ;;  %v3302_v16 = vadd.f32 %v9158_v38, %v9148_v43 }
 0x23b   : > { %v3886_v14 = vadd.f32 %v3885_v8, %v3884_v61  ;;  %v3786_v11 = vadd.f32 %v3785_v4, %v3784_v22  ;;  %v3649_v58 = vpop.f32.mrf.mxu1  ;;  %v3557_v5 = vadd.f32 %v6914_v39, %v3297_v13  ;;  %v3313_v10 = vadd.f32 %v9162_v15, %v9154_v30 }
 0x23c   : > { %v3454_v42 = vpop.f32.mrf.mxu0  ;;  %v3887_v60 = vsel %vm1631_vm8, %v3851_v63, 0.0  ;;  %5970 = vst.msk [vmem:[%s8307_s27 + $0x250] sm:$0xff] %vm1631_vm8, %v3754_v34  ;;  %v3752_v7 = vadd.f32 %v3649_v58, %v3554_v55  ;;  %v3891_v54 = vsel %vm1631_vm8, %v3853_v35, 0.0  ;;  %v3856_v22 = vmul.f32 %v3754_v34, %v3754_v34 }
 0x23d   : > { %v3788_v18 = vadd.f32 %v3787_v24, %v3786_v11  ;;  %v3888_v44 = vadd.f32 %v3887_v60, %v3886_v14  ;;  %v6948_v23 = vpop.f32.mrf.mxu1  ;;  %v3555_v29 = vadd.f32 %v3454_v42, %v3289_v41  ;;  %v3305_v4 = vadd.f32 %v9168_v1, %v9160_v53 }
 0x23e   : > { %v6917_v13 = vpop.f32.mrf.mxu0  ;;  %v3854_v40 = vmul.f32 %v3752_v7, %v3752_v7  ;;  %5968 = vst.msk [vmem:[%s8307_s27 + $0x240] sm:$0xff] %vm1631_vm8, %v3752_v7  ;;  %v3755_v49 = vadd.f32 %v6948_v23, %v3557_v5  ;;  %v3791_v3 = vsel %vm1631_vm8, %v3752_v7, 0.0  ;;  %v3795_v63 = vsel %vm1631_vm8, %v3754_v34, 0.0 }
 0x23f   : > { %v3890_v17 = vadd.f32 %v3889_v9, %v3888_v44  ;;  %v3790_v50 = vadd.f32 %v3789_v51, %v3788_v18  ;;  %v3652_v31 = vpop.f32.mrf.mxu1  ;;  %v3560_v25 = vadd.f32 %v6917_v13, %v3310_v56  ;;  %v3326_v60 = vadd.f32 %v9174_v48, %v9164_v37 }
 0x240   : > { %v3467_v32 = vpop.f32.mrf.mxu0  ;;  %5971 = vst.msk [vmem:[%s8307_s27 + $0x258] sm:$0xff] %vm1631_vm8, %v3755_v49  ;;  %v3753_v46 = vadd.f32 %v3652_v31, %v3555_v29  ;;  %v3893_v43 = vsel %vm1631_vm8, %v3854_v40, 0.0  ;;  %v3857_v58 = vmul.f32 %v3755_v49, %v3755_v49  ;;  %v3897_v7 = vsel %vm1631_vm8, %v3856_v22, 0.0 }
 0x241   : > { %v3792_v61 = vadd.f32 %v3791_v3, %v3790_v50  ;;  %v3892_v8 = vadd.f32 %v3891_v54, %v3890_v17  ;;  %v6951_v38 = vpop.f32.mrf.mxu1  ;;  %v3558_v30 = vadd.f32 %v3467_v32, %v3302_v16  ;;  %v3797_v56 = vsel %vm1631_vm8, %v3755_v49, 0.0 }
 0x242   : > { %v6918_v15 = vpop.f32.mrf.mxu0  ;;  %v3793_v19 = vsel %vm1631_vm8, %v3753_v46, 0.0  ;;  %v3855_v55 = vmul.f32 %v3753_v46, %v3753_v46  ;;  %5969 = vst.msk [vmem:[%s8307_s27 + $0x248] sm:$0xff] %vm1631_vm8, %v3753_v46  ;;  %v3758_v39 = vadd.f32 %v6951_v38, %v3560_v25  ;;  %v3318_v51 = vadd.f32 %v9182_v12, %v9172_v21 }
 0x243   : > { %v3894_v41 = vadd.f32 %v3893_v43, %v3892_v8  ;;  %v3794_v24 = vadd.f32 %v3793_v19, %v3792_v61  ;;  %v3665_v14 = vpop.f32.mrf.mxu1  ;;  %v3561_v11 = vadd.f32 %v6918_v15, %v3313_v10  ;;  %v3329_v37 = vadd.f32 %v9186_v47, %v9178_v26 }
 0x244   : > { %v3470_v5 = vpop.f32.mrf.mxu0  ;;  %v3895_v35 = vsel %vm1631_vm8, %v3855_v55, 0.0  ;;  %5974 = vst.msk [vmem:[%s8307_s27 + $0x270] sm:$0xff] %vm1631_vm8, %v3758_v39  ;;  %v3756_v42 = vadd.f32 %v3665_v14, %v3558_v30  ;;  %v3899_v40 = vsel %vm1631_vm8, %v3857_v58, 0.0  ;;  %v3860_v50 = vmul.f32 %v3758_v39, %v3758_v39 }
 0x245   : > { %v3796_v53 = vadd.f32 %v3795_v63, %v3794_v24  ;;  %v3896_v1 = vadd.f32 %v3895_v35, %v3894_v41  ;;  %v6952_v34 = vpop.f32.mrf.mxu1  ;;  %v3559_v9 = vadd.f32 %v3470_v5, %v3305_v4  ;;  %v3321_v46 = vadd.f32 %v9192_v6, %v9184_v28 }
 0x246   : > { %v6921_v18 = vpop.f32.mrf.mxu0  ;;  %v3858_v44 = vmul.f32 %v3756_v42, %v3756_v42  ;;  %5972 = vst.msk [vmem:[%s8307_s27 + $0x260] sm:$0xff] %vm1631_vm8, %v3756_v42  ;;  %v3759_v23 = vadd.f32 %v6952_v34, %v3561_v11  ;;  %v3799_v10 = vsel %vm1631_vm8, %v3756_v42, 0.0  ;;  %v3803_v22 = vsel %vm1631_vm8, %v3758_v39, 0.0 }
 0x247   : > { %v3898_v48 = vadd.f32 %v3897_v7, %v3896_v1  ;;  %v3798_v29 = vadd.f32 %v3797_v56, %v3796_v53  ;;  %v3668_v13 = vpop.f32.mrf.mxu1  ;;  %v3564_v16 = vadd.f32 %v6921_v18, %v3326_v60  ;;  %v3342_v4 = vadd.f32 %v9198_v52, %v9188_v2 }
 0x248   : > { %v3483_v49 = vpop.f32.mrf.mxu0  ;;  %5975 = vst.msk [vmem:[%s8307_s27 + $0x278] sm:$0xff] %vm1631_vm8, %v3759_v23  ;;  %v3757_v17 = vadd.f32 %v3668_v13, %v3559_v9  ;;  %v3901_v21 = vsel %vm1631_vm8, %v3858_v44, 0.0  ;;  %v3861_v30 = vmul.f32 %v3759_v23, %v3759_v23  ;;  %v3905_v63 = vsel %vm1631_vm8, %v3860_v50, 0.0 }
 0x249   : > { %v3800_v31 = vadd.f32 %v3799_v10, %v3798_v29  ;;  %v3900_v54 = vadd.f32 %v3899_v40, %v3898_v48  ;;  %v6955_v12 = vpop.f32.mrf.mxu1  ;;  %v3562_v26 = vadd.f32 %v3483_v49, %v3318_v51  ;;  %v3805_v41 = vsel %vm1631_vm8, %v3759_v23, 0.0 }
 0x24a   : > { %v6922_v47 = vpop.f32.mrf.mxu0  ;;  %v3801_v25 = vsel %vm1631_vm8, %v3757_v17, 0.0  ;;  %v3859_v32 = vmul.f32 %v3757_v17, %v3757_v17  ;;  %5973 = vst.msk [vmem:[%s8307_s27 + $0x268] sm:$0xff] %vm1631_vm8, %v3757_v17  ;;  %v3762_v3 = vadd.f32 %v6955_v12, %v3564_v16  ;;  %v3334_v5 = vadd.f32 %v9206_v20, %v9196_v45 }
 0x24b   : > { %v3902_v61 = vadd.f32 %v3901_v21, %v3900_v54  ;;  %v3802_v8 = vadd.f32 %v3801_v25, %v3800_v31  ;;  %v3681_v43 = vpop.f32.mrf.mxu1  ;;  %v3565_v38 = vadd.f32 %v6922_v47, %v3329_v37  ;;  %v3345_v2 = vadd.f32 %v9210_v36, %v9202_v62 }
 0x24c   : > { %v3486_v15 = vpop.f32.mrf.mxu0  ;;  %v3903_v19 = vsel %vm1631_vm8, %v3859_v32, 0.0  ;;  %5978 = vst.msk [vmem:[%s8307_s27 + $0x290] sm:$0xff] %vm1631_vm8, %v3762_v3  ;;  %v3760_v55 = vadd.f32 %v3681_v43, %v3562_v26  ;;  %v3907_v60 = vsel %vm1631_vm8, %v3861_v30, 0.0  ;;  %v3864_v56 = vmul.f32 %v3762_v3, %v3762_v3 }
 0x24d   : > { %v3804_v28 = vadd.f32 %v3803_v22, %v3802_v8  ;;  %v3904_v6 = vadd.f32 %v3903_v19, %v3902_v61  ;;  %v6956_v39 = vpop.f32.mrf.mxu1  ;;  %v3563_v24 = vadd.f32 %v3486_v15, %v3321_v46  ;;  %v3337_v37 = vadd.f32 %v9216_v57, %v9208_v0  ;;  %v11094_v22 = vld [vmem:[#allocation65_spill] sm:$0xff]  ;;  %v11095_v61 = vld [vmem:[#allocation67_spill] sm:$0xff] }
 0x24e   : > { %v6925_v14 = vpop.f32.mrf.mxu0  ;;  %v3862_v11 = vmul.f32 %v3760_v55, %v3760_v55  ;;  %5976 = vst.msk [vmem:[%s8307_s27 + $0x280] sm:$0xff] %vm1631_vm8, %v3760_v55  ;;  %v3763_v58 = vadd.f32 %v6956_v39, %v3565_v38  ;;  %v3807_v1 = vsel %vm1631_vm8, %v3760_v55, 0.0  ;;  %v3811_v48 = vsel %vm1631_vm8, %v3762_v3, 0.0  ;;  %v11093_v3 = vld [vmem:[#allocation48_spill] sm:$0xff] }
 0x24f   : > { %v3906_v52 = vadd.f32 %v3905_v63, %v3904_v6  ;;  %v3806_v35 = vadd.f32 %v3805_v41, %v3804_v28  ;;  %v3684_v42 = vpop.f32.mrf.mxu1  ;;  %v3568_v7 = vadd.f32 %v6925_v14, %v3342_v4  ;;  %v3358_v31 = vadd.f32 %v9222_v33, %v9212_v59 }
 0x250   : > { %v3499_v53 = vpop.f32.mrf.mxu0  ;;  %5979 = vst.msk [vmem:[%s8307_s27 + $0x298] sm:$0xff] %vm1631_vm8, %v3763_v58  ;;  %v3761_v34 = vadd.f32 %v3684_v42, %v3563_v24  ;;  %v3909_v45 = vsel %vm1631_vm8, %v3862_v11, 0.0  ;;  %v3865_v49 = vmul.f32 %v3763_v58, %v3763_v58  ;;  %v3913_v54 = vsel %vm1631_vm8, %v3864_v56, 0.0 }
 0x251   : > { %v3808_v9 = vadd.f32 %v3807_v1, %v3806_v35  ;;  %v3908_v18 = vadd.f32 %v3907_v60, %v3906_v52  ;;  %v6959_v20 = vpop.f32.mrf.mxu1  ;;  %v3566_v62 = vadd.f32 %v3499_v53, %v3334_v5  ;;  %v3813_v12 = vsel %vm1631_vm8, %v3763_v58, 0.0  ;;  %v11096_v58 = vld [vmem:[#allocation9_spill] sm:$0xff]  ;;  %v11097_v5 = vld [vmem:[#allocation68_spill] sm:$0xff] }
 0x252   : > { %v6926_v36 = vpop.f32.mrf.mxu0  ;;  %v3809_v44 = vsel %vm1631_vm8, %v3761_v34, 0.0  ;;  %v3863_v23 = vmul.f32 %v3761_v34, %v3761_v34  ;;  %5977 = vst.msk [vmem:[%s8307_s27 + $0x288] sm:$0xff] %vm1631_vm8, %v3761_v34  ;;  %v3766_v51 = vadd.f32 %v6959_v20, %v3568_v7  ;;  %v3350_v46 = vadd.f32 %v11093_v3, %v9220_v27 }
 0x253   : > { %v3910_v29 = vadd.f32 %v3909_v45, %v3908_v18  ;;  %v3810_v13 = vadd.f32 %v3809_v44, %v3808_v9  ;;  %v3697_v40 = vpop.f32.mrf.mxu1  ;;  %v3569_v16 = vadd.f32 %v6926_v36, %v3345_v2  ;;  %v3361_v59 = vadd.f32 %v11095_v61, %v11094_v22  ;;  %v11098_v9 = vld [vmem:[#allocation14_spill] sm:$0xff] }
 0x254   : > { %v3502_v10 = vpop.f32.mrf.mxu0  ;;  %v3911_v17 = vsel %vm1631_vm8, %v3863_v23, 0.0  ;;  %5982 = vst.msk [vmem:[%s8307_s27 + $0x2b0] sm:$0xff] %vm1631_vm8, %v3766_v51  ;;  %v3764_v50 = vadd.f32 %v3697_v40, %v3566_v62  ;;  %v3915_v38 = vsel %vm1631_vm8, %v3865_v49, 0.0  ;;  %v3868_v4 = vmul.f32 %v3766_v51, %v3766_v51  ;;  %v11099_v18 = vld [vmem:[#allocation62_spill] sm:$0xff]  ;;  %v11101_v40 = vld [vmem:[#allocation64_spill] sm:$0xff] }
 0x255   : > { %v3812_v0 = vadd.f32 %v3811_v48, %v3810_v13  ;;  %v3912_v57 = vadd.f32 %v3911_v17, %v3910_v29  ;;  %v6960_v21 = vpop.f32.mrf.mxu1  ;;  %v3567_v26 = vadd.f32 %v3502_v10, %v3337_v37  ;;  %v3353_v2 = vadd.f32 %v11097_v5, %v11096_v58  ;;  %v11100_v13 = vld [vmem:[#allocation50_spill] sm:$0xff] }
 0x256   : > { %v6929_v47 = vpop.f32.mrf.mxu0  ;;  %v3866_v25 = vmul.f32 %v3764_v50, %v3764_v50  ;;  %5980 = vst.msk [vmem:[%s8307_s27 + $0x2a0] sm:$0xff] %vm1631_vm8, %v3764_v50  ;;  %v3767_v32 = vadd.f32 %v6960_v21, %v3569_v16  ;;  %v3815_v19 = vsel %vm1631_vm8, %v3764_v50, 0.0  ;;  %v3819_v52 = vsel %vm1631_vm8, %v3766_v51, 0.0  ;;  %v11102_v49 = vld [vmem:[#allocation70_spill] sm:$0xff] }
 0x257   : > { %v3914_v33 = vadd.f32 %v3913_v54, %v3912_v57  ;;  %v3814_v8 = vadd.f32 %v3813_v12, %v3812_v0  ;;  %v3700_v43 = vpop.f32.mrf.mxu1  ;;  %v3572_v30 = vadd.f32 %v6929_v47, %v3358_v31  ;;  %v3374_v45 = vadd.f32 %v11099_v18, %v11098_v9  ;;  %v11103_v10 = vld [vmem:[#allocation66_spill] sm:$0xff] }
 0x258   : > { %v3515_v15 = vpop.f32.mrf.mxu0  ;;  %5983 = vst.msk [vmem:[%s8307_s27 + $0x2b8] sm:$0xff] %vm1631_vm8, %v3767_v32  ;;  %v3765_v55 = vadd.f32 %v3700_v43, %v3567_v26  ;;  %v3917_v27 = vsel %vm1631_vm8, %v3866_v25, 0.0  ;;  %v3869_v53 = vmul.f32 %v3767_v32, %v3767_v32  ;;  %v3921_v20 = vsel %vm1631_vm8, %v3868_v4, 0.0  ;;  %v11104_v43 = vld [vmem:[#allocation71_spill] sm:$0xff] }
 0x259   : > { %v3816_v63 = vadd.f32 %v3815_v19, %v3814_v8  ;;  %v3916_v28 = vadd.f32 %v3915_v38, %v3914_v33  ;;  %v6963_v6 = vpop.f32.mrf.mxu1  ;;  %v3570_v39 = vadd.f32 %v3515_v15, %v3350_v46  ;;  %v3821_v23 = vsel %vm1631_vm8, %v3767_v32, 0.0  ;;  %v11105_v38 = vld [vmem:[#allocation69_spill] sm:$0xff] }
 0x25a   : > { %v6930_v41 = vpop.f32.mrf.mxu0  ;;  %v3817_v24 = vsel %vm1631_vm8, %v3765_v55, 0.0  ;;  %v3867_v14 = vmul.f32 %v3765_v55, %v3765_v55  ;;  %5981 = vst.msk [vmem:[%s8307_s27 + $0x2a8] sm:$0xff] %vm1631_vm8, %v3765_v55  ;;  %v3770_v11 = vadd.f32 %v6963_v6, %v3572_v30  ;;  %v3366_v16 = vadd.f32 %v11101_v40, %v11100_v13 }
 0x25b   : > { %v3918_v35 = vadd.f32 %v3917_v27, %v3916_v28  ;;  %v3818_v42 = vadd.f32 %v3817_v24, %v3816_v63  ;;  %v3713_v60 = vpop.f32.mrf.mxu1  ;;  %v3573_v7 = vadd.f32 %v6930_v41, %v3361_v59  ;;  %v3377_v17 = vadd.f32 %v11103_v10, %v11102_v49 }
 0x25c   : > { %v3518_v1 = vpop.f32.mrf.mxu0  ;;  %v3919_v34 = vsel %vm1631_vm8, %v3867_v14, 0.0  ;;  %5986 = vst.msk [vmem:[%s8307_s27 + $0x2d0] sm:$0xff] %vm1631_vm8, %v3770_v11  ;;  %v3768_v56 = vadd.f32 %v3713_v60, %v3570_v39  ;;  %v3923_v0 = vsel %vm1631_vm8, %v3869_v53, 0.0  ;;  %v3872_v47 = vmul.f32 %v3770_v11, %v3770_v11 }
 0x25d   : > { %v3820_v62 = vadd.f32 %v3819_v52, %v3818_v42  ;;  %v3920_v36 = vadd.f32 %v3919_v34, %v3918_v35  ;;  %v6964_v44 = vpop.f32.mrf.mxu1  ;;  %v3571_v51 = vadd.f32 %v3518_v1, %v3353_v2  ;;  %v3369_v30 = vadd.f32 %v11105_v38, %v11104_v43 }
 0x25e   : > { %v6933_v37 = vpop.f32.mrf.mxu0  ;;  %v3870_v48 = vmul.f32 %v3768_v56, %v3768_v56  ;;  %5984 = vst.msk [vmem:[%s8307_s27 + $0x2c0] sm:$0xff] %vm1631_vm8, %v3768_v56  ;;  %v3771_v29 = vadd.f32 %v6964_v44, %v3573_v7  ;;  %v3823_v12 = vsel %vm1631_vm8, %v3768_v56, 0.0  ;;  %v3827_v15 = vsel %vm1631_vm8, %v3770_v11, 0.0 }
 0x25f   : > { %v3922_v50 = vadd.f32 %v3921_v20, %v3920_v36  ;;  %v3822_v31 = vadd.f32 %v3821_v23, %v3820_v62  ;;  %v3716_v54 = vpop.f32.mrf.mxu1  ;;  %v3576_v57 = vadd.f32 %v6933_v37, %v3374_v45  ;;  %v3929_v41 = vsel %vm1631_vm8, %v3872_v47, 0.0 }
 0x260   : > { %v3531_v21 = vpop.f32.mrf.mxu0  ;;  %5987 = vst.msk [vmem:[%s8307_s27 + $0x2d8] sm:$0xff] %vm1631_vm8, %v3771_v29  ;;  %v3769_v26 = vadd.f32 %v3716_v54, %v3571_v51  ;;  %v3925_v3 = vsel %vm1631_vm8, %v3870_v48, 0.0  ;;  %v3873_v28 = vmul.f32 %v3771_v29, %v3771_v29  ;;  %v3829_v11 = vsel %vm1631_vm8, %v3771_v29, 0.0 }
 0x261   : > { %v3824_v25 = vadd.f32 %v3823_v12, %v3822_v31  ;;  %v3924_v32 = vadd.f32 %v3923_v0, %v3922_v50  ;;  %v6967_v46 = vpop.f32.mrf.mxu1  ;;  %v3574_v22 = vadd.f32 %v3531_v21, %v3366_v16 }
 0x262   : > { %v6934_v61 = vpop.f32.mrf.mxu0  ;;  %v3825_v59 = vsel %vm1631_vm8, %v3769_v26, 0.0  ;;  %v3871_v33 = vmul.f32 %v3769_v26, %v3769_v26  ;;  %5985 = vst.msk [vmem:[%s8307_s27 + $0x2c8] sm:$0xff] %vm1631_vm8, %v3769_v26  ;;  %v3774_v8 = vadd.f32 %v6967_v46, %v3576_v57  ;;  %v3931_v53 = vsel %vm1631_vm8, %v3873_v28, 0.0 }
 0x263   : > { %v3926_v19 = vadd.f32 %v3925_v3, %v3924_v32  ;;  %v3826_v55 = vadd.f32 %v3825_v59, %v3824_v25  ;;  %v3729_v4 = vpop.f32.mrf.mxu1  ;;  %v3577_v63 = vadd.f32 %v6934_v61, %v3377_v17 }
 0x264   : > { %v3534_v27 = vpop.f32.mrf.mxu0  ;;  %v3927_v6 = vsel %vm1631_vm8, %v3871_v33, 0.0  ;;  %5990 = vst.msk [vmem:[%s8307_s27 + $0x2f0] sm:$0xff] %vm1631_vm8, %v3774_v8  ;;  %v3772_v39 = vadd.f32 %v3729_v4, %v3574_v22  ;;  %v3876_v20 = vmul.f32 %v3774_v8, %v3774_v8  ;;  %v3835_v29 = vsel %vm1631_vm8, %v3774_v8, 0.0 }
 0x265   : > { %v3828_v24 = vadd.f32 %v3827_v15, %v3826_v55  ;;  %v3928_v14 = vadd.f32 %v3927_v6, %v3926_v19  ;;  %v6968_v58 = vpop.f32.mrf.mxu1  ;;  %v3575_v5 = vadd.f32 %v3534_v27, %v3369_v30 }
 0x266   : > { %v9435_v2 = vpop.f32.mrf.mxu0  ;;  %v3874_v52 = vmul.f32 %v3772_v39, %v3772_v39  ;;  %5988 = vst.msk [vmem:[%s8307_s27 + $0x2e0] sm:$0xff] %vm1631_vm8, %v3772_v39  ;;  %v3775_v35 = vadd.f32 %v6968_v58, %v3577_v63  ;;  %v3831_v34 = vsel %vm1631_vm8, %v3772_v39, 0.0  ;;  %v3937_v50 = vsel %vm1631_vm8, %v3876_v20, 0.0 }
 0x267   : > { %v3930_v42 = vadd.f32 %v3929_v41, %v3928_v14  ;;  %v3830_v60 = vadd.f32 %v3829_v11, %v3828_v24  ;;  %v3732_v7 = vpop.f32.mrf.mxu1  ;;  %v11106_v14 = vld [vmem:[#allocation63_spill] sm:$0xff] }
 0x268   : > { %v9440_v1 = vpop.f32.mrf.mxu0  ;;  %5991 = vst.msk [vmem:[%s8307_s27 + $0x2f8] sm:$0xff] %vm1631_vm8, %v3775_v35  ;;  %v3773_v56 = vadd.f32 %v3732_v7, %v3575_v5  ;;  %v3933_v62 = vsel %vm1631_vm8, %v3874_v52, 0.0  ;;  %v3877_v13 = vmul.f32 %v3775_v35, %v3775_v35  ;;  %v3837_v31 = vsel %vm1631_vm8, %v3775_v35, 0.0  ;;  %v11108_v35 = vld [vmem:[#allocation13_spill] sm:$0xff] }
 0x269   : > { %v3832_v9 = vadd.f32 %v3831_v34, %v3830_v60  ;;  %v3932_v18 = vadd.f32 %v3931_v53, %v3930_v42  ;;  %v9445_v45 = vpop.f32.mrf.mxu1 }
 0x26a   : > { %v9448_v36 = vpop.f32.mrf.mxu0  ;;  %v3833_v44 = vsel %vm1631_vm8, %v3773_v56, 0.0  ;;  %v3875_v23 = vmul.f32 %v3773_v56, %v3773_v56  ;;  %5989 = vst.msk [vmem:[%s8307_s27 + $0x2e8] sm:$0xff] %vm1631_vm8, %v3773_v56  ;;  %v3939_v12 = vsel %vm1631_vm8, %v3877_v13, 0.0 }
 0x26b   : > { %v3934_v51 = vadd.f32 %v3933_v62, %v3932_v18  ;;  %v3834_v37 = vadd.f32 %v3833_v44, %v3832_v9  ;;  %v9453_v48 = vpop.f32.mrf.mxu1 }
 0x26c   : > { %v9456_v40 = vpop.f32.mrf.mxu0  ;;  %v3935_v16 = vsel %vm1631_vm8, %v3875_v23, 0.0 }
 0x26d   : > { %v3836_v49 = vadd.f32 %v3835_v29, %v3834_v37  ;;  %v3936_v10 = vadd.f32 %v3935_v16, %v3934_v51  ;;  %v9459_v17 = vpop.f32.mrf.mxu1 }
 0x26e   : > { %v9463_v54 = vpop.f32.mrf.mxu0 }
 0x26f   : > { %v3838_v0 = vadd.f32 %v3837_v31, %v3836_v49  ;;  %v3938_v57 = vadd.f32 %v3937_v50, %v3936_v10  ;;  %v9465_v21 = vpop.f32.mrf.mxu1 }
 0x270   : > { %v9468_v26 = vpop.f32.mrf.mxu0 }
 0x271   : > { %v3839_v47 = vrot.slane %v3838_v0, 4  ;;  %v3940_v25 = vadd.f32 %v3939_v12, %v3938_v57  ;;  %v9470_v32 = vpop.f32.mrf.mxu1 }
 0x272   : > { %v9472_v3 = vpop.f32.mrf.mxu0 }
 0x273   : > { %v3840_v46 = vadd.f32 %v3839_v47, %v3838_v0  ;;  %v3941_v22 = vrot.slane %v3940_v25, 4  ;;  %v9474_v61 = vpop.f32.mrf.mxu1 }
 0x274   : > { %v9476_v59 = vpop.f32.mrf.mxu0 }
 0x275   : > { %v3841_v33 = vrot.slane %v3840_v46, 2  ;;  %v3942_v8 = vadd.f32 %v3941_v22, %v3940_v25  ;;  %v9478_v43 = vpop.f32.mrf.mxu1 }
 0x276   : > { %v9480_v38 = vpop.f32.mrf.mxu0 }
 0x277   : > { %v3842_v30 = vadd.f32 %v3841_v33, %v3840_v46  ;;  %v3943_v15 = vrot.slane %v3942_v8, 2  ;;  %v9482_v19 = vpop.f32.mrf.mxu1 }
 0x278   : > { %v9484_v55 = vpop.f32.mrf.mxu0 }
 0x279   : > { %v3843_v4 = vrot.slane %v3842_v30, 1  ;;  %v3944_v63 = vadd.f32 %v3943_v15, %v3942_v8  ;;  %v9486_v28 = vpop.f32.mrf.mxu1 }
 0x27a   : > { %v9488_v27 = vpop.f32.mrf.mxu0 }
 0x27b   : > { %v3844_v6 = vadd.f32 %v3843_v4, %v3842_v30  ;;  %v3945_v39 = vrot.slane %v3944_v63, 1  ;;  %v9490_v41 = vpop.f32.mrf.mxu1 }
 0x27c   : > { %v9492_v24 = vpop.f32.mrf.mxu0 }
 0x27d   : > { %v9495_v58 = vadd.f32 %v3844_v6, %v11106_v14  ;;  %v3946_v11 = vadd.f32 %v3945_v39, %v3944_v63  ;;  %v9497_v5 = vpop.f32.mrf.mxu1 }
 0x27e   : > { %v9499_v52 = vpop.f32.mrf.mxu0 }
 0x27f   : > { %11107 = vst [vmem:[#allocation2_spill] sm:$0xff] %v9495_v58  ;;  %v9502_v42 = vadd.f32 %v3946_v11, %v11108_v35  ;;  %v9504_v60 = vpop.f32.mrf.mxu1  ;;  %v4209_v58 = vadd.f32 %v9445_v45, %v9435_v2  ;;  %v4204_v2 = vadd.f32 %v9465_v21, %v9456_v40  ;;  %v4217_v40 = vadd.f32 %v9474_v61, %v9468_v26 }
 0x280   : > { %v9506_v7 = vpop.f32.mrf.mxu0  ;;  %v4220_v61 = vadd.f32 %v9482_v19, %v9476_v59 }
 0x281   : > { %11109 = vst [vmem:[#allocation3_spill] sm:$0xff] %v9502_v42  ;;  %v9508_v53 = vpop.f32.mrf.mxu1 }
 0x282   : > { %v9510_v34 = vpop.f32.mrf.mxu0 }
 0x283   : > { %v9512_v56 = vpop.f32.mrf.mxu1 }
 0x284   : > { %v9514_v9 = vpop.f32.mrf.mxu0 }
 0x285   : > { %v9516_v18 = vpop.f32.mrf.mxu1 }
 0x286   : > { %v9518_v20 = vpop.f32.mrf.mxu0 }
 0x287   : > { %v9520_v62 = vpop.f32.mrf.mxu1 }
 0x288   : > { %v9522_v44 = vpop.f32.mrf.mxu0 }
 0x289   : > { %v9524_v23 = vpop.f32.mrf.mxu1 }
 0x28a   : > { %v9526_v51 = vpop.f32.mrf.mxu0 }
 0x28b   : > { %v9528_v37 = vpop.f32.mrf.mxu1 }
 0x28c   : > { %v9530_v29 = vpop.f32.mrf.mxu0 }
 0x28d   : > { %v9532_v13 = vpop.f32.mrf.mxu1 }
 0x28e   : > { %v9534_v16 = vpop.f32.mrf.mxu0 }
 0x28f   : > { %v9536_v49 = vpop.f32.mrf.mxu1 }
 0x290   : > { %v9538_v10 = vpop.f32.mrf.mxu0 }
 0x291   : > { %v9540_v50 = vpop.f32.mrf.mxu1 }
 0x292   : > { %v9542_v31 = vpop.f32.mrf.mxu0 }
 0x293   : > { %v9544_v0 = vpop.f32.mrf.mxu1 }
 0x294   : > { %v9546_v57 = vpop.f32.mrf.mxu0 }
 0x295   : > { %v9548_v12 = vpop.f32.mrf.mxu1 }
 0x296   : > { %v9550_v47 = vpop.f32.mrf.mxu0 }
 0x297   : > { %v9552_v25 = vpop.f32.mrf.mxu1 }
 0x298   : > { %v9554_v46 = vpop.f32.mrf.mxu0 }
 0x299   : > { %v9556_v22 = vpop.f32.mrf.mxu1 }
 0x29a   : > { %v9558_v33 = vpop.f32.mrf.mxu0 }
 0x29b   : > { %11110 = vst [vmem:[#allocation7_spill] sm:$0xff] %v9558_v33  ;;  %v9560_v8 = vpop.f32.mrf.mxu1 }
 0x29c   : > { %11111 = vst [vmem:[#allocation12_spill] sm:$0xff] %v9560_v8  ;;  %v9562_v30 = vpop.f32.mrf.mxu0 }
 0x29d   : > { %11112 = vst [vmem:[#allocation22_spill] sm:$0xff] %v9562_v30  ;;  %v9564_v15 = vpop.f32.mrf.mxu1 }
 0x29e   : > { %11113 = vst [vmem:[#allocation52_spill] sm:$0xff] %v9564_v15  ;;  %v9566_v4 = vpop.f32.mrf.mxu0 }
 0x29f   : > { %11114 = vst [vmem:[#allocation40_spill] sm:$0xff] %v9566_v4  ;;  %v9568_v63 = vpop.f32.mrf.mxu1 }
 0x2a0   : > { %11115 = vst [vmem:[#allocation56_spill] sm:$0xff] %v9568_v63  ;;  %v9570_v6 = vpop.f32.mrf.mxu0 }
 0x2a1   : > { %11116 = vst [vmem:[#allocation57_spill] sm:$0xff] %v9570_v6  ;;  %v9572_v39 = vpop.f32.mrf.mxu1  ;;  %v4201_v6 = vadd.f32 %v9453_v48, %v9440_v1 }
 0x2a2   : > { %11117 = vst [vmem:[#allocation58_spill] sm:$0xff] %v9572_v39  ;;  %v9574_v14 = vpop.f32.mrf.mxu0 }
 0x2a3   : > { %11118 = vst [vmem:[#allocation59_spill] sm:$0xff] %v9574_v14  ;;  %v9576_v11 = vpop.f32.mrf.mxu1 }
 0x2a4   : > { %11119 = vst [vmem:[#allocation60_spill] sm:$0xff] %v9576_v11  ;;  %v9578_v35 = vpop.f32.mrf.mxu0  ;;  %v4212_v11 = vadd.f32 %v9459_v17, %v9448_v36 }
 0x2a5   : > { %11120 = vst [vmem:[#allocation43_spill] sm:$0xff] %v9578_v35  ;;  %v9580_v42 = vpop.f32.mrf.mxu1 }
 0x2a6   : > { %11121 = vst [vmem:[#allocation21_spill] sm:$0xff] %v9580_v42  ;;  %v7041_v30 = vpop.f32.mrf.mxu0 }
 0x2a7   : > { %v9584_v4 = vpop.f32.mrf.mxu1  ;;  %v4495_v63 = vadd.f32 %v7041_v30, %v4209_v58  ;;  %v4225_v58 = vadd.f32 %v9470_v32, %v9463_v54 }
 0x2a8   : > { %11122 = vst [vmem:[#allocation42_spill] sm:$0xff] %v9584_v4  ;;  %v4366_v39 = vpop.f32.mrf.mxu0 }
 0x2a9   : > { %v7075_v14 = vpop.f32.mrf.mxu1  ;;  %v4493_v35 = vadd.f32 %v4366_v39, %v4201_v6  ;;  %v4228_v6 = vadd.f32 %v9478_v43, %v9472_v3 }
 0x2aa   : > { %v7042_v15 = vpop.f32.mrf.mxu0  ;;  %v4693_v42 = vadd.f32 %v7075_v14, %v4495_v63 }
 0x2ab   : > { %v4564_v33 = vpop.f32.mrf.mxu1  ;;  %v4496_v45 = vadd.f32 %v7042_v15, %v4212_v11 }
 0x2ac   : > { %v4369_v4 = vpop.f32.mrf.mxu0  ;;  %6064 = vst.msk [vmem:[%s8307_s27 + $0x310] sm:$0xff] %vm1631_vm8, %v4693_v42  ;;  %v4691_v1 = vadd.f32 %v4564_v33, %v4493_v35  ;;  %v4795_v54 = vmul.f32 %v4693_v42, %v4693_v42 }
 0x2ad   : > { %v7076_v48 = vpop.f32.mrf.mxu1  ;;  %v4494_v30 = vadd.f32 %v4369_v4, %v4204_v2 }
 0x2ae   : > { %v7045_v8 = vpop.f32.mrf.mxu0  ;;  %6062 = vst.msk [vmem:[%s8307_s27 + $0x300] sm:$0xff] %vm1631_vm8, %v4691_v1  ;;  %v4694_v36 = vadd.f32 %v7076_v48, %v4496_v45  ;;  %v4793_v17 = vmul.f32 %v4691_v1, %v4691_v1  ;;  %v4723_v32 = vsel %vm1631_vm8, %v4691_v1, 0.0  ;;  %v4828_v59 = vsel %vm1631_vm8, %v4795_v54, 0.0 }
 0x2af   : > { %v4567_v63 = vpop.f32.mrf.mxu1  ;;  %v4499_v21 = vadd.f32 %v7045_v8, %v4225_v58  ;;  %v4726_v8 = vsel %vm1631_vm8, %v4693_v42, 0.0 }
 0x2b0   : > { %v4382_v15 = vpop.f32.mrf.mxu0  ;;  %6065 = vst.msk [vmem:[%s8307_s27 + $0x318] sm:$0xff] %vm1631_vm8, %v4694_v36  ;;  %v4692_v33 = vadd.f32 %v4567_v63, %v4494_v30  ;;  %v4825_v3 = vsel %vm1631_vm8, %v4793_v17, 0.0  ;;  %v4796_v1 = vmul.f32 %v4694_v36, %v4694_v36  ;;  %v4241_v63 = vadd.f32 %v9486_v28, %v9480_v38 }
 0x2b1   : > { %v7079_v4 = vpop.f32.mrf.mxu1  ;;  %v4497_v39 = vadd.f32 %v4382_v15, %v4217_v40  ;;  %v4728_v17 = vsel %vm1631_vm8, %v4694_v36, 0.0  ;;  %v4244_v38 = vadd.f32 %v9497_v5, %v9488_v27 }
 0x2b2   : > { %v7046_v14 = vpop.f32.mrf.mxu0  ;;  %v4724_v11 = vsel %vm1631_vm8, %v4692_v33, 0.0  ;;  %v4794_v35 = vmul.f32 %v4692_v33, %v4692_v33  ;;  %6063 = vst.msk [vmem:[%s8307_s27 + $0x308] sm:$0xff] %vm1631_vm8, %v4692_v33  ;;  %v4697_v26 = vadd.f32 %v7079_v4, %v4499_v21 }
 0x2b3   : > { %v4725_v43 = vadd.f32 %v4724_v11, %v4723_v32  ;;  %v4580_v2 = vpop.f32.mrf.mxu1  ;;  %v4500_v45 = vadd.f32 %v7046_v14, %v4228_v6  ;;  %v4233_v32 = vadd.f32 %v9490_v41, %v9484_v55 }
 0x2b4   : > { %v4385_v48 = vpop.f32.mrf.mxu0  ;;  %v4826_v58 = vsel %vm1631_vm8, %v4794_v35, 0.0  ;;  %6068 = vst.msk [vmem:[%s8307_s27 + $0x330] sm:$0xff] %vm1631_vm8, %v4697_v26  ;;  %v4695_v30 = vadd.f32 %v4580_v2, %v4497_v39  ;;  %v4830_v39 = vsel %vm1631_vm8, %v4796_v1, 0.0  ;;  %v4236_v1 = vadd.f32 %v9504_v60, %v9492_v24 }
 0x2b5   : > { %v4727_v19 = vadd.f32 %v4726_v8, %v4725_v43  ;;  %v4827_v42 = vadd.f32 %v4826_v58, %v4825_v3  ;;  %v7080_v40 = vpop.f32.mrf.mxu1  ;;  %v4498_v21 = vadd.f32 %v4385_v48, %v4220_v61  ;;  %v4799_v61 = vmul.f32 %v4697_v26, %v4697_v26 }
 0x2b6   : > { %v7049_v15 = vpop.f32.mrf.mxu0  ;;  %v4797_v33 = vmul.f32 %v4695_v30, %v4695_v30  ;;  %6066 = vst.msk [vmem:[%s8307_s27 + $0x320] sm:$0xff] %vm1631_vm8, %v4695_v30  ;;  %v4698_v6 = vadd.f32 %v7080_v40, %v4500_v45  ;;  %v4730_v11 = vsel %vm1631_vm8, %v4695_v30, 0.0  ;;  %v4734_v48 = vsel %vm1631_vm8, %v4697_v26, 0.0 }
 0x2b7   : > { %v4829_v28 = vadd.f32 %v4828_v59, %v4827_v42  ;;  %v4729_v54 = vadd.f32 %v4728_v17, %v4727_v19  ;;  %v4583_v4 = vpop.f32.mrf.mxu1  ;;  %v4503_v14 = vadd.f32 %v7049_v15, %v4241_v63  ;;  %v4836_v15 = vsel %vm1631_vm8, %v4799_v61, 0.0 }
 0x2b8   : > { %v4398_v36 = vpop.f32.mrf.mxu0  ;;  %6069 = vst.msk [vmem:[%s8307_s27 + $0x338] sm:$0xff] %vm1631_vm8, %v4698_v6  ;;  %v4696_v35 = vadd.f32 %v4583_v4, %v4498_v21  ;;  %v4832_v55 = vsel %vm1631_vm8, %v4797_v33, 0.0  ;;  %v4800_v19 = vmul.f32 %v4698_v6, %v4698_v6  ;;  %v4257_v21 = vadd.f32 %v9508_v53, %v9499_v52 }
 0x2b9   : > { %v4731_v8 = vadd.f32 %v4730_v11, %v4729_v54  ;;  %v4831_v3 = vadd.f32 %v4830_v39, %v4829_v28  ;;  %v7083_v41 = vpop.f32.mrf.mxu1  ;;  %v4501_v27 = vadd.f32 %v4398_v36, %v4233_v32  ;;  %v4736_v33 = vsel %vm1631_vm8, %v4698_v6, 0.0 }
 0x2ba   : > { %v7050_v5 = vpop.f32.mrf.mxu0  ;;  %v4732_v43 = vsel %vm1631_vm8, %v4696_v35, 0.0  ;;  %v4798_v2 = vmul.f32 %v4696_v35, %v4696_v35  ;;  %6067 = vst.msk [vmem:[%s8307_s27 + $0x328] sm:$0xff] %vm1631_vm8, %v4696_v35  ;;  %v4701_v45 = vadd.f32 %v7083_v41, %v4503_v14  ;;  %v4249_v4 = vadd.f32 %v9512_v56, %v9506_v7 }
 0x2bb   : > { %v4833_v58 = vadd.f32 %v4832_v55, %v4831_v3  ;;  %v4733_v30 = vadd.f32 %v4732_v43, %v4731_v8  ;;  %v4596_v63 = vpop.f32.mrf.mxu1  ;;  %v4504_v59 = vadd.f32 %v7050_v5, %v4244_v38  ;;  %v4260_v52 = vadd.f32 %v9516_v18, %v9510_v34 }
 0x2bc   : > { %v4401_v42 = vpop.f32.mrf.mxu0  ;;  %v4834_v40 = vsel %vm1631_vm8, %v4798_v2, 0.0  ;;  %6072 = vst.msk [vmem:[%s8307_s27 + $0x350] sm:$0xff] %vm1631_vm8, %v4701_v45  ;;  %v4699_v17 = vadd.f32 %v4596_v63, %v4501_v27  ;;  %v4838_v36 = vsel %vm1631_vm8, %v4800_v19, 0.0  ;;  %v4803_v8 = vmul.f32 %v4701_v45, %v4701_v45 }
 0x2bd   : > { %v4735_v24 = vadd.f32 %v4734_v48, %v4733_v30  ;;  %v4835_v60 = vadd.f32 %v4834_v40, %v4833_v58  ;;  %v7084_v26 = vpop.f32.mrf.mxu1  ;;  %v4502_v32 = vadd.f32 %v4401_v42, %v4236_v1  ;;  %v4252_v43 = vadd.f32 %v9520_v62, %v9514_v9 }
 0x2be   : > { %v7053_v38 = vpop.f32.mrf.mxu0  ;;  %v4801_v28 = vmul.f32 %v4699_v17, %v4699_v17  ;;  %6070 = vst.msk [vmem:[%s8307_s27 + $0x340] sm:$0xff] %vm1631_vm8, %v4699_v17  ;;  %v4702_v54 = vadd.f32 %v7084_v26, %v4504_v59  ;;  %v4738_v35 = vsel %vm1631_vm8, %v4699_v17, 0.0  ;;  %v4742_v2 = vsel %vm1631_vm8, %v4701_v45, 0.0 }
 0x2bf   : > { %v4837_v53 = vadd.f32 %v4836_v15, %v4835_v60  ;;  %v4737_v39 = vadd.f32 %v4736_v33, %v4735_v24  ;;  %v4599_v14 = vpop.f32.mrf.mxu1  ;;  %v4507_v11 = vadd.f32 %v7053_v38, %v4257_v21  ;;  %v4273_v40 = vadd.f32 %v9524_v23, %v9518_v20 }
 0x2c0   : > { %v4414_v6 = vpop.f32.mrf.mxu0  ;;  %6073 = vst.msk [vmem:[%s8307_s27 + $0x358] sm:$0xff] %vm1631_vm8, %v4702_v54  ;;  %v4700_v61 = vadd.f32 %v4599_v14, %v4502_v32  ;;  %v4840_v7 = vsel %vm1631_vm8, %v4801_v28, 0.0  ;;  %v4804_v63 = vmul.f32 %v4702_v54, %v4702_v54  ;;  %v4844_v17 = vsel %vm1631_vm8, %v4803_v8, 0.0 }
 0x2c1   : > { %v4739_v3 = vadd.f32 %v4738_v35, %v4737_v39  ;;  %v4839_v55 = vadd.f32 %v4838_v36, %v4837_v53  ;;  %v7087_v56 = vpop.f32.mrf.mxu1  ;;  %v4505_v34 = vadd.f32 %v4414_v6, %v4249_v4  ;;  %v4744_v21 = vsel %vm1631_vm8, %v4702_v54, 0.0 }
 0x2c2   : > { %v7054_v18 = vpop.f32.mrf.mxu0  ;;  %v4740_v41 = vsel %vm1631_vm8, %v4700_v61, 0.0  ;;  %v4802_v27 = vmul.f32 %v4700_v61, %v4700_v61  ;;  %6071 = vst.msk [vmem:[%s8307_s27 + $0x348] sm:$0xff] %vm1631_vm8, %v4700_v61  ;;  %v4705_v5 = vadd.f32 %v7087_v56, %v4507_v11  ;;  %v4265_v33 = vadd.f32 %v9528_v37, %v9522_v44 }
 0x2c3   : > { %v4841_v1 = vadd.f32 %v4840_v7, %v4839_v55  ;;  %v4741_v48 = vadd.f32 %v4740_v41, %v4739_v3  ;;  %v4612_v58 = vpop.f32.mrf.mxu1  ;;  %v4508_v30 = vadd.f32 %v7054_v18, %v4260_v52  ;;  %v4276_v20 = vadd.f32 %v9532_v13, %v9526_v51 }
 0x2c4   : > { %v4417_v59 = vpop.f32.mrf.mxu0  ;;  %v4842_v19 = vsel %vm1631_vm8, %v4802_v27, 0.0  ;;  %6076 = vst.msk [vmem:[%s8307_s27 + $0x370] sm:$0xff] %vm1631_vm8, %v4705_v5  ;;  %v4703_v42 = vadd.f32 %v4612_v58, %v4505_v34  ;;  %v4846_v28 = vsel %vm1631_vm8, %v4804_v63, 0.0  ;;  %v4807_v39 = vmul.f32 %v4705_v5, %v4705_v5 }
 0x2c5   : > { %v4743_v9 = vadd.f32 %v4742_v2, %v4741_v48  ;;  %v4843_v62 = vadd.f32 %v4842_v19, %v4841_v1  ;;  %v7088_v45 = vpop.f32.mrf.mxu1  ;;  %v4506_v15 = vadd.f32 %v4417_v59, %v4252_v43  ;;  %v4268_v61 = vadd.f32 %v9536_v49, %v9530_v29 }
 0x2c6   : > { %v7057_v24 = vpop.f32.mrf.mxu0  ;;  %v4805_v60 = vmul.f32 %v4703_v42, %v4703_v42  ;;  %6074 = vst.msk [vmem:[%s8307_s27 + $0x360] sm:$0xff] %vm1631_vm8, %v4703_v42  ;;  %v4706_v26 = vadd.f32 %v7088_v45, %v4508_v30  ;;  %v4746_v52 = vsel %vm1631_vm8, %v4703_v42, 0.0  ;;  %v4750_v8 = vsel %vm1631_vm8, %v4705_v5, 0.0 }
 0x2c7   : > { %v4845_v23 = vadd.f32 %v4844_v17, %v4843_v62  ;;  %v4745_v32 = vadd.f32 %v4744_v21, %v4743_v9  ;;  %v4615_v38 = vpop.f32.mrf.mxu1  ;;  %v4511_v4 = vadd.f32 %v7057_v24, %v4273_v40  ;;  %v4289_v43 = vadd.f32 %v9540_v50, %v9534_v16 }
 0x2c8   : > { %v4430_v54 = vpop.f32.mrf.mxu0  ;;  %6077 = vst.msk [vmem:[%s8307_s27 + $0x378] sm:$0xff] %vm1631_vm8, %v4706_v26  ;;  %v4704_v53 = vadd.f32 %v4615_v38, %v4506_v15  ;;  %v4848_v44 = vsel %vm1631_vm8, %v4805_v60, 0.0  ;;  %v4808_v34 = vmul.f32 %v4706_v26, %v4706_v26  ;;  %v4852_v2 = vsel %vm1631_vm8, %v4807_v39, 0.0 }
 0x2c9   : > { %v4747_v14 = vadd.f32 %v4746_v52, %v4745_v32  ;;  %v4847_v36 = vadd.f32 %v4846_v28, %v4845_v23  ;;  %v7091_v37 = vpop.f32.mrf.mxu1  ;;  %v4509_v51 = vadd.f32 %v4430_v54, %v4265_v33  ;;  %v4752_v1 = vsel %vm1631_vm8, %v4706_v26, 0.0 }
 0x2ca   : > { %v7058_v13 = vpop.f32.mrf.mxu0  ;;  %v4748_v11 = vsel %vm1631_vm8, %v4704_v53, 0.0  ;;  %v4806_v6 = vmul.f32 %v4704_v53, %v4704_v53  ;;  %6075 = vst.msk [vmem:[%s8307_s27 + $0x368] sm:$0xff] %vm1631_vm8, %v4704_v53  ;;  %v4709_v35 = vadd.f32 %v7091_v37, %v4511_v4  ;;  %v4281_v59 = vadd.f32 %v9544_v0, %v9538_v10 }
 0x2cb   : > { %v4849_v3 = vadd.f32 %v4848_v44, %v4847_v36  ;;  %v4749_v55 = vadd.f32 %v4748_v11, %v4747_v14  ;;  %v4628_v7 = vpop.f32.mrf.mxu1  ;;  %v4512_v56 = vadd.f32 %v7058_v13, %v4276_v20  ;;  %v4292_v16 = vadd.f32 %v9548_v12, %v9542_v31 }
 0x2cc   : > { %v4433_v18 = vpop.f32.mrf.mxu0  ;;  %v4850_v41 = vsel %vm1631_vm8, %v4806_v6, 0.0  ;;  %6080 = vst.msk [vmem:[%s8307_s27 + $0x390] sm:$0xff] %vm1631_vm8, %v4709_v35  ;;  %v4707_v27 = vadd.f32 %v4628_v7, %v4509_v51  ;;  %v4854_v40 = vsel %vm1631_vm8, %v4808_v34, 0.0  ;;  %v4811_v21 = vmul.f32 %v4709_v35, %v4709_v35 }
 0x2cd   : > { %v4751_v29 = vadd.f32 %v4750_v8, %v4749_v55  ;;  %v4851_v49 = vadd.f32 %v4850_v41, %v4849_v3  ;;  %v7092_v5 = vpop.f32.mrf.mxu1  ;;  %v4510_v48 = vadd.f32 %v4433_v18, %v4268_v61  ;;  %v4284_v20 = vadd.f32 %v9552_v25, %v9546_v57  ;;  %v11124_v8 = vld [vmem:[#allocation7_spill] sm:$0xff]  ;;  %v11125_v3 = vld [vmem:[#allocation52_spill] sm:$0xff] }
 0x2ce   : > { %v7061_v58 = vpop.f32.mrf.mxu0  ;;  %v4809_v30 = vmul.f32 %v4707_v27, %v4707_v27  ;;  %6078 = vst.msk [vmem:[%s8307_s27 + $0x380] sm:$0xff] %vm1631_vm8, %v4707_v27  ;;  %v4710_v63 = vadd.f32 %v7092_v5, %v4512_v56  ;;  %v4754_v62 = vsel %vm1631_vm8, %v4707_v27, 0.0  ;;  %v4758_v23 = vsel %vm1631_vm8, %v4709_v35, 0.0  ;;  %v11123_v35 = vld [vmem:[#allocation12_spill] sm:$0xff] }
 0x2cf   : > { %v4853_v50 = vadd.f32 %v4852_v2, %v4851_v49  ;;  %v4753_v19 = vadd.f32 %v4752_v1, %v4751_v29  ;;  %v4631_v42 = vpop.f32.mrf.mxu1  ;;  %v4515_v17 = vadd.f32 %v7061_v58, %v4289_v43  ;;  %v4305_v14 = vadd.f32 %v9556_v22, %v9550_v47 }
 0x2d0   : > { %v4446_v9 = vpop.f32.mrf.mxu0  ;;  %6081 = vst.msk [vmem:[%s8307_s27 + $0x398] sm:$0xff] %vm1631_vm8, %v4710_v63  ;;  %v4708_v45 = vadd.f32 %v4631_v42, %v4510_v48  ;;  %v4856_v10 = vsel %vm1631_vm8, %v4809_v30, 0.0  ;;  %v4812_v54 = vmul.f32 %v4710_v63, %v4710_v63  ;;  %v4860_v36 = vsel %vm1631_vm8, %v4811_v21, 0.0 }
 0x2d1   : > { %v4755_v15 = vadd.f32 %v4754_v62, %v4753_v19  ;;  %v4855_v24 = vadd.f32 %v4854_v40, %v4853_v50  ;;  %v7095_v0 = vpop.f32.mrf.mxu1  ;;  %v4513_v31 = vadd.f32 %v4446_v9, %v4281_v59  ;;  %v4760_v37 = vsel %vm1631_vm8, %v4710_v63, 0.0  ;;  %v11126_v63 = vld [vmem:[#allocation22_spill] sm:$0xff]  ;;  %v11127_v59 = vld [vmem:[#allocation56_spill] sm:$0xff] }
 0x2d2   : > { %v7062_v12 = vpop.f32.mrf.mxu0  ;;  %v4756_v60 = vsel %vm1631_vm8, %v4708_v45, 0.0  ;;  %v4810_v26 = vmul.f32 %v4708_v45, %v4708_v45  ;;  %6079 = vst.msk [vmem:[%s8307_s27 + $0x388] sm:$0xff] %vm1631_vm8, %v4708_v45  ;;  %v4713_v33 = vadd.f32 %v7095_v0, %v4515_v17  ;;  %v4297_v61 = vadd.f32 %v11123_v35, %v9554_v46 }
 0x2d3   : > { %v4857_v32 = vadd.f32 %v4856_v10, %v4855_v24  ;;  %v4757_v38 = vadd.f32 %v4756_v60, %v4755_v15  ;;  %v4644_v28 = vpop.f32.mrf.mxu1  ;;  %v4516_v4 = vadd.f32 %v7062_v12, %v4292_v16  ;;  %v4308_v47 = vadd.f32 %v11125_v3, %v11124_v8  ;;  %v11128_v15 = vld [vmem:[#allocation40_spill] sm:$0xff]  ;;  %v11129_v24 = vld [vmem:[#allocation58_spill] sm:$0xff] }
 0x2d4   : > { %v4449_v52 = vpop.f32.mrf.mxu0  ;;  %v4858_v53 = vsel %vm1631_vm8, %v4810_v26, 0.0  ;;  %6084 = vst.msk [vmem:[%s8307_s27 + $0x3b0] sm:$0xff] %vm1631_vm8, %v4713_v33  ;;  %v4711_v39 = vadd.f32 %v4644_v28, %v4513_v31  ;;  %v4862_v56 = vsel %vm1631_vm8, %v4812_v54, 0.0  ;;  %v4815_v43 = vmul.f32 %v4713_v33, %v4713_v33  ;;  %v11131_v28 = vld [vmem:[#allocation60_spill] sm:$0xff]  ;;  %v11132_v54 = vld [vmem:[#allocation59_spill] sm:$0xff] }
 0x2d5   : > { %v4759_v57 = vadd.f32 %v4758_v23, %v4757_v38  ;;  %v4859_v25 = vadd.f32 %v4858_v53, %v4857_v32  ;;  %v7096_v44 = vpop.f32.mrf.mxu1  ;;  %v4514_v51 = vadd.f32 %v4449_v52, %v4284_v20  ;;  %v4300_v16 = vadd.f32 %v11127_v59, %v11126_v63  ;;  %v11130_v38 = vld [vmem:[#allocation57_spill] sm:$0xff] }
 0x2d6   : > { %v7065_v13 = vpop.f32.mrf.mxu0  ;;  %v4813_v11 = vmul.f32 %v4711_v39, %v4711_v39  ;;  %6082 = vst.msk [vmem:[%s8307_s27 + $0x3a0] sm:$0xff] %vm1631_vm8, %v4711_v39  ;;  %v4714_v6 = vadd.f32 %v7096_v44, %v4516_v4  ;;  %v4762_v41 = vsel %vm1631_vm8, %v4711_v39, 0.0  ;;  %v4766_v50 = vsel %vm1631_vm8, %v4713_v33, 0.0  ;;  %v11133_v52 = vld [vmem:[#allocation21_spill] sm:$0xff] }
 0x2d7   : > { %v4861_v22 = vadd.f32 %v4860_v36, %v4859_v25  ;;  %v4761_v55 = vadd.f32 %v4760_v37, %v4759_v57  ;;  %v4647_v7 = vpop.f32.mrf.mxu1  ;;  %v4519_v34 = vadd.f32 %v7065_v13, %v4305_v14  ;;  %v4321_v10 = vadd.f32 %v11129_v24, %v11128_v15 }
 0x2d8   : > { %v4462_v18 = vpop.f32.mrf.mxu0  ;;  %6085 = vst.msk [vmem:[%s8307_s27 + $0x3b8] sm:$0xff] %vm1631_vm8, %v4714_v6  ;;  %v4712_v27 = vadd.f32 %v4647_v7, %v4514_v51  ;;  %v4864_v46 = vsel %vm1631_vm8, %v4813_v11, 0.0  ;;  %v4816_v9 = vmul.f32 %v4714_v6, %v4714_v6  ;;  %v4868_v0 = vsel %vm1631_vm8, %v4815_v43, 0.0  ;;  %v11134_v7 = vld [vmem:[#allocation43_spill] sm:$0xff] }
 0x2d9   : > { %v4763_v2 = vadd.f32 %v4762_v41, %v4761_v55  ;;  %v4863_v29 = vadd.f32 %v4862_v56, %v4861_v22  ;;  %v7099_v49 = vpop.f32.mrf.mxu1  ;;  %v4517_v5 = vadd.f32 %v4462_v18, %v4297_v61  ;;  %v4768_v26 = vsel %vm1631_vm8, %v4714_v6, 0.0  ;;  %v11135_v56 = vld [vmem:[#allocation42_spill] sm:$0xff] }
 0x2da   : > { %v7066_v1 = vpop.f32.mrf.mxu0  ;;  %v4764_v48 = vsel %vm1631_vm8, %v4712_v27, 0.0  ;;  %v4814_v58 = vmul.f32 %v4712_v27, %v4712_v27  ;;  %6083 = vst.msk [vmem:[%s8307_s27 + $0x3a8] sm:$0xff] %vm1631_vm8, %v4712_v27  ;;  %v4717_v30 = vadd.f32 %v7099_v49, %v4519_v34  ;;  %v4313_v4 = vadd.f32 %v11131_v28, %v11130_v38 }
 0x2db   : > { %v4865_v19 = vadd.f32 %v4864_v46, %v4863_v29  ;;  %v4765_v42 = vadd.f32 %v4764_v48, %v4763_v2  ;;  %v4660_v40 = vpop.f32.mrf.mxu1  ;;  %v4520_v17 = vadd.f32 %v7066_v1, %v4308_v47  ;;  %v4324_v53 = vadd.f32 %v11133_v52, %v11132_v54 }
 0x2dc   : > { %v4465_v62 = vpop.f32.mrf.mxu0  ;;  %v4866_v45 = vsel %vm1631_vm8, %v4814_v58, 0.0  ;;  %6088 = vst.msk [vmem:[%s8307_s27 + $0x3d0] sm:$0xff] %vm1631_vm8, %v4717_v30  ;;  %v4715_v21 = vadd.f32 %v4660_v40, %v4517_v5  ;;  %v4870_v57 = vsel %vm1631_vm8, %v4816_v9, 0.0  ;;  %v4819_v13 = vmul.f32 %v4717_v30, %v4717_v30 }
 0x2dd   : > { %v4767_v31 = vadd.f32 %v4766_v50, %v4765_v42  ;;  %v4867_v12 = vadd.f32 %v4866_v45, %v4865_v19  ;;  %v7100_v60 = vpop.f32.mrf.mxu1  ;;  %v4518_v33 = vadd.f32 %v4465_v62, %v4300_v16  ;;  %v4316_v34 = vadd.f32 %v11135_v56, %v11134_v7 }
 0x2de   : > { %v7069_v20 = vpop.f32.mrf.mxu0  ;;  %v4817_v23 = vmul.f32 %v4715_v21, %v4715_v21  ;;  %6086 = vst.msk [vmem:[%s8307_s27 + $0x3c0] sm:$0xff] %vm1631_vm8, %v4715_v21  ;;  %v4718_v32 = vadd.f32 %v7100_v60, %v4520_v17  ;;  %v4770_v37 = vsel %vm1631_vm8, %v4715_v21, 0.0  ;;  %v4774_v18 = vsel %vm1631_vm8, %v4717_v30, 0.0 }
 0x2df   : > { %v4869_v39 = vadd.f32 %v4868_v0, %v4867_v12  ;;  %v4769_v14 = vadd.f32 %v4768_v26, %v4767_v31  ;;  %v4663_v36 = vpop.f32.mrf.mxu1  ;;  %v4523_v25 = vadd.f32 %v7069_v20, %v4321_v10  ;;  %v4876_v1 = vsel %vm1631_vm8, %v4819_v13, 0.0 }
 0x2e0   : > { %v4478_v44 = vpop.f32.mrf.mxu0  ;;  %6089 = vst.msk [vmem:[%s8307_s27 + $0x3d8] sm:$0xff] %vm1631_vm8, %v4718_v32  ;;  %v4716_v51 = vadd.f32 %v4663_v36, %v4518_v33  ;;  %v4872_v35 = vsel %vm1631_vm8, %v4817_v23, 0.0  ;;  %v4820_v29 = vmul.f32 %v4718_v32, %v4718_v32  ;;  %v4776_v30 = vsel %vm1631_vm8, %v4718_v32, 0.0 }
 0x2e1   : > { %v4771_v11 = vadd.f32 %v4770_v37, %v4769_v14  ;;  %v4871_v6 = vadd.f32 %v4870_v57, %v4869_v39  ;;  %v7103_v61 = vpop.f32.mrf.mxu1  ;;  %v4521_v8 = vadd.f32 %v4478_v44, %v4313_v4 }
 0x2e2   : > { %v7070_v3 = vpop.f32.mrf.mxu0  ;;  %v4772_v47 = vsel %vm1631_vm8, %v4716_v51, 0.0  ;;  %v4818_v22 = vmul.f32 %v4716_v51, %v4716_v51  ;;  %6087 = vst.msk [vmem:[%s8307_s27 + $0x3c8] sm:$0xff] %vm1631_vm8, %v4716_v51  ;;  %v4721_v55 = vadd.f32 %v7103_v61, %v4523_v25  ;;  %v4878_v17 = vsel %vm1631_vm8, %v4820_v29, 0.0 }
 0x2e3   : > { %v4873_v41 = vadd.f32 %v4872_v35, %v4871_v6  ;;  %v4773_v27 = vadd.f32 %v4772_v47, %v4771_v11  ;;  %v4676_v43 = vpop.f32.mrf.mxu1  ;;  %v4524_v2 = vadd.f32 %v7070_v3, %v4324_v53  ;;  %v11136_v6 = vld [vmem:[#allocation2_spill] sm:$0xff] }
 0x2e4   : > { %v4481_v46 = vpop.f32.mrf.mxu0  ;;  %v4874_v49 = vsel %vm1631_vm8, %v4818_v22, 0.0  ;;  %6092 = vst.msk [vmem:[%s8307_s27 + $0x3f0] sm:$0xff] %vm1631_vm8, %v4721_v55  ;;  %v4719_v5 = vadd.f32 %v4676_v43, %v4521_v8  ;;  %v4823_v15 = vmul.f32 %v4721_v55, %v4721_v55  ;;  %v4782_v60 = vsel %vm1631_vm8, %v4721_v55, 0.0  ;;  %v11137_v8 = vld [vmem:[#allocation3_spill] sm:$0xff] }
 0x2e5   : > { %v4775_v48 = vadd.f32 %v4774_v18, %v4773_v27  ;;  %v4875_v58 = vadd.f32 %v4874_v49, %v4873_v41  ;;  %v7104_v63 = vpop.f32.mrf.mxu1  ;;  %v4522_v59 = vadd.f32 %v4481_v46, %v4316_v34  ;;  %v4973_v18 = vlaneseq  ;;  %v4933_v27 = vld [vmem:[%s10671_s2] sm:$0x1]  ;;  %v4942_v46 = vld [vmem:[%s8307_s27 + $0x10] sm:$0xff] }
 0x2e6   : > { %v4821_v16 = vmul.f32 %v4719_v5, %v4719_v5  ;;  %6090 = vst.msk [vmem:[%s8307_s27 + $0x3e0] sm:$0xff] %vm1631_vm8, %v4719_v5  ;;  %v4722_v50 = vadd.f32 %v7104_v63, %v4524_v2  ;;  %v4778_v9 = vsel %vm1631_vm8, %v4719_v5, 0.0  ;;  %v4884_v32 = vsel %vm1631_vm8, %v4823_v15, 0.0  ;;  %v4940_v49 = vld [vmem:[%s8307_s27] sm:$0xff] }
 0x2e7   : > { %v4877_v19 = vadd.f32 %v4876_v1, %v4875_v58  ;;  %v4777_v42 = vadd.f32 %v4776_v30, %v4775_v48  ;;  %v4679_v40 = vpop.f32.mrf.mxu1  ;;  %v9778_v41 = vshrl.u32 %v4973_v18, 7  ;;  %v9789_v5 = vld [vmem:[%s10672_s3] sm:$0x1]  ;;  %v4943_v1 = vld [vmem:[%s8307_s27 + $0x18] sm:$0xff]  ;;  %v4941_v48 = vld [vmem:[%s8307_s27 + $0x8] sm:$0xff] }
 0x2e8   : > { %6093 = vst.msk [vmem:[%s8307_s27 + $0x3f8] sm:$0xff] %vm1631_vm8, %v4722_v50  ;;  %v4720_v62 = vadd.f32 %v4679_v40, %v4522_v59  ;;  %v4880_v24 = vsel %vm1631_vm8, %v4821_v16, 0.0  ;;  %v4824_v26 = vmul.f32 %v4722_v50, %v4722_v50  ;;  %v4784_v38 = vsel %vm1631_vm8, %v4722_v50, 0.0  ;;  %v4946_v58 = vld [vmem:[%s8307_s27 + $0x30] sm:$0xff]  ;;  %v4944_v63 = vld [vmem:[%s8307_s27 + $0x20] sm:$0xff]  ;;  %v4947_v16 = vld [vmem:[%s8307_s27 + $0x38] sm:$0xff] }
 0x2e9   : > { %v4779_v45 = vadd.f32 %v4778_v9, %v4777_v42  ;;  %v4879_v21 = vadd.f32 %v4878_v17, %v4877_v19  ;;  %v4975_v43 = vsub.s32 0, %v9778_v41  ;;  %v4945_v50 = vld [vmem:[%s8307_s27 + $0x28] sm:$0xff]  ;;  %v4950_v19 = vld [vmem:[%s8307_s27 + $0x50] sm:$0xff]  ;;  %v4948_v42 = vld [vmem:[%s8307_s27 + $0x40] sm:$0xff] }
 0x2ea   : > { %v4780_v10 = vsel %vm1631_vm8, %v4720_v62, 0.0  ;;  %v4822_v0 = vmul.f32 %v4720_v62, %v4720_v62  ;;  %6091 = vst.msk [vmem:[%s8307_s27 + $0x3e8] sm:$0xff] %vm1631_vm8, %v4720_v62  ;;  %v4886_v54 = vsel %vm1631_vm8, %v4824_v26, 0.0  ;;  %v4951_v40 = vld [vmem:[%s8307_s27 + $0x58] sm:$0xff]  ;;  %v4949_v17 = vld [vmem:[%s8307_s27 + $0x48] sm:$0xff]  ;;  %v4954_v9 = vld [vmem:[%s8307_s27 + $0x70] sm:$0xff] }
 0x2eb   : > { %v4881_v31 = vadd.f32 %v4880_v24, %v4879_v21  ;;  %v4781_v12 = vadd.f32 %v4780_v10, %v4779_v45  ;;  %v4952_v62 = vld [vmem:[%s8307_s27 + $0x60] sm:$0xff]  ;;  %v4955_v10 = vld [vmem:[%s8307_s27 + $0x78] sm:$0xff]  ;;  %v4969_v18 = vld [vmem:[%s8307_s27 + $0xe8] sm:$0xff] }
 0x2ec   : > { %v4882_v33 = vsel %vm1631_vm8, %v4822_v0, 0.0  ;;  %v4953_v0 = vld [vmem:[%s8307_s27 + $0x68] sm:$0xff] }
 0x2ed   : > { %v4783_v20 = vadd.f32 %v4782_v60, %v4781_v12  ;;  %v4883_v23 = vadd.f32 %v4882_v33, %v4881_v31  ;;  %v4958_v31 = vld [vmem:[%s8307_s27 + $0x90] sm:$0xff] }
 0x2ef   : > { %v4785_v28 = vadd.f32 %v4784_v38, %v4783_v20  ;;  %v4885_v4 = vadd.f32 %v4884_v32, %v4883_v23  ;;  %v4956_v20 = vld [vmem:[%s8307_s27 + $0x80] sm:$0xff]  ;;  %v4959_v23 = vld [vmem:[%s8307_s27 + $0x98] sm:$0xff]  ;;  %v4957_v32 = vld [vmem:[%s8307_s27 + $0x88] sm:$0xff] }
 0x2f1   : > { %v4786_v52 = vrot.slane %v4785_v28, 4  ;;  %v4887_v53 = vadd.f32 %v4886_v54, %v4885_v4 }
 0x2f3   : > { %v4787_v39 = vadd.f32 %v4786_v52, %v4785_v28  ;;  %v4888_v14 = vrot.slane %v4887_v53, 4  ;;  %v4962_v52 = vld [vmem:[%s8307_s27 + $0xb0] sm:$0xff] }
 0x2f5   : > { %v4788_v36 = vrot.slane %v4787_v39, 2  ;;  %v4889_v57 = vadd.f32 %v4888_v14, %v4887_v53  ;;  %v4960_v53 = vld [vmem:[%s8307_s27 + $0xa0] sm:$0xff] }
 0x2f7   : > { %v4789_v25 = vadd.f32 %v4788_v36, %v4787_v39  ;;  %v4890_v44 = vrot.slane %v4889_v57, 2  ;;  %v4963_v39 = vld [vmem:[%s8307_s27 + $0xb8] sm:$0xff] }
 0x2f9   : > { %v4790_v37 = vrot.slane %v4789_v25, 1  ;;  %v4891_v51 = vadd.f32 %v4890_v44, %v4889_v57  ;;  %v4961_v44 = vld [vmem:[%s8307_s27 + $0xa8] sm:$0xff] }
 0x2fb   : > { %v4791_v13 = vadd.f32 %v4790_v37, %v4789_v25  ;;  %v4892_v11 = vrot.slane %v4891_v51, 1  ;;  %v4966_v37 = vld [vmem:[%s8307_s27 + $0xd0] sm:$0xff] }
 0x2fd   : > { %v4792_v35 = vadd.f32 %v4791_v13, %v11136_v6  ;;  %v4893_v61 = vadd.f32 %v4892_v11, %v4891_v51  ;;  %v4964_v51 = vld [vmem:[%s8307_s27 + $0xc0] sm:$0xff] }
 0x2ff   : > { %v4894_v3 = vadd.f32 %v4893_v61, %v11137_v8  ;;  %v4928_v47 = vmul.f32 0.0009765625, %v4792_v35  ;;  %v4967_v61 = vld [vmem:[%s8307_s27 + $0xd8] sm:$0xff]  ;;  %v4965_v8 = vld [vmem:[%s8307_s27 + $0xc8] sm:$0xff] }
 0x301   : > { %v4929_v22 = vmul.f32 0.0009765625, %v4894_v3  ;;  %v4930_v55 = vmul.f32 %v4928_v47, %v4928_v47  ;;  %v4970_v3 = vld [vmem:[%s8307_s27 + $0xf0] sm:$0xff] }
 0x303   : > { %v4931_v7 = vsub.f32 %v4929_v22, %v4930_v55 }
 0x305   : > { %v4932_v56 = vmax.f32 %v4931_v7, 0.0 }
 0x307   : > { %v4934_v34 = vadd.f32 1e-05, %v4932_v56  ;;  %v4968_v56 = vld [vmem:[%s8307_s27 + $0xe0] sm:$0xff] }
 0x309   : > { %7148 = vrsqrt.f32 %v4934_v34  ;;  %v4971_v34 = vld [vmem:[%s8307_s27 + $0xf8] sm:$0xff] }
 0x316   : > { %v7149_v2 = vpop.eup %7148 }
 0x317   : > { %v4936_v29 = vmul.f32 %v7149_v2, %v4933_v27 }
 0x319   : > { %v9795_v30 = vmul.f32 %v4936_v29, %v4928_v47  ;;  %v9799_v59 = vrot.slane %v4936_v29, %v4975_v43 }
 0x31b   : > { %v4939_v45 = vsub.f32 %v9789_v5, %v9795_v30  ;;  %v9812_v21 = vmul.f32 %v9799_v59, %v4940_v49  ;;  %v9815_v15 = vmul.f32 %v9799_v59, %v4941_v48  ;;  %v9818_v24 = vmul.f32 %v9799_v59, %v4942_v46  ;;  %v6096_v49 = vld [vmem:[%s8307_s27 + $0x110] sm:$0xff]  ;;  %v6094_v5 = vld [vmem:[%s8307_s27 + $0x100] sm:$0xff] }
 0x31c   : > { %v4981_v12 = vmul.f32 %v9799_v59, %v4943_v1  ;;  %v4982_v60 = vmul.f32 %v9799_v59, %v4944_v63  ;;  %v4983_v26 = vmul.f32 %v9799_v59, %v4945_v50  ;;  %v4984_v33 = vmul.f32 %v9799_v59, %v4946_v58  ;;  %v6095_v1 = vld [vmem:[%s8307_s27 + $0x108] sm:$0xff]  ;;  %v6098_v50 = vld [vmem:[%s8307_s27 + $0x120] sm:$0xff] }
 0x31d   : > { %v4985_v38 = vmul.f32 %v9799_v59, %v4947_v16  ;;  %v4986_v28 = vmul.f32 %v9799_v59, %v4948_v42  ;;  %v4987_v4 = vmul.f32 %v9799_v59, %v4949_v17  ;;  %v4988_v54 = vmul.f32 %v9799_v59, %v4950_v19  ;;  %v6097_v16 = vld [vmem:[%s8307_s27 + $0x118] sm:$0xff]  ;;  %v6099_v19 = vld [vmem:[%s8307_s27 + $0x128] sm:$0xff] }
 0x31e   : > { %v4989_v14 = vmul.f32 %v9799_v59, %v4951_v40  ;;  %v4990_v36 = vmul.f32 %v9799_v59, %v4952_v62  ;;  %v4991_v57 = vmul.f32 %v9799_v59, %v4953_v0  ;;  %v4992_v25 = vmul.f32 %v9799_v59, %v4954_v9 }
 0x31f   : > { %v4993_v13 = vmul.f32 %v9799_v59, %v4955_v10  ;;  %v4994_v11 = vmul.f32 %v9799_v59, %v4956_v20  ;;  %v4995_v6 = vmul.f32 %v9799_v59, %v4957_v32  ;;  %v4996_v35 = vmul.f32 %v9799_v59, %v4958_v31 }
 0x320   : > { %v4997_v47 = vmul.f32 %v9799_v59, %v4959_v23  ;;  %v4998_v22 = vmul.f32 %v9799_v59, %v4960_v53  ;;  %v4999_v55 = vmul.f32 %v9799_v59, %v4961_v44  ;;  %v5000_v7 = vmul.f32 %v9799_v59, %v4962_v52 }
 0x321   : > { %v5001_v27 = vmul.f32 %v9799_v59, %v4963_v39  ;;  %v5002_v2 = vmul.f32 %v9799_v59, %v4964_v51  ;;  %v5003_v29 = vmul.f32 %v9799_v59, %v4965_v8  ;;  %v5004_v46 = vmul.f32 %v9799_v59, %v4966_v37 }
 0x322   : > { %v5005_v48 = vmul.f32 %v9799_v59, %v4967_v61  ;;  %v5006_v58 = vmul.f32 %v9799_v59, %v4968_v56  ;;  %v5007_v63 = vmul.f32 %v9799_v59, %v4969_v18  ;;  %v5008_v30 = vmul.f32 %v9799_v59, %v4970_v3 }
 0x323   : > { %v5009_v42 = vmul.f32 %v9799_v59, %v4971_v34  ;;  %v9875_v40 = vrot.slane %v4939_v45, %v4975_v43  ;;  %v9878_v17 = vmul.f32 %v6094_v5, %v9799_v59  ;;  %v9881_v9 = vmul.f32 %v6095_v1, %v9799_v59 }
 0x324   : > { %v9884_v62 = vmul.f32 %v6096_v49, %v9799_v59  ;;  %v9887_v10 = vmul.f32 %v6097_v16, %v9799_v59  ;;  %v9890_v0 = vmul.f32 %v6098_v50, %v9799_v59  ;;  %v9893_v31 = vmul.f32 %v6099_v19, %v9799_v59  ;;  %v6100_v16 = vld [vmem:[%s8307_s27 + $0x130] sm:$0xff]  ;;  %v6101_v50 = vld [vmem:[%s8307_s27 + $0x138] sm:$0xff]  ;;  %v6102_v19 = vld [vmem:[%s8307_s27 + $0x140] sm:$0xff] }
 0x325   : > { %v5016_v41 = vadd.f32 %v9875_v40, %v9812_v21  ;;  %v5017_v43 = vadd.f32 %v9875_v40, %v9815_v15  ;;  %v5018_v45 = vadd.f32 %v9875_v40, %v9818_v24  ;;  %v5019_v20 = vadd.f32 %v9875_v40, %v4981_v12 }
 0x326   : > { %v5020_v23 = vadd.f32 %v9875_v40, %v4982_v60  ;;  %v5021_v32 = vadd.f32 %v9875_v40, %v4983_v26  ;;  %v5022_v52 = vadd.f32 %v9875_v40, %v4984_v33  ;;  %v5023_v53 = vadd.f32 %v9875_v40, %v4985_v38 }
 0x327   : > { %v5024_v39 = vadd.f32 %v9875_v40, %v4986_v28  ;;  %v5025_v21 = vadd.f32 %v9875_v40, %v4987_v4  ;;  %v5026_v44 = vadd.f32 %v9875_v40, %v4988_v54  ;;  %v5027_v15 = vadd.f32 %v9875_v40, %v4989_v14 }
 0x328   : > { %v5028_v24 = vadd.f32 %v9875_v40, %v4990_v36  ;;  %v5029_v12 = vadd.f32 %v9875_v40, %v4991_v57  ;;  %v5030_v60 = vadd.f32 %v9875_v40, %v4992_v25  ;;  %v5031_v26 = vadd.f32 %v9875_v40, %v4993_v13 }
 0x329   : > { %v9915_v33 = vadd.f32 %v9875_v40, %v4994_v11  ;;  %v9918_v38 = vadd.f32 %v9875_v40, %v4995_v6  ;;  %v9921_v28 = vadd.f32 %v9875_v40, %v4996_v35  ;;  %v9924_v4 = vadd.f32 %v9875_v40, %v4997_v47 }
 0x32a   : > { %v9927_v54 = vadd.f32 %v9875_v40, %v4998_v22  ;;  %v9930_v14 = vadd.f32 %v9875_v40, %v4999_v55  ;;  %v9933_v36 = vadd.f32 %v9875_v40, %v5000_v7  ;;  %v9936_v57 = vadd.f32 %v9875_v40, %v5001_v27 }
 0x32b   : > { %v9939_v25 = vadd.f32 %v9875_v40, %v5002_v2  ;;  %v9942_v37 = vadd.f32 %v9875_v40, %v5003_v29  ;;  %v9945_v51 = vadd.f32 %v9875_v40, %v5004_v46  ;;  %v9948_v13 = vadd.f32 %v9875_v40, %v5005_v48 }
 0x32c   : > { %v9951_v11 = vadd.f32 %v9875_v40, %v5006_v58  ;;  %v9954_v6 = vadd.f32 %v9875_v40, %v5007_v63  ;;  %v9957_v35 = vadd.f32 %v9875_v40, %v5008_v30  ;;  %v9960_v61 = vadd.f32 %v9875_v40, %v5009_v42 }
 0x32d   : > { %v5048_v8 = vmax.f32 %v5016_v41, 0.0  ;;  %v5049_v3 = vmax.f32 %v5017_v43, 0.0  ;;  %v5050_v47 = vmax.f32 %v5018_v45, 0.0  ;;  %v5051_v22 = vmax.f32 %v5019_v20, 0.0  ;;  %v6104_v20 = vld [vmem:[%s8307_s27 + $0x150] sm:$0xff] }
 0x32e   : > { %v5052_v55 = vmax.f32 %v5020_v23, 0.0  ;;  %v5053_v7 = vmax.f32 %v5021_v32, 0.0  ;;  %v5054_v56 = vmax.f32 %v5022_v52, 0.0  ;;  %v5055_v34 = vmax.f32 %v5023_v53, 0.0  ;;  %v6105_v23 = vld [vmem:[%s8307_s27 + $0x158] sm:$0xff]  ;;  %v6103_v32 = vld [vmem:[%s8307_s27 + $0x148] sm:$0xff] }
 0x32f   : > { %v5056_v18 = vmax.f32 %v5024_v39, 0.0  ;;  %v5057_v27 = vmax.f32 %v5025_v21, 0.0  ;;  %v5058_v2 = vmax.f32 %v5026_v44, 0.0  ;;  %v5059_v29 = vmax.f32 %v5027_v15, 0.0  ;;  %5080 = vst.msk [vmem:[%s8307_s27] sm:$0xff] %vm1631_vm8, %v5048_v8  ;;  %5081 = vst.msk [vmem:[%s8307_s27 + $0x8] sm:$0xff] %vm1631_vm8, %v5049_v3 }
 0x330   : > { %5082 = vst.msk [vmem:[%s8307_s27 + $0x10] sm:$0xff] %vm1631_vm8, %v5050_v47  ;;  %5083 = vst.msk [vmem:[%s8307_s27 + $0x18] sm:$0xff] %vm1631_vm8, %v5051_v22  ;;  %v5060_v46 = vmax.f32 %v5028_v24, 0.0  ;;  %v5061_v49 = vmax.f32 %v5029_v12, 0.0  ;;  %v5062_v5 = vmax.f32 %v5030_v60, 0.0  ;;  %v5063_v1 = vmax.f32 %v5031_v26, 0.0 }
 0x331   : > { %5084 = vst.msk [vmem:[%s8307_s27 + $0x20] sm:$0xff] %vm1631_vm8, %v5052_v55  ;;  %5085 = vst.msk [vmem:[%s8307_s27 + $0x28] sm:$0xff] %vm1631_vm8, %v5053_v7  ;;  %v5064_v48 = vmax.f32 %v9915_v33, 0.0  ;;  %v5065_v58 = vmax.f32 %v9918_v38, 0.0  ;;  %v5066_v63 = vmax.f32 %v9921_v28, 0.0  ;;  %v5067_v30 = vmax.f32 %v9924_v4, 0.0 }
 0x332   : > { %5086 = vst.msk [vmem:[%s8307_s27 + $0x30] sm:$0xff] %vm1631_vm8, %v5054_v56  ;;  %5087 = vst.msk [vmem:[%s8307_s27 + $0x38] sm:$0xff] %vm1631_vm8, %v5055_v34  ;;  %v5068_v42 = vmax.f32 %v9927_v54, 0.0  ;;  %v5069_v41 = vmax.f32 %v9930_v14, 0.0  ;;  %v5070_v43 = vmax.f32 %v9933_v36, 0.0  ;;  %v5071_v45 = vmax.f32 %v9936_v57, 0.0 }
 0x333   : > { %5088 = vst.msk [vmem:[%s8307_s27 + $0x40] sm:$0xff] %vm1631_vm8, %v5056_v18  ;;  %5089 = vst.msk [vmem:[%s8307_s27 + $0x48] sm:$0xff] %vm1631_vm8, %v5057_v27  ;;  %v5072_v52 = vmax.f32 %v9939_v25, 0.0  ;;  %v5073_v53 = vmax.f32 %v9942_v37, 0.0  ;;  %v5074_v39 = vmax.f32 %v9945_v51, 0.0  ;;  %v5075_v21 = vmax.f32 %v9948_v13, 0.0 }
 0x334   : > { %5090 = vst.msk [vmem:[%s8307_s27 + $0x50] sm:$0xff] %vm1631_vm8, %v5058_v2  ;;  %5091 = vst.msk [vmem:[%s8307_s27 + $0x58] sm:$0xff] %vm1631_vm8, %v5059_v29  ;;  %v6108_v44 = vld [vmem:[%s8307_s27 + $0x170] sm:$0xff]  ;;  %v6106_v15 = vld [vmem:[%s8307_s27 + $0x160] sm:$0xff]  ;;  %v5076_v12 = vmax.f32 %v9951_v11, 0.0  ;;  %v5077_v60 = vmax.f32 %v9954_v6, 0.0  ;;  %v5150_v54 = vmul.f32 %v6100_v16, %v9799_v59  ;;  %v5151_v14 = vmul.f32 %v6101_v50, %v9799_v59 }
 0x335   : > { %5092 = vst.msk [vmem:[%s8307_s27 + $0x60] sm:$0xff] %vm1631_vm8, %v5060_v46  ;;  %5093 = vst.msk [vmem:[%s8307_s27 + $0x68] sm:$0xff] %vm1631_vm8, %v5061_v49  ;;  %v6109_v24 = vld [vmem:[%s8307_s27 + $0x178] sm:$0xff]  ;;  %v5078_v26 = vmax.f32 %v9957_v35, 0.0  ;;  %v5079_v33 = vmax.f32 %v9960_v61, 0.0  ;;  %v6107_v38 = vld [vmem:[%s8307_s27 + $0x168] sm:$0xff]  ;;  %v5152_v36 = vmul.f32 %v6102_v19, %v9799_v59  ;;  %v5153_v57 = vmul.f32 %v6103_v32, %v9799_v59 }
 0x336   : > { %5094 = vst.msk [vmem:[%s8307_s27 + $0x70] sm:$0xff] %vm1631_vm8, %v5062_v5  ;;  %5095 = vst.msk [vmem:[%s8307_s27 + $0x78] sm:$0xff] %vm1631_vm8, %v5063_v1  ;;  %v6112_v28 = vld [vmem:[%s8307_s27 + $0x190] sm:$0xff]  ;;  %v6110_v4 = vld [vmem:[%s8307_s27 + $0x180] sm:$0xff]  ;;  %v5154_v13 = vmul.f32 %v6104_v20, %v9799_v59  ;;  %v5155_v11 = vmul.f32 %v6105_v23, %v9799_v59  ;;  %v5156_v6 = vmul.f32 %v6106_v15, %v9799_v59 }
 0x337   : > { %5096 = vst.msk [vmem:[%s8307_s27 + $0x80] sm:$0xff] %vm1631_vm8, %v5064_v48  ;;  %5097 = vst.msk [vmem:[%s8307_s27 + $0x88] sm:$0xff] %vm1631_vm8, %v5065_v58  ;;  %v6113_v25 = vld [vmem:[%s8307_s27 + $0x198] sm:$0xff]  ;;  %v6111_v37 = vld [vmem:[%s8307_s27 + $0x188] sm:$0xff]  ;;  %v5157_v35 = vmul.f32 %v6107_v38, %v9799_v59  ;;  %v5158_v47 = vmul.f32 %v6108_v44, %v9799_v59  ;;  %v5159_v22 = vmul.f32 %v6109_v24, %v9799_v59 }
 0x338   : > { %5098 = vst.msk [vmem:[%s8307_s27 + $0x90] sm:$0xff] %vm1631_vm8, %v5066_v63  ;;  %5099 = vst.msk [vmem:[%s8307_s27 + $0x98] sm:$0xff] %vm1631_vm8, %v5067_v30  ;;  %v6116_v51 = vld [vmem:[%s8307_s27 + $0x1b0] sm:$0xff]  ;;  %v6114_v61 = vld [vmem:[%s8307_s27 + $0x1a0] sm:$0xff]  ;;  %v5160_v55 = vmul.f32 %v6110_v4, %v9799_v59  ;;  %v5161_v7 = vmul.f32 %v6111_v37, %v9799_v59  ;;  %v5162_v27 = vmul.f32 %v6112_v28, %v9799_v59 }
 0x339   : > { %5100 = vst.msk [vmem:[%s8307_s27 + $0xa0] sm:$0xff] %vm1631_vm8, %v5068_v42  ;;  %5101 = vst.msk [vmem:[%s8307_s27 + $0xa8] sm:$0xff] %vm1631_vm8, %v5069_v41  ;;  %v6117_v8 = vld [vmem:[%s8307_s27 + $0x1b8] sm:$0xff]  ;;  %v6115_v3 = vld [vmem:[%s8307_s27 + $0x1a8] sm:$0xff]  ;;  %v5163_v2 = vmul.f32 %v6113_v25, %v9799_v59  ;;  %v5164_v29 = vmul.f32 %v6114_v61, %v9799_v59  ;;  %v5166_v48 = vmul.f32 %v6116_v51, %v9799_v59 }
 0x33a   : > { %5102 = vst.msk [vmem:[%s8307_s27 + $0xb0] sm:$0xff] %vm1631_vm8, %v5070_v43  ;;  %5103 = vst.msk [vmem:[%s8307_s27 + $0xb8] sm:$0xff] %vm1631_vm8, %v5071_v45  ;;  %v6120_v56 = vld [vmem:[%s8307_s27 + $0x1d0] sm:$0xff]  ;;  %v6118_v34 = vld [vmem:[%s8307_s27 + $0x1c0] sm:$0xff]  ;;  %v5165_v46 = vmul.f32 %v6115_v3, %v9799_v59  ;;  %v5167_v58 = vmul.f32 %v6117_v8, %v9799_v59  ;;  %v5176_v23 = vadd.f32 %v9878_v17, %v9875_v40 }
 0x33b   : > { %5104 = vst.msk [vmem:[%s8307_s27 + $0xc0] sm:$0xff] %vm1631_vm8, %v5072_v52  ;;  %5105 = vst.msk [vmem:[%s8307_s27 + $0xc8] sm:$0xff] %vm1631_vm8, %v5073_v53  ;;  %v6119_v18 = vld [vmem:[%s8307_s27 + $0x1c8] sm:$0xff]  ;;  %v6121_v49 = vld [vmem:[%s8307_s27 + $0x1d8] sm:$0xff]  ;;  %v5168_v63 = vmul.f32 %v6118_v34, %v9799_v59  ;;  %v5170_v19 = vmul.f32 %v6120_v56, %v9799_v59  ;;  %v5177_v32 = vadd.f32 %v9881_v9, %v9875_v40 }
 0x33c   : > { %5106 = vst.msk [vmem:[%s8307_s27 + $0xd0] sm:$0xff] %vm1631_vm8, %v5074_v39  ;;  %5107 = vst.msk [vmem:[%s8307_s27 + $0xd8] sm:$0xff] %vm1631_vm8, %v5075_v21  ;;  %v6122_v5 = vld [vmem:[%s8307_s27 + $0x1e0] sm:$0xff]  ;;  %v6123_v1 = vld [vmem:[%s8307_s27 + $0x1e8] sm:$0xff]  ;;  %v5169_v30 = vmul.f32 %v6119_v18, %v9799_v59  ;;  %v5171_v42 = vmul.f32 %v6121_v49, %v9799_v59  ;;  %v5178_v52 = vadd.f32 %v9884_v62, %v9875_v40 }
 0x33d   : > { %5108 = vst.msk [vmem:[%s8307_s27 + $0xe0] sm:$0xff] %vm1631_vm8, %v5076_v12  ;;  %5109 = vst.msk [vmem:[%s8307_s27 + $0xe8] sm:$0xff] %vm1631_vm8, %v5077_v60  ;;  %v6124_v16 = vld [vmem:[%s8307_s27 + $0x1f0] sm:$0xff]  ;;  %v6125_v50 = vld [vmem:[%s8307_s27 + $0x1f8] sm:$0xff]  ;;  %v5172_v41 = vmul.f32 %v6122_v5, %v9799_v59  ;;  %v5173_v43 = vmul.f32 %v6123_v1, %v9799_v59  ;;  %v5179_v53 = vadd.f32 %v9887_v10, %v9875_v40  ;;  %v5209_v61 = vmax.f32 %v5177_v32, 0.0 }
 0x33e   : > { %5110 = vst.msk [vmem:[%s8307_s27 + $0xf0] sm:$0xff] %vm1631_vm8, %v5078_v26  ;;  %5111 = vst.msk [vmem:[%s8307_s27 + $0xf8] sm:$0xff] %vm1631_vm8, %v5079_v33  ;;  %v5174_v45 = vmul.f32 %v6124_v16, %v9799_v59  ;;  %v5175_v20 = vmul.f32 %v6125_v50, %v9799_v59  ;;  %v5180_v39 = vadd.f32 %v9890_v0, %v9875_v40  ;;  %v5210_v8 = vmax.f32 %v5178_v52, 0.0  ;;  %v6160_v50 = vld [vmem:[%s8307_s27 + $0x210] sm:$0xff]  ;;  %v6165_v52 = vld [vmem:[%s8307_s27 + $0x238] sm:$0xff] }
 0x33f   : > { %v5181_v21 = vadd.f32 %v9893_v31, %v9875_v40  ;;  %v5182_v44 = vadd.f32 %v5150_v54, %v9875_v40  ;;  %v5183_v15 = vadd.f32 %v5151_v14, %v9875_v40  ;;  %v5184_v17 = vadd.f32 %v5152_v36, %v9875_v40  ;;  %6127 = vst.msk [vmem:[%s8307_s27 + $0x108] sm:$0xff] %vm1631_vm8, %v5209_v61  ;;  %v6164_v32 = vld [vmem:[%s8307_s27 + $0x230] sm:$0xff] }
 0x340   : > { %v5185_v9 = vadd.f32 %v5153_v57, %v9875_v40  ;;  %v5186_v24 = vadd.f32 %v5154_v13, %v9875_v40  ;;  %v5187_v62 = vadd.f32 %v5155_v11, %v9875_v40  ;;  %v5188_v10 = vadd.f32 %v5156_v6, %v9875_v40  ;;  %6128 = vst.msk [vmem:[%s8307_s27 + $0x110] sm:$0xff] %vm1631_vm8, %v5210_v8 }
 0x341   : > { %v5189_v12 = vadd.f32 %v5157_v35, %v9875_v40  ;;  %v10115_v0 = vadd.f32 %v5158_v47, %v9875_v40  ;;  %v10118_v31 = vadd.f32 %v5159_v22, %v9875_v40  ;;  %v10121_v60 = vadd.f32 %v5160_v55, %v9875_v40 }
 0x342   : > { %v10124_v26 = vadd.f32 %v5161_v7, %v9875_v40  ;;  %v10127_v33 = vadd.f32 %v5162_v27, %v9875_v40  ;;  %v10130_v38 = vadd.f32 %v5163_v2, %v9875_v40  ;;  %v10133_v28 = vadd.f32 %v5164_v29, %v9875_v40 }
 0x343   : > { %v10136_v4 = vadd.f32 %v5165_v46, %v9875_v40  ;;  %v10139_v54 = vadd.f32 %v5166_v48, %v9875_v40  ;;  %v10142_v14 = vadd.f32 %v5167_v58, %v9875_v40  ;;  %v10145_v36 = vadd.f32 %v5168_v63, %v9875_v40  ;;  %v6158_v48 = vld [vmem:[%s8307_s27 + $0x200] sm:$0xff] }
 0x344   : > { %v10148_v57 = vadd.f32 %v5169_v30, %v9875_v40  ;;  %v10151_v25 = vadd.f32 %v5170_v19, %v9875_v40  ;;  %v10154_v37 = vadd.f32 %v5171_v42, %v9875_v40  ;;  %v10157_v51 = vadd.f32 %v5172_v41, %v9875_v40  ;;  %v6161_v19 = vld [vmem:[%s8307_s27 + $0x218] sm:$0xff]  ;;  %v6159_v42 = vld [vmem:[%s8307_s27 + $0x208] sm:$0xff]  ;;  %v6162_v41 = vld [vmem:[%s8307_s27 + $0x220] sm:$0xff] }
 0x345   : > { %v10160_v13 = vadd.f32 %v5173_v43, %v9875_v40  ;;  %v10163_v11 = vadd.f32 %v5174_v45, %v9875_v40  ;;  %v10166_v6 = vadd.f32 %v5175_v20, %v9875_v40  ;;  %v5208_v35 = vmax.f32 %v5176_v23, 0.0 }
 0x346   : > { %v5211_v3 = vmax.f32 %v5179_v53, 0.0  ;;  %v5212_v47 = vmax.f32 %v5180_v39, 0.0  ;;  %v5213_v22 = vmax.f32 %v5181_v21, 0.0  ;;  %v5214_v55 = vmax.f32 %v5182_v44, 0.0  ;;  %v6163_v53 = vld [vmem:[%s8307_s27 + $0x228] sm:$0xff] }
 0x347   : > { %v5215_v7 = vmax.f32 %v5183_v15, 0.0  ;;  %v5216_v56 = vmax.f32 %v5184_v17, 0.0  ;;  %v5217_v34 = vmax.f32 %v5185_v9, 0.0  ;;  %6126 = vst.msk [vmem:[%s8307_s27 + $0x100] sm:$0xff] %vm1631_vm8, %v5208_v35  ;;  %v5218_v18 = vmax.f32 %v5186_v24, 0.0  ;;  %v6168_v17 = vld [vmem:[%s8307_s27 + $0x250] sm:$0xff] }
 0x348   : > { %v5219_v27 = vmax.f32 %v5187_v62, 0.0  ;;  %v5220_v2 = vmax.f32 %v5188_v10, 0.0  ;;  %v5221_v29 = vmax.f32 %v5189_v12, 0.0  ;;  %6129 = vst.msk [vmem:[%s8307_s27 + $0x118] sm:$0xff] %vm1631_vm8, %v5211_v3  ;;  %6130 = vst.msk [vmem:[%s8307_s27 + $0x120] sm:$0xff] %vm1631_vm8, %v5212_v47  ;;  %v5222_v46 = vmax.f32 %v10115_v0, 0.0 }
 0x349   : > { %6131 = vst.msk [vmem:[%s8307_s27 + $0x128] sm:$0xff] %vm1631_vm8, %v5213_v22  ;;  %v5223_v49 = vmax.f32 %v10118_v31, 0.0  ;;  %v5224_v5 = vmax.f32 %v10121_v60, 0.0  ;;  %v5225_v1 = vmax.f32 %v10124_v26, 0.0  ;;  %6132 = vst.msk [vmem:[%s8307_s27 + $0x130] sm:$0xff] %vm1631_vm8, %v5214_v55  ;;  %v5226_v58 = vmax.f32 %v10127_v33, 0.0 }
 0x34a   : > { %6133 = vst.msk [vmem:[%s8307_s27 + $0x138] sm:$0xff] %vm1631_vm8, %v5215_v7  ;;  %6134 = vst.msk [vmem:[%s8307_s27 + $0x140] sm:$0xff] %vm1631_vm8, %v5216_v56  ;;  %v5227_v63 = vmax.f32 %v10130_v38, 0.0  ;;  %v5228_v30 = vmax.f32 %v10133_v28, 0.0  ;;  %v5229_v16 = vmax.f32 %v10136_v4, 0.0  ;;  %v5230_v43 = vmax.f32 %v10139_v54, 0.0 }
 0x34b   : > { %6135 = vst.msk [vmem:[%s8307_s27 + $0x148] sm:$0xff] %vm1631_vm8, %v5217_v34  ;;  %6136 = vst.msk [vmem:[%s8307_s27 + $0x150] sm:$0xff] %vm1631_vm8, %v5218_v18  ;;  %v5231_v45 = vmax.f32 %v10142_v14, 0.0  ;;  %v5232_v20 = vmax.f32 %v10145_v36, 0.0  ;;  %v5233_v23 = vmax.f32 %v10148_v57, 0.0  ;;  %v5234_v39 = vmax.f32 %v10151_v25, 0.0 }
 0x34c   : > { %6137 = vst.msk [vmem:[%s8307_s27 + $0x158] sm:$0xff] %vm1631_vm8, %v5219_v27  ;;  %6138 = vst.msk [vmem:[%s8307_s27 + $0x160] sm:$0xff] %vm1631_vm8, %v5220_v2  ;;  %v5235_v21 = vmax.f32 %v10154_v37, 0.0  ;;  %v5236_v44 = vmax.f32 %v10157_v51, 0.0  ;;  %v5237_v15 = vmax.f32 %v10160_v13, 0.0  ;;  %v6166_v9 = vld [vmem:[%s8307_s27 + $0x240] sm:$0xff]  ;;  %v5304_v0 = vmul.f32 %v6158_v48, %v9799_v59 }
 0x34d   : > { %6139 = vst.msk [vmem:[%s8307_s27 + $0x168] sm:$0xff] %vm1631_vm8, %v5221_v29  ;;  %6140 = vst.msk [vmem:[%s8307_s27 + $0x170] sm:$0xff] %vm1631_vm8, %v5222_v46  ;;  %v6169_v24 = vld [vmem:[%s8307_s27 + $0x258] sm:$0xff]  ;;  %v6167_v62 = vld [vmem:[%s8307_s27 + $0x248] sm:$0xff]  ;;  %v5238_v10 = vmax.f32 %v10163_v11, 0.0  ;;  %v5239_v12 = vmax.f32 %v10166_v6, 0.0  ;;  %v5305_v31 = vmul.f32 %v6159_v42, %v9799_v59  ;;  %v5306_v38 = vmul.f32 %v6160_v50, %v9799_v59 }
 0x34e   : > { %6141 = vst.msk [vmem:[%s8307_s27 + $0x178] sm:$0xff] %vm1631_vm8, %v5223_v49  ;;  %6142 = vst.msk [vmem:[%s8307_s27 + $0x180] sm:$0xff] %vm1631_vm8, %v5224_v5  ;;  %v6172_v60 = vld [vmem:[%s8307_s27 + $0x270] sm:$0xff]  ;;  %v6170_v26 = vld [vmem:[%s8307_s27 + $0x260] sm:$0xff]  ;;  %v5307_v28 = vmul.f32 %v6161_v19, %v9799_v59  ;;  %v5308_v4 = vmul.f32 %v6162_v41, %v9799_v59  ;;  %v5309_v54 = vmul.f32 %v6163_v53, %v9799_v59 }
 0x34f   : > { %6143 = vst.msk [vmem:[%s8307_s27 + $0x188] sm:$0xff] %vm1631_vm8, %v5225_v1  ;;  %6144 = vst.msk [vmem:[%s8307_s27 + $0x190] sm:$0xff] %vm1631_vm8, %v5226_v58  ;;  %v6173_v33 = vld [vmem:[%s8307_s27 + $0x278] sm:$0xff]  ;;  %v6171_v14 = vld [vmem:[%s8307_s27 + $0x268] sm:$0xff]  ;;  %v5310_v25 = vmul.f32 %v6164_v32, %v9799_v59  ;;  %v5311_v37 = vmul.f32 %v6165_v52, %v9799_v59  ;;  %v5312_v51 = vmul.f32 %v6166_v9, %v9799_v59 }
 0x350   : > { %6145 = vst.msk [vmem:[%s8307_s27 + $0x198] sm:$0xff] %vm1631_vm8, %v5227_v63  ;;  %6146 = vst.msk [vmem:[%s8307_s27 + $0x1a0] sm:$0xff] %vm1631_vm8, %v5228_v30  ;;  %v6176_v36 = vld [vmem:[%s8307_s27 + $0x290] sm:$0xff]  ;;  %v6174_v57 = vld [vmem:[%s8307_s27 + $0x280] sm:$0xff]  ;;  %v5313_v13 = vmul.f32 %v6167_v62, %v9799_v59  ;;  %v5314_v61 = vmul.f32 %v6168_v17, %v9799_v59  ;;  %v5315_v8 = vmul.f32 %v6169_v24, %v9799_v59 }
 0x351   : > { %6147 = vst.msk [vmem:[%s8307_s27 + $0x1a8] sm:$0xff] %vm1631_vm8, %v5229_v16  ;;  %6148 = vst.msk [vmem:[%s8307_s27 + $0x1b0] sm:$0xff] %vm1631_vm8, %v5230_v43  ;;  %v6177_v11 = vld [vmem:[%s8307_s27 + $0x298] sm:$0xff]  ;;  %v6175_v6 = vld [vmem:[%s8307_s27 + $0x288] sm:$0xff]  ;;  %v5316_v3 = vmul.f32 %v6170_v26, %v9799_v59  ;;  %v5317_v47 = vmul.f32 %v6171_v14, %v9799_v59  ;;  %v5318_v56 = vmul.f32 %v6172_v60, %v9799_v59 }
 0x352   : > { %6149 = vst.msk [vmem:[%s8307_s27 + $0x1b8] sm:$0xff] %vm1631_vm8, %v5231_v45  ;;  %6150 = vst.msk [vmem:[%s8307_s27 + $0x1c0] sm:$0xff] %vm1631_vm8, %v5232_v20  ;;  %v6180_v35 = vld [vmem:[%s8307_s27 + $0x2b0] sm:$0xff]  ;;  %v6178_v22 = vld [vmem:[%s8307_s27 + $0x2a0] sm:$0xff]  ;;  %v5319_v34 = vmul.f32 %v6173_v33, %v9799_v59  ;;  %v5320_v18 = vmul.f32 %v6174_v57, %v9799_v59  ;;  %v5321_v27 = vmul.f32 %v6175_v6, %v9799_v59 }
 0x353   : > { %6151 = vst.msk [vmem:[%s8307_s27 + $0x1c8] sm:$0xff] %vm1631_vm8, %v5233_v23  ;;  %6152 = vst.msk [vmem:[%s8307_s27 + $0x1d0] sm:$0xff] %vm1631_vm8, %v5234_v39  ;;  %v6181_v55 = vld [vmem:[%s8307_s27 + $0x2b8] sm:$0xff]  ;;  %v6179_v7 = vld [vmem:[%s8307_s27 + $0x2a8] sm:$0xff]  ;;  %v5322_v49 = vmul.f32 %v6176_v36, %v9799_v59  ;;  %v5323_v5 = vmul.f32 %v6177_v11, %v9799_v59  ;;  %v5324_v1 = vmul.f32 %v6178_v22, %v9799_v59 }
 0x354   : > { %6153 = vst.msk [vmem:[%s8307_s27 + $0x1d8] sm:$0xff] %vm1631_vm8, %v5235_v21  ;;  %6154 = vst.msk [vmem:[%s8307_s27 + $0x1e0] sm:$0xff] %vm1631_vm8, %v5236_v44  ;;  %v6184_v2 = vld [vmem:[%s8307_s27 + $0x2d0] sm:$0xff]  ;;  %v6182_v29 = vld [vmem:[%s8307_s27 + $0x2c0] sm:$0xff]  ;;  %v5325_v48 = vmul.f32 %v6179_v7, %v9799_v59  ;;  %v5326_v16 = vmul.f32 %v6180_v35, %v9799_v59  ;;  %v5327_v50 = vmul.f32 %v6181_v55, %v9799_v59 }
 0x355   : > { %6155 = vst.msk [vmem:[%s8307_s27 + $0x1e8] sm:$0xff] %vm1631_vm8, %v5237_v15  ;;  %6156 = vst.msk [vmem:[%s8307_s27 + $0x1f0] sm:$0xff] %vm1631_vm8, %v5238_v10  ;;  %v6183_v46 = vld [vmem:[%s8307_s27 + $0x2c8] sm:$0xff]  ;;  %v6185_v58 = vld [vmem:[%s8307_s27 + $0x2d8] sm:$0xff]  ;;  %v5328_v19 = vmul.f32 %v6182_v29, %v9799_v59  ;;  %v5330_v45 = vmul.f32 %v6184_v2, %v9799_v59  ;;  %v5336_v39 = vadd.f32 %v5304_v0, %v9875_v40 }
 0x356   : > { %6157 = vst.msk [vmem:[%s8307_s27 + $0x1f8] sm:$0xff] %vm1631_vm8, %v5239_v12  ;;  %v6186_v63 = vld [vmem:[%s8307_s27 + $0x2e0] sm:$0xff]  ;;  %v6187_v30 = vld [vmem:[%s8307_s27 + $0x2e8] sm:$0xff]  ;;  %v5329_v42 = vmul.f32 %v6183_v46, %v9799_v59  ;;  %v6188_v41 = vld [vmem:[%s8307_s27 + $0x2f0] sm:$0xff]  ;;  %v5331_v20 = vmul.f32 %v6185_v58, %v9799_v59  ;;  %v5337_v21 = vadd.f32 %v5305_v31, %v9875_v40  ;;  %v5338_v44 = vadd.f32 %v5306_v38, %v9875_v40 }
 0x357   : > { %v6189_v43 = vld [vmem:[%s8307_s27 + $0x2f8] sm:$0xff]  ;;  %v5332_v23 = vmul.f32 %v6186_v63, %v9799_v59  ;;  %v5333_v32 = vmul.f32 %v6187_v30, %v9799_v59  ;;  %v5334_v52 = vmul.f32 %v6188_v41, %v9799_v59  ;;  %v5339_v15 = vadd.f32 %v5307_v28, %v9875_v40 }
 0x358   : > { %v5335_v53 = vmul.f32 %v6189_v43, %v9799_v59  ;;  %v5340_v17 = vadd.f32 %v5308_v4, %v9875_v40  ;;  %v5341_v9 = vadd.f32 %v5309_v54, %v9875_v40  ;;  %v5342_v24 = vadd.f32 %v5310_v25, %v9875_v40  ;;  %v6224_v43 = vld [vmem:[%s8307_s27 + $0x310] sm:$0xff] }
 0x359   : > { %v5343_v62 = vadd.f32 %v5311_v37, %v9875_v40  ;;  %v5344_v10 = vadd.f32 %v5312_v51, %v9875_v40  ;;  %v5345_v12 = vadd.f32 %v5313_v13, %v9875_v40  ;;  %v5346_v0 = vadd.f32 %v5314_v61, %v9875_v40 }
 0x35a   : > { %v5347_v31 = vadd.f32 %v5315_v8, %v9875_v40  ;;  %v5348_v60 = vadd.f32 %v5316_v3, %v9875_v40  ;;  %v5349_v26 = vadd.f32 %v5317_v47, %v9875_v40  ;;  %v10329_v33 = vadd.f32 %v5318_v56, %v9875_v40 }
 0x35b   : > { %v10332_v38 = vadd.f32 %v5319_v34, %v9875_v40  ;;  %v10335_v28 = vadd.f32 %v5320_v18, %v9875_v40  ;;  %v10338_v4 = vadd.f32 %v5321_v27, %v9875_v40  ;;  %v10341_v54 = vadd.f32 %v5322_v49, %v9875_v40 }
 0x35c   : > { %v10344_v14 = vadd.f32 %v5323_v5, %v9875_v40  ;;  %v10347_v36 = vadd.f32 %v5324_v1, %v9875_v40  ;;  %v10350_v57 = vadd.f32 %v5325_v48, %v9875_v40  ;;  %v10353_v25 = vadd.f32 %v5326_v16, %v9875_v40  ;;  %v6222_v16 = vld [vmem:[%s8307_s27 + $0x300] sm:$0xff] }
 0x35d   : > { %v10356_v37 = vadd.f32 %v5327_v50, %v9875_v40  ;;  %v10359_v51 = vadd.f32 %v5328_v19, %v9875_v40  ;;  %v10362_v13 = vadd.f32 %v5329_v42, %v9875_v40  ;;  %v10365_v11 = vadd.f32 %v5330_v45, %v9875_v40  ;;  %v6225_v45 = vld [vmem:[%s8307_s27 + $0x318] sm:$0xff] }
 0x35e   : > { %v10368_v6 = vadd.f32 %v5331_v20, %v9875_v40  ;;  %v10371_v35 = vadd.f32 %v5332_v23, %v9875_v40  ;;  %v10374_v61 = vadd.f32 %v5333_v32, %v9875_v40  ;;  %v10377_v8 = vadd.f32 %v5334_v52, %v9875_v40  ;;  %v6223_v20 = vld [vmem:[%s8307_s27 + $0x308] sm:$0xff]  ;;  %v6226_v23 = vld [vmem:[%s8307_s27 + $0x320] sm:$0xff] }
 0x35f   : > { %v10380_v3 = vadd.f32 %v5335_v53, %v9875_v40  ;;  %v5368_v47 = vmax.f32 %v5336_v39, 0.0  ;;  %v5369_v22 = vmax.f32 %v5337_v21, 0.0  ;;  %v5370_v55 = vmax.f32 %v5338_v44, 0.0  ;;  %v6228_v21 = vld [vmem:[%s8307_s27 + $0x330] sm:$0xff]  ;;  %v6229_v44 = vld [vmem:[%s8307_s27 + $0x338] sm:$0xff] }
 0x360   : > { %v5371_v7 = vmax.f32 %v5339_v15, 0.0  ;;  %v5372_v56 = vmax.f32 %v5340_v17, 0.0  ;;  %v5373_v34 = vmax.f32 %v5341_v9, 0.0  ;;  %v5374_v18 = vmax.f32 %v5342_v24, 0.0  ;;  %v6227_v15 = vld [vmem:[%s8307_s27 + $0x328] sm:$0xff] }
 0x361   : > { %v5375_v27 = vmax.f32 %v5343_v62, 0.0  ;;  %v5376_v2 = vmax.f32 %v5344_v10, 0.0  ;;  %v5377_v29 = vmax.f32 %v5345_v12, 0.0  ;;  %6190 = vst.msk [vmem:[%s8307_s27 + $0x200] sm:$0xff] %vm1631_vm8, %v5368_v47  ;;  %6191 = vst.msk [vmem:[%s8307_s27 + $0x208] sm:$0xff] %vm1631_vm8, %v5369_v22  ;;  %v5378_v46 = vmax.f32 %v5346_v0, 0.0 }
 0x362   : > { %v5379_v49 = vmax.f32 %v5347_v31, 0.0  ;;  %v5380_v5 = vmax.f32 %v5348_v60, 0.0  ;;  %v5381_v1 = vmax.f32 %v5349_v26, 0.0  ;;  %6192 = vst.msk [vmem:[%s8307_s27 + $0x210] sm:$0xff] %vm1631_vm8, %v5370_v55  ;;  %6193 = vst.msk [vmem:[%s8307_s27 + $0x218] sm:$0xff] %vm1631_vm8, %v5371_v7  ;;  %v5382_v48 = vmax.f32 %v10329_v33, 0.0 }
 0x363   : > { %6194 = vst.msk [vmem:[%s8307_s27 + $0x220] sm:$0xff] %vm1631_vm8, %v5372_v56  ;;  %6195 = vst.msk [vmem:[%s8307_s27 + $0x228] sm:$0xff] %vm1631_vm8, %v5373_v34  ;;  %v5383_v58 = vmax.f32 %v10332_v38, 0.0  ;;  %v5384_v63 = vmax.f32 %v10335_v28, 0.0  ;;  %v5385_v30 = vmax.f32 %v10338_v4, 0.0  ;;  %v5386_v50 = vmax.f32 %v10341_v54, 0.0 }
 0x364   : > { %6196 = vst.msk [vmem:[%s8307_s27 + $0x230] sm:$0xff] %vm1631_vm8, %v5374_v18  ;;  %6197 = vst.msk [vmem:[%s8307_s27 + $0x238] sm:$0xff] %vm1631_vm8, %v5375_v27  ;;  %v5387_v19 = vmax.f32 %v10344_v14, 0.0  ;;  %v5388_v42 = vmax.f32 %v10347_v36, 0.0  ;;  %v5389_v41 = vmax.f32 %v10350_v57, 0.0  ;;  %v5390_v32 = vmax.f32 %v10353_v25, 0.0 }
 0x365   : > { %6198 = vst.msk [vmem:[%s8307_s27 + $0x240] sm:$0xff] %vm1631_vm8, %v5376_v2  ;;  %6199 = vst.msk [vmem:[%s8307_s27 + $0x248] sm:$0xff] %vm1631_vm8, %v5377_v29  ;;  %v5391_v52 = vmax.f32 %v10356_v37, 0.0  ;;  %v5392_v53 = vmax.f32 %v10359_v51, 0.0  ;;  %v5393_v39 = vmax.f32 %v10362_v13, 0.0  ;;  %v5394_v17 = vmax.f32 %v10365_v11, 0.0 }
 0x366   : > { %6200 = vst.msk [vmem:[%s8307_s27 + $0x250] sm:$0xff] %vm1631_vm8, %v5378_v46  ;;  %6201 = vst.msk [vmem:[%s8307_s27 + $0x258] sm:$0xff] %vm1631_vm8, %v5379_v49  ;;  %v5395_v9 = vmax.f32 %v10368_v6, 0.0  ;;  %v5396_v24 = vmax.f32 %v10371_v35, 0.0  ;;  %v5397_v62 = vmax.f32 %v10374_v61, 0.0  ;;  %v6232_v10 = vld [vmem:[%s8307_s27 + $0x350] sm:$0xff]  ;;  %v5464_v33 = vmul.f32 %v6222_v16, %v9799_v59 }
 0x367   : > { %6202 = vst.msk [vmem:[%s8307_s27 + $0x260] sm:$0xff] %vm1631_vm8, %v5380_v5  ;;  %6203 = vst.msk [vmem:[%s8307_s27 + $0x268] sm:$0xff] %vm1631_vm8, %v5381_v1  ;;  %v6230_v12 = vld [vmem:[%s8307_s27 + $0x340] sm:$0xff]  ;;  %v6233_v0 = vld [vmem:[%s8307_s27 + $0x358] sm:$0xff]  ;;  %v5398_v60 = vmax.f32 %v10377_v8, 0.0  ;;  %v5399_v26 = vmax.f32 %v10380_v3, 0.0  ;;  %v5465_v38 = vmul.f32 %v6223_v20, %v9799_v59  ;;  %v5466_v14 = vmul.f32 %v6224_v43, %v9799_v59 }
 0x368   : > { %6204 = vst.msk [vmem:[%s8307_s27 + $0x270] sm:$0xff] %vm1631_vm8, %v5382_v48  ;;  %6205 = vst.msk [vmem:[%s8307_s27 + $0x278] sm:$0xff] %vm1631_vm8, %v5383_v58  ;;  %v6231_v31 = vld [vmem:[%s8307_s27 + $0x348] sm:$0xff]  ;;  %v6236_v28 = vld [vmem:[%s8307_s27 + $0x370] sm:$0xff]  ;;  %v5467_v36 = vmul.f32 %v6225_v45, %v9799_v59  ;;  %v5468_v57 = vmul.f32 %v6226_v23, %v9799_v59  ;;  %v5469_v25 = vmul.f32 %v6227_v15, %v9799_v59 }
 0x369   : > { %6206 = vst.msk [vmem:[%s8307_s27 + $0x280] sm:$0xff] %vm1631_vm8, %v5384_v63  ;;  %6207 = vst.msk [vmem:[%s8307_s27 + $0x288] sm:$0xff] %vm1631_vm8, %v5385_v30  ;;  %v6234_v4 = vld [vmem:[%s8307_s27 + $0x360] sm:$0xff]  ;;  %v6237_v54 = vld [vmem:[%s8307_s27 + $0x378] sm:$0xff]  ;;  %v5470_v11 = vmul.f32 %v6228_v21, %v9799_v59  ;;  %v5471_v6 = vmul.f32 %v6229_v44, %v9799_v59  ;;  %v5472_v35 = vmul.f32 %v6230_v12, %v9799_v59 }
 0x36a   : > { %6208 = vst.msk [vmem:[%s8307_s27 + $0x290] sm:$0xff] %vm1631_vm8, %v5386_v50  ;;  %6209 = vst.msk [vmem:[%s8307_s27 + $0x298] sm:$0xff] %vm1631_vm8, %v5387_v19  ;;  %v6235_v37 = vld [vmem:[%s8307_s27 + $0x368] sm:$0xff]  ;;  %v6240_v51 = vld [vmem:[%s8307_s27 + $0x390] sm:$0xff]  ;;  %v5473_v61 = vmul.f32 %v6231_v31, %v9799_v59  ;;  %v5474_v22 = vmul.f32 %v6232_v10, %v9799_v59  ;;  %v5475_v55 = vmul.f32 %v6233_v0, %v9799_v59 }
 0x36b   : > { %6210 = vst.msk [vmem:[%s8307_s27 + $0x2a0] sm:$0xff] %vm1631_vm8, %v5388_v42  ;;  %6211 = vst.msk [vmem:[%s8307_s27 + $0x2a8] sm:$0xff] %vm1631_vm8, %v5389_v41  ;;  %v6238_v13 = vld [vmem:[%s8307_s27 + $0x380] sm:$0xff]  ;;  %v6241_v8 = vld [vmem:[%s8307_s27 + $0x398] sm:$0xff]  ;;  %v5476_v7 = vmul.f32 %v6234_v4, %v9799_v59  ;;  %v5477_v56 = vmul.f32 %v6235_v37, %v9799_v59  ;;  %v5478_v2 = vmul.f32 %v6236_v28, %v9799_v59 }
 0x36c   : > { %6212 = vst.msk [vmem:[%s8307_s27 + $0x2b0] sm:$0xff] %vm1631_vm8, %v5390_v32  ;;  %6213 = vst.msk [vmem:[%s8307_s27 + $0x2b8] sm:$0xff] %vm1631_vm8, %v5391_v52  ;;  %v6239_v3 = vld [vmem:[%s8307_s27 + $0x388] sm:$0xff]  ;;  %v6244_v47 = vld [vmem:[%s8307_s27 + $0x3b0] sm:$0xff]  ;;  %v5479_v29 = vmul.f32 %v6237_v54, %v9799_v59  ;;  %v5480_v46 = vmul.f32 %v6238_v13, %v9799_v59  ;;  %v5482_v58 = vmul.f32 %v6240_v51, %v9799_v59 }
 0x36d   : > { %6214 = vst.msk [vmem:[%s8307_s27 + $0x2c0] sm:$0xff] %vm1631_vm8, %v5392_v53  ;;  %6215 = vst.msk [vmem:[%s8307_s27 + $0x2c8] sm:$0xff] %vm1631_vm8, %v5393_v39  ;;  %v6242_v34 = vld [vmem:[%s8307_s27 + $0x3a0] sm:$0xff]  ;;  %v6245_v18 = vld [vmem:[%s8307_s27 + $0x3b8] sm:$0xff]  ;;  %v5481_v49 = vmul.f32 %v6239_v3, %v9799_v59  ;;  %v5483_v63 = vmul.f32 %v6241_v8, %v9799_v59  ;;  %v5486_v41 = vmul.f32 %v6244_v47, %v9799_v59 }
 0x36e   : > { %6216 = vst.msk [vmem:[%s8307_s27 + $0x2d0] sm:$0xff] %vm1631_vm8, %v5394_v17  ;;  %6217 = vst.msk [vmem:[%s8307_s27 + $0x2d8] sm:$0xff] %vm1631_vm8, %v5395_v9  ;;  %v6243_v27 = vld [vmem:[%s8307_s27 + $0x3a8] sm:$0xff]  ;;  %v6248_v5 = vld [vmem:[%s8307_s27 + $0x3d0] sm:$0xff]  ;;  %v5484_v30 = vmul.f32 %v6242_v34, %v9799_v59  ;;  %v5487_v43 = vmul.f32 %v6245_v18, %v9799_v59  ;;  %v5496_v17 = vadd.f32 %v5464_v33, %v9875_v40 }
 0x36f   : > { %6218 = vst.msk [vmem:[%s8307_s27 + $0x2e0] sm:$0xff] %vm1631_vm8, %v5396_v24  ;;  %6219 = vst.msk [vmem:[%s8307_s27 + $0x2e8] sm:$0xff] %vm1631_vm8, %v5397_v62  ;;  %v6246_v1 = vld [vmem:[%s8307_s27 + $0x3c0] sm:$0xff]  ;;  %v6247_v48 = vld [vmem:[%s8307_s27 + $0x3c8] sm:$0xff]  ;;  %v5485_v16 = vmul.f32 %v6243_v27, %v9799_v59  ;;  %v5490_v52 = vmul.f32 %v6248_v5, %v9799_v59  ;;  %v5497_v9 = vadd.f32 %v5465_v38, %v9875_v40 }
 0x370   : > { %6220 = vst.msk [vmem:[%s8307_s27 + $0x2f0] sm:$0xff] %vm1631_vm8, %v5398_v60  ;;  %6221 = vst.msk [vmem:[%s8307_s27 + $0x2f8] sm:$0xff] %vm1631_vm8, %v5399_v26  ;;  %v6249_v50 = vld [vmem:[%s8307_s27 + $0x3d8] sm:$0xff]  ;;  %v6250_v19 = vld [vmem:[%s8307_s27 + $0x3e0] sm:$0xff]  ;;  %v5488_v45 = vmul.f32 %v6246_v1, %v9799_v59  ;;  %v5489_v20 = vmul.f32 %v6247_v48, %v9799_v59  ;;  %v5498_v24 = vadd.f32 %v5466_v14, %v9875_v40 }
 0x371   : > { %v6251_v42 = vld [vmem:[%s8307_s27 + $0x3e8] sm:$0xff]  ;;  %v6252_v23 = vld [vmem:[%s8307_s27 + $0x3f0] sm:$0xff]  ;;  %v6253_v32 = vld [vmem:[%s8307_s27 + $0x3f8] sm:$0xff]  ;;  %v5491_v53 = vmul.f32 %v6249_v50, %v9799_v59  ;;  %v5492_v39 = vmul.f32 %v6250_v19, %v9799_v59  ;;  %v5499_v62 = vadd.f32 %v5467_v36, %v9875_v40  ;;  %v5500_v10 = vadd.f32 %v5468_v57, %v9875_v40 }
 0x372   : > { %v5493_v21 = vmul.f32 %v6251_v42, %v9799_v59  ;;  %v5494_v44 = vmul.f32 %v6252_v23, %v9799_v59  ;;  %v5495_v15 = vmul.f32 %v6253_v32, %v9799_v59  ;;  %v5501_v12 = vadd.f32 %v5469_v25, %v9875_v40 }
 0x373   : > { %v5502_v0 = vadd.f32 %v5470_v11, %v9875_v40  ;;  %v5503_v31 = vadd.f32 %v5471_v6, %v9875_v40  ;;  %v5504_v60 = vadd.f32 %v5472_v35, %v9875_v40  ;;  %v5505_v59 = vadd.f32 %v5473_v61, %v9875_v40 }
 0x374   : > { %v5506_v26 = vadd.f32 %v5474_v22, %v9875_v40  ;;  %v5507_v33 = vadd.f32 %v5475_v55, %v9875_v40  ;;  %v5508_v38 = vadd.f32 %v5476_v7, %v9875_v40  ;;  %v5509_v28 = vadd.f32 %v5477_v56, %v9875_v40 }
 0x375   : > { %v5510_v4 = vadd.f32 %v5478_v2, %v9875_v40  ;;  %v5511_v54 = vadd.f32 %v5479_v29, %v9875_v40  ;;  %v5512_v14 = vadd.f32 %v5480_v46, %v9875_v40  ;;  %v5513_v36 = vadd.f32 %v5481_v49, %v9875_v40 }
 0x376   : > { %v10547_v57 = vadd.f32 %v5482_v58, %v9875_v40  ;;  %v10550_v25 = vadd.f32 %v5483_v63, %v9875_v40  ;;  %v10553_v37 = vadd.f32 %v5484_v30, %v9875_v40  ;;  %v10556_v51 = vadd.f32 %v5485_v16, %v9875_v40 }
 0x377   : > { %v10559_v13 = vadd.f32 %v5486_v41, %v9875_v40  ;;  %v10562_v11 = vadd.f32 %v5487_v43, %v9875_v40  ;;  %v10565_v6 = vadd.f32 %v5488_v45, %v9875_v40  ;;  %v10568_v35 = vadd.f32 %v5489_v20, %v9875_v40 }
 0x378   : > { %v10571_v61 = vadd.f32 %v5490_v52, %v9875_v40  ;;  %v10574_v8 = vadd.f32 %v5491_v53, %v9875_v40  ;;  %v10577_v3 = vadd.f32 %v5492_v39, %v9875_v40  ;;  %v10580_v47 = vadd.f32 %v5493_v21, %v9875_v40 }
 0x379   : > { %v10583_v22 = vadd.f32 %v5494_v44, %v9875_v40  ;;  %v10586_v55 = vadd.f32 %v5495_v15, %v9875_v40  ;;  %v5528_v7 = vmax.f32 %v5496_v17, 0.0  ;;  %v5529_v56 = vmax.f32 %v5497_v9, 0.0 }
 0x37a   : > { %v5530_v34 = vmax.f32 %v5498_v24, 0.0  ;;  %v5531_v18 = vmax.f32 %v5499_v62, 0.0  ;;  %v5532_v27 = vmax.f32 %v5500_v10, 0.0  ;;  %v5533_v2 = vmax.f32 %v5501_v12, 0.0 }
 0x37b   : > { %v5534_v29 = vmax.f32 %v5502_v0, 0.0  ;;  %v5535_v46 = vmax.f32 %v5503_v31, 0.0  ;;  %v5536_v49 = vmax.f32 %v5504_v60, 0.0  ;;  %v5537_v5 = vmax.f32 %v5505_v59, 0.0  ;;  %6254 = vst.msk [vmem:[%s8307_s27 + $0x300] sm:$0xff] %vm1631_vm8, %v5528_v7  ;;  %6255 = vst.msk [vmem:[%s8307_s27 + $0x308] sm:$0xff] %vm1631_vm8, %v5529_v56 }
 0x37c   : > { %v5538_v40 = vmax.f32 %v5506_v26, 0.0  ;;  %v5539_v1 = vmax.f32 %v5507_v33, 0.0  ;;  %v5540_v48 = vmax.f32 %v5508_v38, 0.0  ;;  %v5541_v58 = vmax.f32 %v5509_v28, 0.0  ;;  %6256 = vst.msk [vmem:[%s8307_s27 + $0x310] sm:$0xff] %vm1631_vm8, %v5530_v34  ;;  %6257 = vst.msk [vmem:[%s8307_s27 + $0x318] sm:$0xff] %vm1631_vm8, %v5531_v18 }
 0x37d   : > { %6258 = vst.msk [vmem:[%s8307_s27 + $0x320] sm:$0xff] %vm1631_vm8, %v5532_v27  ;;  %6259 = vst.msk [vmem:[%s8307_s27 + $0x328] sm:$0xff] %vm1631_vm8, %v5533_v2  ;;  %v5542_v63 = vmax.f32 %v5510_v4, 0.0  ;;  %v5543_v30 = vmax.f32 %v5511_v54, 0.0  ;;  %v5544_v16 = vmax.f32 %v5512_v14, 0.0  ;;  %v5545_v50 = vmax.f32 %v5513_v36, 0.0 }
 0x37e   : > { %6260 = vst.msk [vmem:[%s8307_s27 + $0x330] sm:$0xff] %vm1631_vm8, %v5534_v29  ;;  %6261 = vst.msk [vmem:[%s8307_s27 + $0x338] sm:$0xff] %vm1631_vm8, %v5535_v46  ;;  %v5546_v19 = vmax.f32 %v10547_v57, 0.0  ;;  %v5547_v42 = vmax.f32 %v10550_v25, 0.0  ;;  %v5548_v41 = vmax.f32 %v10553_v37, 0.0  ;;  %v5549_v43 = vmax.f32 %v10556_v51, 0.0 }
 0x37f   : > { %6262 = vst.msk [vmem:[%s8307_s27 + $0x340] sm:$0xff] %vm1631_vm8, %v5536_v49  ;;  %6263 = vst.msk [vmem:[%s8307_s27 + $0x348] sm:$0xff] %vm1631_vm8, %v5537_v5  ;;  %v5550_v45 = vmax.f32 %v10559_v13, 0.0  ;;  %v5551_v20 = vmax.f32 %v10562_v11, 0.0  ;;  %v5552_v23 = vmax.f32 %v10565_v6, 0.0  ;;  %v5553_v32 = vmax.f32 %v10568_v35, 0.0 }
 0x380   : > { %6264 = vst.msk [vmem:[%s8307_s27 + $0x350] sm:$0xff] %vm1631_vm8, %v5538_v40  ;;  %6265 = vst.msk [vmem:[%s8307_s27 + $0x358] sm:$0xff] %vm1631_vm8, %v5539_v1  ;;  %v5554_v52 = vmax.f32 %v10571_v61, 0.0  ;;  %v5555_v53 = vmax.f32 %v10574_v8, 0.0  ;;  %v5556_v39 = vmax.f32 %v10577_v3, 0.0  ;;  %v5557_v21 = vmax.f32 %v10580_v47, 0.0 }
 0x381   : > { %6266 = vst.msk [vmem:[%s8307_s27 + $0x360] sm:$0xff] %vm1631_vm8, %v5540_v48  ;;  %6267 = vst.msk [vmem:[%s8307_s27 + $0x368] sm:$0xff] %vm1631_vm8, %v5541_v58  ;;  %v5558_v44 = vmax.f32 %v10583_v22, 0.0  ;;  %v5559_v15 = vmax.f32 %v10586_v55, 0.0 }
 0x382   : > { %6268 = vst.msk [vmem:[%s8307_s27 + $0x370] sm:$0xff] %vm1631_vm8, %v5542_v63  ;;  %6269 = vst.msk [vmem:[%s8307_s27 + $0x378] sm:$0xff] %vm1631_vm8, %v5543_v30 }
 0x383   : > { %6270 = vst.msk [vmem:[%s8307_s27 + $0x380] sm:$0xff] %vm1631_vm8, %v5544_v16  ;;  %6271 = vst.msk [vmem:[%s8307_s27 + $0x388] sm:$0xff] %vm1631_vm8, %v5545_v50 }
 0x384   : > { %6272 = vst.msk [vmem:[%s8307_s27 + $0x390] sm:$0xff] %vm1631_vm8, %v5546_v19  ;;  %6273 = vst.msk [vmem:[%s8307_s27 + $0x398] sm:$0xff] %vm1631_vm8, %v5547_v42 }
 0x385   : > { %6274 = vst.msk [vmem:[%s8307_s27 + $0x3a0] sm:$0xff] %vm1631_vm8, %v5548_v41  ;;  %6275 = vst.msk [vmem:[%s8307_s27 + $0x3a8] sm:$0xff] %vm1631_vm8, %v5549_v43 }
 0x386   : > { %6276 = vst.msk [vmem:[%s8307_s27 + $0x3b0] sm:$0xff] %vm1631_vm8, %v5550_v45  ;;  %6277 = vst.msk [vmem:[%s8307_s27 + $0x3b8] sm:$0xff] %vm1631_vm8, %v5551_v20 }
 0x387   : > { %6278 = vst.msk [vmem:[%s8307_s27 + $0x3c0] sm:$0xff] %vm1631_vm8, %v5552_v23  ;;  %6279 = vst.msk [vmem:[%s8307_s27 + $0x3c8] sm:$0xff] %vm1631_vm8, %v5553_v32 }
 0x388   : > { %6280 = vst.msk [vmem:[%s8307_s27 + $0x3d0] sm:$0xff] %vm1631_vm8, %v5554_v52  ;;  %6281 = vst.msk [vmem:[%s8307_s27 + $0x3d8] sm:$0xff] %vm1631_vm8, %v5555_v53 }
 0x389   : > { %6282 = vst.msk [vmem:[%s8307_s27 + $0x3e0] sm:$0xff] %vm1631_vm8, %v5556_v39  ;;  %6283 = vst.msk [vmem:[%s8307_s27 + $0x3e8] sm:$0xff] %vm1631_vm8, %v5557_v21 }
 0x38a   : > { %6284 = vst.msk [vmem:[%s8307_s27 + $0x3f0] sm:$0xff] %vm1631_vm8, %v5558_v44  ;;  %6285 = vst.msk [vmem:[%s8307_s27 + $0x3f8] sm:$0xff] %vm1631_vm8, %v5559_v15 }
 0x38b PF: > { %s14_s15 = sadd.s32 1, %s7160_s15  }
 0x38c   : > { %p11_p4 = scmp.ge.s32.totalorder %s14_s15, 4  }
 0x38e   :  { %13 = sbr.rel (!%p11_p4) target bundleno = 1 (0x1), region = 84 }

</bundles_post_ra>
